<compile_context>
chip_gen: v7x
topology: tpu7x:2x2x1
jax: 0.10.0
libtpu: 0.0.40
codegen_flags: <defaults>
</compile_context>

<pallas_src>
import math
import functools

import jax
import jax.numpy as jnp
from jax import lax
from jax.experimental import pallas as pl
from jax.experimental.pallas import tpu as pltpu

LANE = 128


def _round_up(x, m):
    return ((x + m - 1) // m) * m


# ----------------------------------------------------------------------------
# Fused forward kernel
# ----------------------------------------------------------------------------
def equalizer_former_kernel(
    x_ref, pe_ref,
    w_in_ref, b_in_ref,
    wqkv_ref, bqkv_ref, wo_ref, bo_ref,
    g1_ref, be1_ref, w1_ref, bf1_ref, w2_ref, bf2_ref, g2_ref, be2_ref,
    w_out_ref, b_out_ref,
    o_ref,
    *, nhead,
):
    Bt, S, d_in_pad = x_ref.shape
    D = wqkv_ref.shape[1]                 # d_model
    L = wqkv_ref.shape[0]                 # number of encoder layers
    Dh = D // nhead
    scale = 1.0 / math.sqrt(Dh)
    cdt = w_in_ref.dtype                  # matmul-operand dtype (bf16 or f32)

    # ---- input projection (K zero-padded to lane width) + positional enc ---
    x = x_ref[...].reshape(Bt * S, d_in_pad).astype(cdt)
    h = jnp.dot(x, w_in_ref[...], preferred_element_type=jnp.float32) + b_in_ref[...]
    h = (h.reshape(Bt, S, D) + pe_ref[...][None, :, :]).reshape(Bt * S, D)

    # ---- transformer encoder layers (post-norm, ReLU FFN, eval mode) -------
    for l in range(L):
        # fused QKV projection: one (Bt*S, D) @ (D, 3D) matmul, f32 accumulate
        qkv = (jnp.dot(h.astype(cdt), wqkv_ref[l],
                       preferred_element_type=jnp.float32) + bqkv_ref[l])
        # 128-lane aligned splits (no masking)
        q = qkv[:, 0 * D:1 * D].astype(cdt).reshape(Bt, S, D)
        k = qkv[:, 1 * D:2 * D].astype(cdt).reshape(Bt, S, D)
        v = qkv[:, 2 * D:3 * D].astype(cdt).reshape(Bt, S, D)

        # per-head scaled-dot-product attention (batched over the Bt batch
        # elements of this tile).  Head separation needs a Dh-lane slice
        # because 4-D (two-batch-dim) dot_general is not Mosaic-lowerable;
        # the per-head contexts are concatenated once so the output
        # projection is a single lane-dense K=D MXU matmul.
        ctx_heads = []
        for hd in range(nhead):
            sl = slice(hd * Dh, (hd + 1) * Dh)
            s = jnp.einsum('bqd,bkd->bqk', q[:, :, sl], k[:, :, sl],
                           preferred_element_type=jnp.float32) * scale
            s = s - jnp.max(s, axis=-1, keepdims=True)
            p = jnp.exp(s)
            p = p / jnp.sum(p, axis=-1, keepdims=True)   # exact divide
            ctx_heads.append(
                jnp.einsum('bqk,bkd->bqd', p.astype(cdt), v[:, :, sl],
                           preferred_element_type=jnp.float32))

        ctx = jnp.concatenate(ctx_heads, axis=-1).reshape(Bt * S, D)
        attn = (jnp.dot(ctx.astype(cdt), wo_ref[l],
                        preferred_element_type=jnp.float32) + bo_ref[l])

        # residual + LayerNorm1 (eps = 1e-5, PyTorch default), f32 statistics
        y = h + attn
        mu = jnp.mean(y, axis=-1, keepdims=True)
        var = jnp.mean((y - mu) ** 2, axis=-1, keepdims=True)
        y = (y - mu) * lax.rsqrt(var + 1e-5) * g1_ref[l] + be1_ref[l]

        # feed-forward: linear -> relu -> linear
        f = (jnp.dot(y.astype(cdt), w1_ref[l],
                     preferred_element_type=jnp.float32) + bf1_ref[l])
        f = jnp.maximum(f, 0.0)
        f = (jnp.dot(f.astype(cdt), w2_ref[l],
                     preferred_element_type=jnp.float32) + bf2_ref[l])

        # residual + LayerNorm2
        z = y + f
        mu2 = jnp.mean(z, axis=-1, keepdims=True)
        var2 = jnp.mean((z - mu2) ** 2, axis=-1, keepdims=True)
        h = (z - mu2) * lax.rsqrt(var2 + 1e-5) * g2_ref[l] + be2_ref[l]

    # ---- output projection (N zero-padded to 128 -> unmasked stores) -------
    out = (jnp.dot(h.astype(cdt), w_out_ref[...],
                   preferred_element_type=jnp.float32) + b_out_ref[...])
    o_ref[...] = out.reshape(Bt, S, o_ref.shape[-1])


# ----------------------------------------------------------------------------
# Pallas wrapper
# ----------------------------------------------------------------------------
_WEIGHT_ORDER = ("w_in", "b_in", "wqkv", "bqkv", "wo", "bo",
                 "g1", "be1", "w1", "bf1", "w2", "bf2", "g2", "be2",
                 "w_out", "b_out")


def _rep_spec(arr):
    # whole-array block, independent of the grid index (weights stay resident)
    zeros = (0,) * arr.ndim
    return pl.BlockSpec(arr.shape, lambda b, _z=zeros: _z)


def _pick_bt(B, S, D, Dff, weight_bytes, vmem_budget_bytes):
    """Largest batch tile per grid step whose estimated resident VMEM fits the
    budget (MXU wants Bt*S as large as possible).  Only split the batch into
    grid >= 2 (v7x megacore) when each half still feeds the MXU with >= 256
    folded rows."""
    best = 1
    for bt in range(1, B + 1):
        if B % bt:
            continue
        rows = bt * S
        # live f32 intermediates inside one unrolled layer (h, qkv=3D, q/k/v,
        # ctx, attn, y, z ~ 10*D lanes) plus the FFN hidden and padded I/O
        # blocks (double-buffered), plus double-buffered weights.
        act = rows * (10 * D + 2 * Dff) * 4
        io = rows * (2 * LANE) * 4 * 2
        if 2 * weight_bytes + act + io <= vmem_budget_bytes:
            best = bt
    if best == B and B % 2 == 0 and (B // 2) * S >= 256:
        best = B // 2
    return best


def equalizer_former_forward(rx_signal, enhanced_csi, params, *, nhead,
                             compute_dtype=jnp.bfloat16,
                             vmem_budget_bytes=32 * 1024 * 1024):
    """rx_signal: [B, n_subc, n_sym, n_rx, 2]
       enhanced_csi: [B, n_subc, n_sym, n_tx, n_rx, 2]
       -> [B, n_subc, n_sym, n_tx, 2]"""
    B, n_subc, n_sym, n_rx, _ = rx_signal.shape
    n_tx = enhanced_csi.shape[3]
    S = n_subc * n_sym
    d_in = n_rx * 2 + n_tx * n_rx * 2
    d_out = n_tx * 2
    D = params["w_in"].shape[1]
    Dff = params["w1"].shape[2]

    d_in_pad = _round_up(d_in, LANE)
    d_out_pad = _round_up(d_out, LANE)

    # same memory order as torch .view + cat; zero-pad features to lane width
    rx = rx_signal.reshape(B, S, n_rx * 2).astype(jnp.float32)
    csi = enhanced_csi.reshape(B, S, n_tx * n_rx * 2).astype(jnp.float32)
    x = jnp.concatenate([rx, csi], axis=-1)
    x = jnp.pad(x, ((0, 0), (0, 0), (0, d_in_pad - d_in)))

    pe = params["pe"][:S, :].astype(jnp.float32)

    # matmul-operand weights -> compute_dtype; biases / LN params stay f32
    proc = {k: params[k] for k in _WEIGHT_ORDER}
    proc["w_in"] = jnp.pad(params["w_in"],
                           ((0, d_in_pad - d_in), (0, 0))).astype(compute_dtype)
    proc["w_out"] = jnp.pad(params["w_out"],
                            ((0, 0), (0, d_out_pad - d_out))).astype(compute_dtype)
    proc["b_out"] = jnp.pad(params["b_out"], ((0, 0), (0, d_out_pad - d_out)))
    for name in ("wqkv", "wo", "w1", "w2"):
        proc[name] = params[name].astype(compute_dtype)
    weights = [proc[k] for k in _WEIGHT_ORDER]

    weight_bytes = sum(int(w.size) * w.dtype.itemsize for w in weights)
    Bt = _pick_bt(B, S, D, Dff, weight_bytes, vmem_budget_bytes)

    kernel = functools.partial(equalizer_former_kernel, nhead=nhead)
    out = pl.pallas_call(
        kernel,
        out_shape=jax.ShapeDtypeStruct((B, S, d_out_pad), jnp.float32),
        grid=(B // Bt,),
        in_specs=[pl.BlockSpec((Bt, S, d_in_pad), lambda b: (b, 0, 0)),
                  _rep_spec(pe)]
                 + [_rep_spec(w) for w in weights],
        out_specs=pl.BlockSpec((Bt, S, d_out_pad), lambda b: (b, 0, 0)),
        compiler_params=pltpu.CompilerParams(
            dimension_semantics=("parallel",),
            vmem_limit_bytes=48 * 1024 * 1024),
    )(x, pe, *weights)

    out = out[:, :, :d_out]                       # drop the lane padding
    return out.reshape(B, n_subc, n_sym, n_tx, 2)


# ----------------------------------------------------------------------------
# Deterministic parameter construction
# ----------------------------------------------------------------------------
def make_positional_encoding(max_len, d_model):
    position = jnp.arange(max_len, dtype=jnp.float32)[:, None]
    div_term = jnp.exp(jnp.arange(0, d_model, 2, dtype=jnp.float32)
                       * (-math.log(10000.0) / d_model))
    pe = jnp.zeros((max_len, d_model), jnp.float32)
    pe = pe.at[:, 0::2].set(jnp.sin(position * div_term))
    pe = pe.at[:, 1::2].set(jnp.cos(position * div_term))
    return pe


def make_params(key, *, d_model, n_layers, d_in, d_ff, d_out, max_len):
    counter = [0]

    def nk():
        counter[0] += 1
        return jax.random.fold_in(key, counter[0])

    def dense(fan_in, fan_out):
        return (jax.random.normal(nk(), (fan_in, fan_out), jnp.float32)
                / math.sqrt(fan_in))

    def bias(n):
        return 0.01 * jax.random.normal(nk(), (1, n), jnp.float32)

    def stack(fn):
        return jnp.stack([fn() for _ in range(n_layers)], axis=0)

    return {
        "w_in": dense(d_in, d_model),
        "b_in": bias(d_model),
        "pe": make_positional_encoding(max_len, d_model),
        "wqkv": stack(lambda: dense(d_model, 3 * d_model)),
        "bqkv": stack(lambda: bias(3 * d_model)),
        "wo": stack(lambda: dense(d_model, d_model)),
        "bo": stack(lambda: bias(d_model)),
        "g1": stack(lambda: jnp.ones((1, d_model), jnp.float32)),
        "be1": stack(lambda: jnp.zeros((1, d_model), jnp.float32)),
        "w1": stack(lambda: dense(d_model, d_ff)),
        "bf1": stack(lambda: bias(d_ff)),
        "w2": stack(lambda: dense(d_ff, d_model)),
        "bf2": stack(lambda: bias(d_model)),
        "g2": stack(lambda: jnp.ones((1, d_model), jnp.float32)),
        "be2": stack(lambda: jnp.zeros((1, d_model), jnp.float32)),
        "w_out": dense(d_model, d_out),
        "b_out": bias(d_out),
    }


# ----------------------------------------------------------------------------
# Pure-JAX reference (module semantics, f32) for numerical validation
# ----------------------------------------------------------------------------
def _layer_norm(x, g, b, eps=1e-5):
    mu = jnp.mean(x, axis=-1, keepdims=True)
    var = jnp.mean((x - mu) ** 2, axis=-1, keepdims=True)
    return (x - mu) * lax.rsqrt(var + eps) * g + b


def equalizer_former_reference(rx_signal, enhanced_csi, params, *, nhead):
    B, n_subc, n_sym, n_rx, _ = rx_signal.shape
    n_tx = enhanced_csi.shape[3]
    S = n_subc * n_sym
    rx = rx_signal.reshape(B, S, n_rx * 2).astype(jnp.float32)
    csi = enhanced_csi.reshape(B, S, n_tx * n_rx * 2).astype(jnp.float32)
    x = jnp.concatenate([rx, csi], axis=-1)

    D = params["w_in"].shape[1]
    Dh = D // nhead
    h = x @ params["w_in"] + params["b_in"] + params["pe"][None, :S, :]
    for l in range(params["wqkv"].shape[0]):
        qkv = h @ params["wqkv"][l] + params["bqkv"][l]
        q, k, v = jnp.split(qkv, 3, axis=-1)
        q = q.reshape(B, S, nhead, Dh).transpose(0, 2, 1, 3)
        k = k.reshape(B, S, nhead, Dh).transpose(0, 2, 1, 3)
        v = v.reshape(B, S, nhead, Dh).transpose(0, 2, 1, 3)
        s = jnp.einsum('bhqd,bhkd->bhqk', q, k) / math.sqrt(Dh)
        p = jax.nn.softmax(s, axis=-1)
        ctx = jnp.einsum('bhqk,bhkd->bhqd', p, v).transpose(0, 2, 1, 3)
        attn = ctx.reshape(B, S, D) @ params["wo"][l] + params["bo"][l]
        y = _layer_norm(h + attn, params["g1"][l], params["be1"][l])
        f = jnp.maximum(y @ params["w1"][l] + params["bf1"][l], 0.0)
        f = f @ params["w2"][l] + params["bf2"][l]
        h = _layer_norm(y + f, params["g2"][l], params["be2"][l])
    out = h @ params["w_out"] + params["b_out"]
    return out.reshape(B, n_subc, n_sym, n_tx, 2)


# ----------------------------------------------------------------------------
# Main
# ----------------------------------------------------------------------------
if __name__ == "__main__":
    # small configuration consistent with the module's forward
    B, n_subc, n_sym, n_tx, n_rx = 2, 4, 2, 2, 2        # seq_len S = 8
    d_model, nhead, n_layers, d_ff, max_len = 128, 4, 2, 256, 64

    key = jax.random.PRNGKey(0)
    k_rx, k_csi, k_p = jax.random.split(key, 3)
    rx_signal = jax.random.normal(
        k_rx, (B, n_subc, n_sym, n_rx, 2), jnp.float32)
    enhanced_csi = jax.random.normal(
        k_csi, (B, n_subc, n_sym, n_tx, n_rx, 2), jnp.float32)

    params = make_params(k_p, d_model=d_model, n_layers=n_layers,
                         d_in=n_rx * 2 + n_tx * n_rx * 2,
                         d_ff=d_ff, d_out=n_tx * 2, max_len=max_len)

    # recommended production mode on v6e/v7x: bf16 matmul operands, f32 accum
    out_bf16 = equalizer_former_forward(
        rx_signal, enhanced_csi, params, nhead=nhead,
        compute_dtype=jnp.bfloat16)
    out_bf16 = jax.block_until_ready(out_bf16)

    # exact-f32 mode for tight parity with the module reference
    out_f32 = equalizer_former_forward(
        rx_signal, enhanced_csi, params, nhead=nhead,
        compute_dtype=jnp.float32)
    out_f32 = jax.block_until_ready(out_f32)

    assert out_f32.shape == (B, n_subc, n_sym, n_tx, 2), out_f32.shape
    assert out_f32.dtype == jnp.float32
    assert bool(jnp.all(jnp.isfinite(out_f32)))
    assert bool(jnp.all(jnp.isfinite(out_bf16)))

    ref = equalizer_former_reference(rx_signal, enhanced_csi, params, nhead=nhead)
    err_f32 = float(jnp.max(jnp.abs(out_f32 - ref)))
    assert err_f32 < 2e-2, f"f32 max abs error vs reference = {err_f32}"
    err_bf16 = float(jnp.max(jnp.abs(out_bf16 - ref)))
    assert err_bf16 < 2e-1, f"bf16 max abs error vs reference = {err_bf16}"

    print("KERNEL_OK")
</pallas_src>

<mosaic_0001>
module attributes {stable_mosaic.version = 11 : i64} {
  func.func @equalizer_former_kernel(%arg0: i32, %arg1: memref<2x8x128xf32, #tpu.memory_space<vmem>>, %arg2: memref<8x128xf32, #tpu.memory_space<vmem>>, %arg3: memref<128x128xbf16, #tpu.memory_space<vmem>>, %arg4: memref<1x128xf32, #tpu.memory_space<vmem>>, %arg5: memref<2x128x384xbf16, #tpu.memory_space<vmem>>, %arg6: memref<2x1x384xf32, #tpu.memory_space<vmem>>, %arg7: memref<2x128x128xbf16, #tpu.memory_space<vmem>>, %arg8: memref<2x1x128xf32, #tpu.memory_space<vmem>>, %arg9: memref<2x1x128xf32, #tpu.memory_space<vmem>>, %arg10: memref<2x1x128xf32, #tpu.memory_space<vmem>>, %arg11: memref<2x128x256xbf16, #tpu.memory_space<vmem>>, %arg12: memref<2x1x256xf32, #tpu.memory_space<vmem>>, %arg13: memref<2x256x128xbf16, #tpu.memory_space<vmem>>, %arg14: memref<2x1x128xf32, #tpu.memory_space<vmem>>, %arg15: memref<2x1x128xf32, #tpu.memory_space<vmem>>, %arg16: memref<2x1x128xf32, #tpu.memory_space<vmem>>, %arg17: memref<128x128xbf16, #tpu.memory_space<vmem>>, %arg18: memref<1x128xf32, #tpu.memory_space<vmem>>, %arg19: memref<2x8x128xf32, #tpu.memory_space<vmem>>) attributes {dimension_semantics = [#tpu.dimension_semantics<parallel>], iteration_bounds = array<i64: 1>, scalar_prefetch = 0 : i64, scratch_operands = 0 : i64, tpu.core_type = #tpu.core_type<tc>, window_params = [{transform_indices = @transform_0, window_bounds = array<i64: 2, 8, 128>}, {pipeline_mode = #tpu.pipeline_mode<synchronous>, transform_indices = @transform_1, window_bounds = array<i64: 8, 128>}, {pipeline_mode = #tpu.pipeline_mode<synchronous>, transform_indices = @transform_2, window_bounds = array<i64: 128, 128>}, {pipeline_mode = #tpu.pipeline_mode<synchronous>, transform_indices = @transform_3, window_bounds = array<i64: 1, 128>}, {pipeline_mode = #tpu.pipeline_mode<synchronous>, transform_indices = @transform_4, window_bounds = array<i64: 2, 128, 384>}, {pipeline_mode = #tpu.pipeline_mode<synchronous>, transform_indices = @transform_5, window_bounds = array<i64: 2, 1, 384>}, {pipeline_mode = #tpu.pipeline_mode<synchronous>, transform_indices = @transform_6, window_bounds = array<i64: 2, 128, 128>}, {pipeline_mode = #tpu.pipeline_mode<synchronous>, transform_indices = @transform_7, window_bounds = array<i64: 2, 1, 128>}, {pipeline_mode = #tpu.pipeline_mode<synchronous>, transform_indices = @transform_8, window_bounds = array<i64: 2, 1, 128>}, {pipeline_mode = #tpu.pipeline_mode<synchronous>, transform_indices = @transform_9, window_bounds = array<i64: 2, 1, 128>}, {pipeline_mode = #tpu.pipeline_mode<synchronous>, transform_indices = @transform_10, window_bounds = array<i64: 2, 128, 256>}, {pipeline_mode = #tpu.pipeline_mode<synchronous>, transform_indices = @transform_11, window_bounds = array<i64: 2, 1, 256>}, {pipeline_mode = #tpu.pipeline_mode<synchronous>, transform_indices = @transform_12, window_bounds = array<i64: 2, 256, 128>}, {pipeline_mode = #tpu.pipeline_mode<synchronous>, transform_indices = @transform_13, window_bounds = array<i64: 2, 1, 128>}, {pipeline_mode = #tpu.pipeline_mode<synchronous>, transform_indices = @transform_14, window_bounds = array<i64: 2, 1, 128>}, {pipeline_mode = #tpu.pipeline_mode<synchronous>, transform_indices = @transform_15, window_bounds = array<i64: 2, 1, 128>}, {pipeline_mode = #tpu.pipeline_mode<synchronous>, transform_indices = @transform_16, window_bounds = array<i64: 128, 128>}, {pipeline_mode = #tpu.pipeline_mode<synchronous>, transform_indices = @transform_17, window_bounds = array<i64: 1, 128>}, {transform_indices = @transform_18, window_bounds = array<i64: 2, 8, 128>}]} {
    %c0 = arith.constant 0 : index
    %c0_0 = arith.constant 0 : index
    %c0_1 = arith.constant 0 : index
    %0 = vector.load %arg1[%c0, %c0_0, %c0_1] : memref<2x8x128xf32, #tpu.memory_space<vmem>>, vector<2x8x128xf32>
    %1 = vector.shape_cast %0 : vector<2x8x128xf32> to vector<16x128xf32>
    %2 = arith.truncf %1 : vector<16x128xf32> to vector<16x128xbf16>
    %c0_2 = arith.constant 0 : index
    %c0_3 = arith.constant 0 : index
    %3 = vector.load %arg3[%c0_2, %c0_3] : memref<128x128xbf16, #tpu.memory_space<vmem>>, vector<128x128xbf16>
    %cst = arith.constant dense<0.000000e+00> : vector<16x128xf32>
    %4 = tpu.matmul %2, %3, %cst {dimension_numbers = #tpu.dot_dimension_numbers<[1], [0], [0], [1], [0, 0, 1, 1], [], []>} : vector<16x128xbf16>, vector<128x128xbf16>, vector<16x128xf32> -> vector<16x128xf32>
    %c0_4 = arith.constant 0 : index
    %c0_5 = arith.constant 0 : index
    %5 = vector.load %arg4[%c0_4, %c0_5] : memref<1x128xf32, #tpu.memory_space<vmem>>, vector<1x128xf32>
    %6 = vector.broadcast %5 : vector<1x128xf32> to vector<16x128xf32>
    %7 = arith.addf %4, %6 : vector<16x128xf32>
    %8 = vector.shape_cast %7 : vector<16x128xf32> to vector<2x8x128xf32>
    %c0_6 = arith.constant 0 : index
    %c0_7 = arith.constant 0 : index
    %9 = vector.load %arg2[%c0_6, %c0_7] : memref<8x128xf32, #tpu.memory_space<vmem>>, vector<8x128xf32>
    %10 = vector.shape_cast %9 : vector<8x128xf32> to vector<1x8x128xf32>
    %11 = vector.broadcast %10 : vector<1x8x128xf32> to vector<2x8x128xf32>
    %12 = arith.addf %8, %11 : vector<2x8x128xf32>
    %13 = vector.shape_cast %12 : vector<2x8x128xf32> to vector<16x128xf32>
    %14 = arith.truncf %13 : vector<16x128xf32> to vector<16x128xbf16>
    %c0_8 = arith.constant 0 : index
    %c0_9 = arith.constant 0 : index
    %c0_10 = arith.constant 0 : index
    %15 = vector.load %arg5[%c0_8, %c0_9, %c0_10] : memref<2x128x384xbf16, #tpu.memory_space<vmem>>, vector<1x128x384xbf16>
    %16 = vector.shape_cast %15 : vector<1x128x384xbf16> to vector<128x384xbf16>
    %cst_11 = arith.constant dense<0.000000e+00> : vector<16x384xf32>
    %17 = tpu.matmul %14, %16, %cst_11 {dimension_numbers = #tpu.dot_dimension_numbers<[1], [0], [0], [1], [0, 0, 1, 1], [], []>} : vector<16x128xbf16>, vector<128x384xbf16>, vector<16x384xf32> -> vector<16x384xf32>
    %c0_12 = arith.constant 0 : index
    %c0_13 = arith.constant 0 : index
    %c0_14 = arith.constant 0 : index
    %18 = vector.load %arg6[%c0_12, %c0_13, %c0_14] : memref<2x1x384xf32, #tpu.memory_space<vmem>>, vector<1x1x384xf32>
    %19 = vector.shape_cast %18 : vector<1x1x384xf32> to vector<1x384xf32>
    %20 = vector.broadcast %19 : vector<1x384xf32> to vector<16x384xf32>
    %21 = arith.addf %17, %20 : vector<16x384xf32>
    %22 = vector.extract_strided_slice %21 {offsets = [0, 0], sizes = [16, 128], strides = [1, 1]} : vector<16x384xf32> to vector<16x128xf32>
    %23 = arith.truncf %22 : vector<16x128xf32> to vector<16x128xbf16>
    %24 = vector.shape_cast %23 : vector<16x128xbf16> to vector<2x8x128xbf16>
    %25 = vector.extract_strided_slice %21 {offsets = [0, 128], sizes = [16, 128], strides = [1, 1]} : vector<16x384xf32> to vector<16x128xf32>
    %26 = arith.truncf %25 : vector<16x128xf32> to vector<16x128xbf16>
    %27 = vector.shape_cast %26 : vector<16x128xbf16> to vector<2x8x128xbf16>
    %28 = vector.extract_strided_slice %21 {offsets = [0, 256], sizes = [16, 128], strides = [1, 1]} : vector<16x384xf32> to vector<16x128xf32>
    %29 = arith.truncf %28 : vector<16x128xf32> to vector<16x128xbf16>
    %30 = vector.shape_cast %29 : vector<16x128xbf16> to vector<2x8x128xbf16>
    %31 = vector.extract_strided_slice %24 {offsets = [0, 0, 0], sizes = [2, 8, 32], strides = [1, 1, 1]} : vector<2x8x128xbf16> to vector<2x8x32xbf16>
    %32 = vector.extract_strided_slice %27 {offsets = [0, 0, 0], sizes = [2, 8, 32], strides = [1, 1, 1]} : vector<2x8x128xbf16> to vector<2x8x32xbf16>
    "tpu.trace_start"() <{level = 10 : i32, message = "bqd,bkd->bqk"}> : () -> ()
    %cst_15 = arith.constant dense<0.000000e+00> : vector<2x8x8xf32>
    %33 = tpu.matmul %31, %32, %cst_15 {dimension_numbers = #tpu.dot_dimension_numbers<[2], [2], [1], [1], [0, 0, 0, 1, 1, 1], [0], [0]>} : vector<2x8x32xbf16>, vector<2x8x32xbf16>, vector<2x8x8xf32> -> vector<2x8x8xf32>
    "tpu.trace_stop"() : () -> ()
    %cst_16 = arith.constant 0.176776692 : f32
    %34 = vector.broadcast %cst_16 : f32 to vector<2x8x8xf32>
    %35 = arith.mulf %33, %34 : vector<2x8x8xf32>
    %cst_17 = arith.constant dense<0xFF800000> : vector<2x8xf32>
    %36 = vector.multi_reduction <maximumf>, %35, %cst_17 [2] : vector<2x8x8xf32> to vector<2x8xf32>
    %37 = vector.shape_cast %36 : vector<2x8xf32> to vector<2x8x1xf32>
    %38 = vector.broadcast %37 : vector<2x8x1xf32> to vector<2x8x8xf32>
    %39 = arith.subf %35, %38 : vector<2x8x8xf32>
    %40 = math.exp %39 : vector<2x8x8xf32>
    %cst_18 = arith.constant dense<0.000000e+00> : vector<2x8xf32>
    %41 = vector.multi_reduction <add>, %40, %cst_18 [2] : vector<2x8x8xf32> to vector<2x8xf32>
    %42 = vector.shape_cast %41 : vector<2x8xf32> to vector<2x8x1xf32>
    %43 = vector.broadcast %42 : vector<2x8x1xf32> to vector<2x8x8xf32>
    %44 = arith.divf %40, %43 : vector<2x8x8xf32>
    %45 = arith.truncf %44 : vector<2x8x8xf32> to vector<2x8x8xbf16>
    %46 = vector.extract_strided_slice %30 {offsets = [0, 0, 0], sizes = [2, 8, 32], strides = [1, 1, 1]} : vector<2x8x128xbf16> to vector<2x8x32xbf16>
    "tpu.trace_start"() <{level = 10 : i32, message = "bqk,bkd->bqd"}> : () -> ()
    %cst_19 = arith.constant dense<0.000000e+00> : vector<2x8x32xf32>
    %47 = tpu.matmul %45, %46, %cst_19 {dimension_numbers = #tpu.dot_dimension_numbers<[2], [1], [1], [2], [0, 0, 0, 1, 1, 2], [0], [0]>} : vector<2x8x8xbf16>, vector<2x8x32xbf16>, vector<2x8x32xf32> -> vector<2x8x32xf32>
    "tpu.trace_stop"() : () -> ()
    %48 = vector.extract_strided_slice %24 {offsets = [0, 0, 32], sizes = [2, 8, 32], strides = [1, 1, 1]} : vector<2x8x128xbf16> to vector<2x8x32xbf16>
    %49 = vector.extract_strided_slice %27 {offsets = [0, 0, 32], sizes = [2, 8, 32], strides = [1, 1, 1]} : vector<2x8x128xbf16> to vector<2x8x32xbf16>
    "tpu.trace_start"() <{level = 10 : i32, message = "bqd,bkd->bqk"}> : () -> ()
    %cst_20 = arith.constant dense<0.000000e+00> : vector<2x8x8xf32>
    %50 = tpu.matmul %48, %49, %cst_20 {dimension_numbers = #tpu.dot_dimension_numbers<[2], [2], [1], [1], [0, 0, 0, 1, 1, 1], [0], [0]>} : vector<2x8x32xbf16>, vector<2x8x32xbf16>, vector<2x8x8xf32> -> vector<2x8x8xf32>
    "tpu.trace_stop"() : () -> ()
    %cst_21 = arith.constant 0.176776692 : f32
    %51 = vector.broadcast %cst_21 : f32 to vector<2x8x8xf32>
    %52 = arith.mulf %50, %51 : vector<2x8x8xf32>
    %cst_22 = arith.constant dense<0xFF800000> : vector<2x8xf32>
    %53 = vector.multi_reduction <maximumf>, %52, %cst_22 [2] : vector<2x8x8xf32> to vector<2x8xf32>
    %54 = vector.shape_cast %53 : vector<2x8xf32> to vector<2x8x1xf32>
    %55 = vector.broadcast %54 : vector<2x8x1xf32> to vector<2x8x8xf32>
    %56 = arith.subf %52, %55 : vector<2x8x8xf32>
    %57 = math.exp %56 : vector<2x8x8xf32>
    %cst_23 = arith.constant dense<0.000000e+00> : vector<2x8xf32>
    %58 = vector.multi_reduction <add>, %57, %cst_23 [2] : vector<2x8x8xf32> to vector<2x8xf32>
    %59 = vector.shape_cast %58 : vector<2x8xf32> to vector<2x8x1xf32>
    %60 = vector.broadcast %59 : vector<2x8x1xf32> to vector<2x8x8xf32>
    %61 = arith.divf %57, %60 : vector<2x8x8xf32>
    %62 = arith.truncf %61 : vector<2x8x8xf32> to vector<2x8x8xbf16>
    %63 = vector.extract_strided_slice %30 {offsets = [0, 0, 32], sizes = [2, 8, 32], strides = [1, 1, 1]} : vector<2x8x128xbf16> to vector<2x8x32xbf16>
    "tpu.trace_start"() <{level = 10 : i32, message = "bqk,bkd->bqd"}> : () -> ()
    %cst_24 = arith.constant dense<0.000000e+00> : vector<2x8x32xf32>
    %64 = tpu.matmul %62, %63, %cst_24 {dimension_numbers = #tpu.dot_dimension_numbers<[2], [1], [1], [2], [0, 0, 0, 1, 1, 2], [0], [0]>} : vector<2x8x8xbf16>, vector<2x8x32xbf16>, vector<2x8x32xf32> -> vector<2x8x32xf32>
    "tpu.trace_stop"() : () -> ()
    %65 = vector.extract_strided_slice %24 {offsets = [0, 0, 64], sizes = [2, 8, 32], strides = [1, 1, 1]} : vector<2x8x128xbf16> to vector<2x8x32xbf16>
    %66 = vector.extract_strided_slice %27 {offsets = [0, 0, 64], sizes = [2, 8, 32], strides = [1, 1, 1]} : vector<2x8x128xbf16> to vector<2x8x32xbf16>
    "tpu.trace_start"() <{level = 10 : i32, message = "bqd,bkd->bqk"}> : () -> ()
    %cst_25 = arith.constant dense<0.000000e+00> : vector<2x8x8xf32>
    %67 = tpu.matmul %65, %66, %cst_25 {dimension_numbers = #tpu.dot_dimension_numbers<[2], [2], [1], [1], [0, 0, 0, 1, 1, 1], [0], [0]>} : vector<2x8x32xbf16>, vector<2x8x32xbf16>, vector<2x8x8xf32> -> vector<2x8x8xf32>
    "tpu.trace_stop"() : () -> ()
    %cst_26 = arith.constant 0.176776692 : f32
    %68 = vector.broadcast %cst_26 : f32 to vector<2x8x8xf32>
    %69 = arith.mulf %67, %68 : vector<2x8x8xf32>
    %cst_27 = arith.constant dense<0xFF800000> : vector<2x8xf32>
    %70 = vector.multi_reduction <maximumf>, %69, %cst_27 [2] : vector<2x8x8xf32> to vector<2x8xf32>
    %71 = vector.shape_cast %70 : vector<2x8xf32> to vector<2x8x1xf32>
    %72 = vector.broadcast %71 : vector<2x8x1xf32> to vector<2x8x8xf32>
    %73 = arith.subf %69, %72 : vector<2x8x8xf32>
    %74 = math.exp %73 : vector<2x8x8xf32>
    %cst_28 = arith.constant dense<0.000000e+00> : vector<2x8xf32>
    %75 = vector.multi_reduction <add>, %74, %cst_28 [2] : vector<2x8x8xf32> to vector<2x8xf32>
    %76 = vector.shape_cast %75 : vector<2x8xf32> to vector<2x8x1xf32>
    %77 = vector.broadcast %76 : vector<2x8x1xf32> to vector<2x8x8xf32>
    %78 = arith.divf %74, %77 : vector<2x8x8xf32>
    %79 = arith.truncf %78 : vector<2x8x8xf32> to vector<2x8x8xbf16>
    %80 = vector.extract_strided_slice %30 {offsets = [0, 0, 64], sizes = [2, 8, 32], strides = [1, 1, 1]} : vector<2x8x128xbf16> to vector<2x8x32xbf16>
    "tpu.trace_start"() <{level = 10 : i32, message = "bqk,bkd->bqd"}> : () -> ()
    %cst_29 = arith.constant dense<0.000000e+00> : vector<2x8x32xf32>
    %81 = tpu.matmul %79, %80, %cst_29 {dimension_numbers = #tpu.dot_dimension_numbers<[2], [1], [1], [2], [0, 0, 0, 1, 1, 2], [0], [0]>} : vector<2x8x8xbf16>, vector<2x8x32xbf16>, vector<2x8x32xf32> -> vector<2x8x32xf32>
    "tpu.trace_stop"() : () -> ()
    %82 = vector.extract_strided_slice %24 {offsets = [0, 0, 96], sizes = [2, 8, 32], strides = [1, 1, 1]} : vector<2x8x128xbf16> to vector<2x8x32xbf16>
    %83 = vector.extract_strided_slice %27 {offsets = [0, 0, 96], sizes = [2, 8, 32], strides = [1, 1, 1]} : vector<2x8x128xbf16> to vector<2x8x32xbf16>
    "tpu.trace_start"() <{level = 10 : i32, message = "bqd,bkd->bqk"}> : () -> ()
    %cst_30 = arith.constant dense<0.000000e+00> : vector<2x8x8xf32>
    %84 = tpu.matmul %82, %83, %cst_30 {dimension_numbers = #tpu.dot_dimension_numbers<[2], [2], [1], [1], [0, 0, 0, 1, 1, 1], [0], [0]>} : vector<2x8x32xbf16>, vector<2x8x32xbf16>, vector<2x8x8xf32> -> vector<2x8x8xf32>
    "tpu.trace_stop"() : () -> ()
    %cst_31 = arith.constant 0.176776692 : f32
    %85 = vector.broadcast %cst_31 : f32 to vector<2x8x8xf32>
    %86 = arith.mulf %84, %85 : vector<2x8x8xf32>
    %cst_32 = arith.constant dense<0xFF800000> : vector<2x8xf32>
    %87 = vector.multi_reduction <maximumf>, %86, %cst_32 [2] : vector<2x8x8xf32> to vector<2x8xf32>
    %88 = vector.shape_cast %87 : vector<2x8xf32> to vector<2x8x1xf32>
    %89 = vector.broadcast %88 : vector<2x8x1xf32> to vector<2x8x8xf32>
    %90 = arith.subf %86, %89 : vector<2x8x8xf32>
    %91 = math.exp %90 : vector<2x8x8xf32>
    %cst_33 = arith.constant dense<0.000000e+00> : vector<2x8xf32>
    %92 = vector.multi_reduction <add>, %91, %cst_33 [2] : vector<2x8x8xf32> to vector<2x8xf32>
    %93 = vector.shape_cast %92 : vector<2x8xf32> to vector<2x8x1xf32>
    %94 = vector.broadcast %93 : vector<2x8x1xf32> to vector<2x8x8xf32>
    %95 = arith.divf %91, %94 : vector<2x8x8xf32>
    %96 = arith.truncf %95 : vector<2x8x8xf32> to vector<2x8x8xbf16>
    %97 = vector.extract_strided_slice %30 {offsets = [0, 0, 96], sizes = [2, 8, 32], strides = [1, 1, 1]} : vector<2x8x128xbf16> to vector<2x8x32xbf16>
    "tpu.trace_start"() <{level = 10 : i32, message = "bqk,bkd->bqd"}> : () -> ()
    %cst_34 = arith.constant dense<0.000000e+00> : vector<2x8x32xf32>
    %98 = tpu.matmul %96, %97, %cst_34 {dimension_numbers = #tpu.dot_dimension_numbers<[2], [1], [1], [2], [0, 0, 0, 1, 1, 2], [0], [0]>} : vector<2x8x8xbf16>, vector<2x8x32xbf16>, vector<2x8x32xf32> -> vector<2x8x32xf32>
    "tpu.trace_stop"() : () -> ()
    %99 = tpu.concatenate %47, %64, %81, %98 in 2 : vector<2x8x32xf32>, vector<2x8x32xf32>, vector<2x8x32xf32>, vector<2x8x32xf32> -> vector<2x8x128xf32>
    %100 = vector.shape_cast %99 : vector<2x8x128xf32> to vector<16x128xf32>
    %101 = arith.truncf %100 : vector<16x128xf32> to vector<16x128xbf16>
    %c0_35 = arith.constant 0 : index
    %c0_36 = arith.constant 0 : index
    %c0_37 = arith.constant 0 : index
    %102 = vector.load %arg7[%c0_35, %c0_36, %c0_37] : memref<2x128x128xbf16, #tpu.memory_space<vmem>>, vector<1x128x128xbf16>
    %103 = vector.shape_cast %102 : vector<1x128x128xbf16> to vector<128x128xbf16>
    %cst_38 = arith.constant dense<0.000000e+00> : vector<16x128xf32>
    %104 = tpu.matmul %101, %103, %cst_38 {dimension_numbers = #tpu.dot_dimension_numbers<[1], [0], [0], [1], [0, 0, 1, 1], [], []>} : vector<16x128xbf16>, vector<128x128xbf16>, vector<16x128xf32> -> vector<16x128xf32>
    %c0_39 = arith.constant 0 : index
    %c0_40 = arith.constant 0 : index
    %c0_41 = arith.constant 0 : index
    %105 = vector.load %arg8[%c0_39, %c0_40, %c0_41] : memref<2x1x128xf32, #tpu.memory_space<vmem>>, vector<1x1x128xf32>
    %106 = vector.shape_cast %105 : vector<1x1x128xf32> to vector<1x128xf32>
    %107 = vector.broadcast %106 : vector<1x128xf32> to vector<16x128xf32>
    %108 = arith.addf %104, %107 : vector<16x128xf32>
    %109 = arith.addf %13, %108 : vector<16x128xf32>
    %cst_42 = arith.constant dense<0.000000e+00> : vector<16xf32>
    %110 = vector.multi_reduction <add>, %109, %cst_42 [1] : vector<16x128xf32> to vector<16xf32>
    %111 = vector.shape_cast %110 : vector<16xf32> to vector<16x1xf32>
    %cst_43 = arith.constant 1.280000e+02 : f32
    %112 = vector.broadcast %cst_43 : f32 to vector<16x1xf32>
    %113 = arith.divf %111, %112 : vector<16x1xf32>
    %114 = vector.broadcast %113 : vector<16x1xf32> to vector<16x128xf32>
    %115 = arith.subf %109, %114 : vector<16x128xf32>
    %116 = arith.mulf %115, %115 : vector<16x128xf32>
    %cst_44 = arith.constant dense<0.000000e+00> : vector<16xf32>
    %117 = vector.multi_reduction <add>, %116, %cst_44 [1] : vector<16x128xf32> to vector<16xf32>
    %118 = vector.shape_cast %117 : vector<16xf32> to vector<16x1xf32>
    %cst_45 = arith.constant 1.280000e+02 : f32
    %119 = vector.broadcast %cst_45 : f32 to vector<16x1xf32>
    %120 = arith.divf %118, %119 : vector<16x1xf32>
    %121 = vector.broadcast %113 : vector<16x1xf32> to vector<16x128xf32>
    %122 = arith.subf %109, %121 : vector<16x128xf32>
    %cst_46 = arith.constant 9.99999974E-6 : f32
    %123 = vector.broadcast %cst_46 : f32 to vector<16x1xf32>
    %124 = arith.addf %120, %123 : vector<16x1xf32>
    %125 = math.rsqrt %124 : vector<16x1xf32>
    %126 = vector.broadcast %125 : vector<16x1xf32> to vector<16x128xf32>
    %127 = arith.mulf %122, %126 : vector<16x128xf32>
    %c0_47 = arith.constant 0 : index
    %c0_48 = arith.constant 0 : index
    %c0_49 = arith.constant 0 : index
    %128 = vector.load %arg9[%c0_47, %c0_48, %c0_49] : memref<2x1x128xf32, #tpu.memory_space<vmem>>, vector<1x1x128xf32>
    %129 = vector.shape_cast %128 : vector<1x1x128xf32> to vector<1x128xf32>
    %130 = vector.broadcast %129 : vector<1x128xf32> to vector<16x128xf32>
    %131 = arith.mulf %127, %130 : vector<16x128xf32>
    %c0_50 = arith.constant 0 : index
    %c0_51 = arith.constant 0 : index
    %c0_52 = arith.constant 0 : index
    %132 = vector.load %arg10[%c0_50, %c0_51, %c0_52] : memref<2x1x128xf32, #tpu.memory_space<vmem>>, vector<1x1x128xf32>
    %133 = vector.shape_cast %132 : vector<1x1x128xf32> to vector<1x128xf32>
    %134 = vector.broadcast %133 : vector<1x128xf32> to vector<16x128xf32>
    %135 = arith.addf %131, %134 : vector<16x128xf32>
    %136 = arith.truncf %135 : vector<16x128xf32> to vector<16x128xbf16>
    %c0_53 = arith.constant 0 : index
    %c0_54 = arith.constant 0 : index
    %c0_55 = arith.constant 0 : index
    %137 = vector.load %arg11[%c0_53, %c0_54, %c0_55] : memref<2x128x256xbf16, #tpu.memory_space<vmem>>, vector<1x128x256xbf16>
    %138 = vector.shape_cast %137 : vector<1x128x256xbf16> to vector<128x256xbf16>
    %cst_56 = arith.constant dense<0.000000e+00> : vector<16x256xf32>
    %139 = tpu.matmul %136, %138, %cst_56 {dimension_numbers = #tpu.dot_dimension_numbers<[1], [0], [0], [1], [0, 0, 1, 1], [], []>} : vector<16x128xbf16>, vector<128x256xbf16>, vector<16x256xf32> -> vector<16x256xf32>
    %c0_57 = arith.constant 0 : index
    %c0_58 = arith.constant 0 : index
    %c0_59 = arith.constant 0 : index
    %140 = vector.load %arg12[%c0_57, %c0_58, %c0_59] : memref<2x1x256xf32, #tpu.memory_space<vmem>>, vector<1x1x256xf32>
    %141 = vector.shape_cast %140 : vector<1x1x256xf32> to vector<1x256xf32>
    %142 = vector.broadcast %141 : vector<1x256xf32> to vector<16x256xf32>
    %143 = arith.addf %139, %142 : vector<16x256xf32>
    %cst_60 = arith.constant 0.000000e+00 : f32
    %144 = vector.broadcast %cst_60 : f32 to vector<16x256xf32>
    %145 = arith.maximumf %143, %144 : vector<16x256xf32>
    %146 = arith.truncf %145 : vector<16x256xf32> to vector<16x256xbf16>
    %c0_61 = arith.constant 0 : index
    %c0_62 = arith.constant 0 : index
    %c0_63 = arith.constant 0 : index
    %147 = vector.load %arg13[%c0_61, %c0_62, %c0_63] : memref<2x256x128xbf16, #tpu.memory_space<vmem>>, vector<1x256x128xbf16>
    %148 = vector.shape_cast %147 : vector<1x256x128xbf16> to vector<256x128xbf16>
    %cst_64 = arith.constant dense<0.000000e+00> : vector<16x128xf32>
    %149 = tpu.matmul %146, %148, %cst_64 {dimension_numbers = #tpu.dot_dimension_numbers<[1], [0], [0], [1], [0, 0, 1, 1], [], []>} : vector<16x256xbf16>, vector<256x128xbf16>, vector<16x128xf32> -> vector<16x128xf32>
    %c0_65 = arith.constant 0 : index
    %c0_66 = arith.constant 0 : index
    %c0_67 = arith.constant 0 : index
    %150 = vector.load %arg14[%c0_65, %c0_66, %c0_67] : memref<2x1x128xf32, #tpu.memory_space<vmem>>, vector<1x1x128xf32>
    %151 = vector.shape_cast %150 : vector<1x1x128xf32> to vector<1x128xf32>
    %152 = vector.broadcast %151 : vector<1x128xf32> to vector<16x128xf32>
    %153 = arith.addf %149, %152 : vector<16x128xf32>
    %154 = arith.addf %135, %153 : vector<16x128xf32>
    %cst_68 = arith.constant dense<0.000000e+00> : vector<16xf32>
    %155 = vector.multi_reduction <add>, %154, %cst_68 [1] : vector<16x128xf32> to vector<16xf32>
    %156 = vector.shape_cast %155 : vector<16xf32> to vector<16x1xf32>
    %cst_69 = arith.constant 1.280000e+02 : f32
    %157 = vector.broadcast %cst_69 : f32 to vector<16x1xf32>
    %158 = arith.divf %156, %157 : vector<16x1xf32>
    %159 = vector.broadcast %158 : vector<16x1xf32> to vector<16x128xf32>
    %160 = arith.subf %154, %159 : vector<16x128xf32>
    %161 = arith.mulf %160, %160 : vector<16x128xf32>
    %cst_70 = arith.constant dense<0.000000e+00> : vector<16xf32>
    %162 = vector.multi_reduction <add>, %161, %cst_70 [1] : vector<16x128xf32> to vector<16xf32>
    %163 = vector.shape_cast %162 : vector<16xf32> to vector<16x1xf32>
    %cst_71 = arith.constant 1.280000e+02 : f32
    %164 = vector.broadcast %cst_71 : f32 to vector<16x1xf32>
    %165 = arith.divf %163, %164 : vector<16x1xf32>
    %166 = vector.broadcast %158 : vector<16x1xf32> to vector<16x128xf32>
    %167 = arith.subf %154, %166 : vector<16x128xf32>
    %cst_72 = arith.constant 9.99999974E-6 : f32
    %168 = vector.broadcast %cst_72 : f32 to vector<16x1xf32>
    %169 = arith.addf %165, %168 : vector<16x1xf32>
    %170 = math.rsqrt %169 : vector<16x1xf32>
    %171 = vector.broadcast %170 : vector<16x1xf32> to vector<16x128xf32>
    %172 = arith.mulf %167, %171 : vector<16x128xf32>
    %c0_73 = arith.constant 0 : index
    %c0_74 = arith.constant 0 : index
    %c0_75 = arith.constant 0 : index
    %173 = vector.load %arg15[%c0_73, %c0_74, %c0_75] : memref<2x1x128xf32, #tpu.memory_space<vmem>>, vector<1x1x128xf32>
    %174 = vector.shape_cast %173 : vector<1x1x128xf32> to vector<1x128xf32>
    %175 = vector.broadcast %174 : vector<1x128xf32> to vector<16x128xf32>
    %176 = arith.mulf %172, %175 : vector<16x128xf32>
    %c0_76 = arith.constant 0 : index
    %c0_77 = arith.constant 0 : index
    %c0_78 = arith.constant 0 : index
    %177 = vector.load %arg16[%c0_76, %c0_77, %c0_78] : memref<2x1x128xf32, #tpu.memory_space<vmem>>, vector<1x1x128xf32>
    %178 = vector.shape_cast %177 : vector<1x1x128xf32> to vector<1x128xf32>
    %179 = vector.broadcast %178 : vector<1x128xf32> to vector<16x128xf32>
    %180 = arith.addf %176, %179 : vector<16x128xf32>
    %181 = arith.truncf %180 : vector<16x128xf32> to vector<16x128xbf16>
    %c1 = arith.constant 1 : index
    %c0_79 = arith.constant 0 : index
    %c0_80 = arith.constant 0 : index
    %182 = vector.load %arg5[%c1, %c0_79, %c0_80] : memref<2x128x384xbf16, #tpu.memory_space<vmem>>, vector<1x128x384xbf16>
    %183 = vector.shape_cast %182 : vector<1x128x384xbf16> to vector<128x384xbf16>
    %cst_81 = arith.constant dense<0.000000e+00> : vector<16x384xf32>
    %184 = tpu.matmul %181, %183, %cst_81 {dimension_numbers = #tpu.dot_dimension_numbers<[1], [0], [0], [1], [0, 0, 1, 1], [], []>} : vector<16x128xbf16>, vector<128x384xbf16>, vector<16x384xf32> -> vector<16x384xf32>
    %c1_82 = arith.constant 1 : index
    %c0_83 = arith.constant 0 : index
    %c0_84 = arith.constant 0 : index
    %185 = vector.load %arg6[%c1_82, %c0_83, %c0_84] : memref<2x1x384xf32, #tpu.memory_space<vmem>>, vector<1x1x384xf32>
    %186 = vector.shape_cast %185 : vector<1x1x384xf32> to vector<1x384xf32>
    %187 = vector.broadcast %186 : vector<1x384xf32> to vector<16x384xf32>
    %188 = arith.addf %184, %187 : vector<16x384xf32>
    %189 = vector.extract_strided_slice %188 {offsets = [0, 0], sizes = [16, 128], strides = [1, 1]} : vector<16x384xf32> to vector<16x128xf32>
    %190 = arith.truncf %189 : vector<16x128xf32> to vector<16x128xbf16>
    %191 = vector.shape_cast %190 : vector<16x128xbf16> to vector<2x8x128xbf16>
    %192 = vector.extract_strided_slice %188 {offsets = [0, 128], sizes = [16, 128], strides = [1, 1]} : vector<16x384xf32> to vector<16x128xf32>
    %193 = arith.truncf %192 : vector<16x128xf32> to vector<16x128xbf16>
    %194 = vector.shape_cast %193 : vector<16x128xbf16> to vector<2x8x128xbf16>
    %195 = vector.extract_strided_slice %188 {offsets = [0, 256], sizes = [16, 128], strides = [1, 1]} : vector<16x384xf32> to vector<16x128xf32>
    %196 = arith.truncf %195 : vector<16x128xf32> to vector<16x128xbf16>
    %197 = vector.shape_cast %196 : vector<16x128xbf16> to vector<2x8x128xbf16>
    %198 = vector.extract_strided_slice %191 {offsets = [0, 0, 0], sizes = [2, 8, 32], strides = [1, 1, 1]} : vector<2x8x128xbf16> to vector<2x8x32xbf16>
    %199 = vector.extract_strided_slice %194 {offsets = [0, 0, 0], sizes = [2, 8, 32], strides = [1, 1, 1]} : vector<2x8x128xbf16> to vector<2x8x32xbf16>
    "tpu.trace_start"() <{level = 10 : i32, message = "bqd,bkd->bqk"}> : () -> ()
    %cst_85 = arith.constant dense<0.000000e+00> : vector<2x8x8xf32>
    %200 = tpu.matmul %198, %199, %cst_85 {dimension_numbers = #tpu.dot_dimension_numbers<[2], [2], [1], [1], [0, 0, 0, 1, 1, 1], [0], [0]>} : vector<2x8x32xbf16>, vector<2x8x32xbf16>, vector<2x8x8xf32> -> vector<2x8x8xf32>
    "tpu.trace_stop"() : () -> ()
    %cst_86 = arith.constant 0.176776692 : f32
    %201 = vector.broadcast %cst_86 : f32 to vector<2x8x8xf32>
    %202 = arith.mulf %200, %201 : vector<2x8x8xf32>
    %cst_87 = arith.constant dense<0xFF800000> : vector<2x8xf32>
    %203 = vector.multi_reduction <maximumf>, %202, %cst_87 [2] : vector<2x8x8xf32> to vector<2x8xf32>
    %204 = vector.shape_cast %203 : vector<2x8xf32> to vector<2x8x1xf32>
    %205 = vector.broadcast %204 : vector<2x8x1xf32> to vector<2x8x8xf32>
    %206 = arith.subf %202, %205 : vector<2x8x8xf32>
    %207 = math.exp %206 : vector<2x8x8xf32>
    %cst_88 = arith.constant dense<0.000000e+00> : vector<2x8xf32>
    %208 = vector.multi_reduction <add>, %207, %cst_88 [2] : vector<2x8x8xf32> to vector<2x8xf32>
    %209 = vector.shape_cast %208 : vector<2x8xf32> to vector<2x8x1xf32>
    %210 = vector.broadcast %209 : vector<2x8x1xf32> to vector<2x8x8xf32>
    %211 = arith.divf %207, %210 : vector<2x8x8xf32>
    %212 = arith.truncf %211 : vector<2x8x8xf32> to vector<2x8x8xbf16>
    %213 = vector.extract_strided_slice %197 {offsets = [0, 0, 0], sizes = [2, 8, 32], strides = [1, 1, 1]} : vector<2x8x128xbf16> to vector<2x8x32xbf16>
    "tpu.trace_start"() <{level = 10 : i32, message = "bqk,bkd->bqd"}> : () -> ()
    %cst_89 = arith.constant dense<0.000000e+00> : vector<2x8x32xf32>
    %214 = tpu.matmul %212, %213, %cst_89 {dimension_numbers = #tpu.dot_dimension_numbers<[2], [1], [1], [2], [0, 0, 0, 1, 1, 2], [0], [0]>} : vector<2x8x8xbf16>, vector<2x8x32xbf16>, vector<2x8x32xf32> -> vector<2x8x32xf32>
    "tpu.trace_stop"() : () -> ()
    %215 = vector.extract_strided_slice %191 {offsets = [0, 0, 32], sizes = [2, 8, 32], strides = [1, 1, 1]} : vector<2x8x128xbf16> to vector<2x8x32xbf16>
    %216 = vector.extract_strided_slice %194 {offsets = [0, 0, 32], sizes = [2, 8, 32], strides = [1, 1, 1]} : vector<2x8x128xbf16> to vector<2x8x32xbf16>
    "tpu.trace_start"() <{level = 10 : i32, message = "bqd,bkd->bqk"}> : () -> ()
    %cst_90 = arith.constant dense<0.000000e+00> : vector<2x8x8xf32>
    %217 = tpu.matmul %215, %216, %cst_90 {dimension_numbers = #tpu.dot_dimension_numbers<[2], [2], [1], [1], [0, 0, 0, 1, 1, 1], [0], [0]>} : vector<2x8x32xbf16>, vector<2x8x32xbf16>, vector<2x8x8xf32> -> vector<2x8x8xf32>
    "tpu.trace_stop"() : () -> ()
    %cst_91 = arith.constant 0.176776692 : f32
    %218 = vector.broadcast %cst_91 : f32 to vector<2x8x8xf32>
    %219 = arith.mulf %217, %218 : vector<2x8x8xf32>
    %cst_92 = arith.constant dense<0xFF800000> : vector<2x8xf32>
    %220 = vector.multi_reduction <maximumf>, %219, %cst_92 [2] : vector<2x8x8xf32> to vector<2x8xf32>
    %221 = vector.shape_cast %220 : vector<2x8xf32> to vector<2x8x1xf32>
    %222 = vector.broadcast %221 : vector<2x8x1xf32> to vector<2x8x8xf32>
    %223 = arith.subf %219, %222 : vector<2x8x8xf32>
    %224 = math.exp %223 : vector<2x8x8xf32>
    %cst_93 = arith.constant dense<0.000000e+00> : vector<2x8xf32>
    %225 = vector.multi_reduction <add>, %224, %cst_93 [2] : vector<2x8x8xf32> to vector<2x8xf32>
    %226 = vector.shape_cast %225 : vector<2x8xf32> to vector<2x8x1xf32>
    %227 = vector.broadcast %226 : vector<2x8x1xf32> to vector<2x8x8xf32>
    %228 = arith.divf %224, %227 : vector<2x8x8xf32>
    %229 = arith.truncf %228 : vector<2x8x8xf32> to vector<2x8x8xbf16>
    %230 = vector.extract_strided_slice %197 {offsets = [0, 0, 32], sizes = [2, 8, 32], strides = [1, 1, 1]} : vector<2x8x128xbf16> to vector<2x8x32xbf16>
    "tpu.trace_start"() <{level = 10 : i32, message = "bqk,bkd->bqd"}> : () -> ()
    %cst_94 = arith.constant dense<0.000000e+00> : vector<2x8x32xf32>
    %231 = tpu.matmul %229, %230, %cst_94 {dimension_numbers = #tpu.dot_dimension_numbers<[2], [1], [1], [2], [0, 0, 0, 1, 1, 2], [0], [0]>} : vector<2x8x8xbf16>, vector<2x8x32xbf16>, vector<2x8x32xf32> -> vector<2x8x32xf32>
    "tpu.trace_stop"() : () -> ()
    %232 = vector.extract_strided_slice %191 {offsets = [0, 0, 64], sizes = [2, 8, 32], strides = [1, 1, 1]} : vector<2x8x128xbf16> to vector<2x8x32xbf16>
    %233 = vector.extract_strided_slice %194 {offsets = [0, 0, 64], sizes = [2, 8, 32], strides = [1, 1, 1]} : vector<2x8x128xbf16> to vector<2x8x32xbf16>
    "tpu.trace_start"() <{level = 10 : i32, message = "bqd,bkd->bqk"}> : () -> ()
    %cst_95 = arith.constant dense<0.000000e+00> : vector<2x8x8xf32>
    %234 = tpu.matmul %232, %233, %cst_95 {dimension_numbers = #tpu.dot_dimension_numbers<[2], [2], [1], [1], [0, 0, 0, 1, 1, 1], [0], [0]>} : vector<2x8x32xbf16>, vector<2x8x32xbf16>, vector<2x8x8xf32> -> vector<2x8x8xf32>
    "tpu.trace_stop"() : () -> ()
    %cst_96 = arith.constant 0.176776692 : f32
    %235 = vector.broadcast %cst_96 : f32 to vector<2x8x8xf32>
    %236 = arith.mulf %234, %235 : vector<2x8x8xf32>
    %cst_97 = arith.constant dense<0xFF800000> : vector<2x8xf32>
    %237 = vector.multi_reduction <maximumf>, %236, %cst_97 [2] : vector<2x8x8xf32> to vector<2x8xf32>
    %238 = vector.shape_cast %237 : vector<2x8xf32> to vector<2x8x1xf32>
    %239 = vector.broadcast %238 : vector<2x8x1xf32> to vector<2x8x8xf32>
    %240 = arith.subf %236, %239 : vector<2x8x8xf32>
    %241 = math.exp %240 : vector<2x8x8xf32>
    %cst_98 = arith.constant dense<0.000000e+00> : vector<2x8xf32>
    %242 = vector.multi_reduction <add>, %241, %cst_98 [2] : vector<2x8x8xf32> to vector<2x8xf32>
    %243 = vector.shape_cast %242 : vector<2x8xf32> to vector<2x8x1xf32>
    %244 = vector.broadcast %243 : vector<2x8x1xf32> to vector<2x8x8xf32>
    %245 = arith.divf %241, %244 : vector<2x8x8xf32>
    %246 = arith.truncf %245 : vector<2x8x8xf32> to vector<2x8x8xbf16>
    %247 = vector.extract_strided_slice %197 {offsets = [0, 0, 64], sizes = [2, 8, 32], strides = [1, 1, 1]} : vector<2x8x128xbf16> to vector<2x8x32xbf16>
    "tpu.trace_start"() <{level = 10 : i32, message = "bqk,bkd->bqd"}> : () -> ()
    %cst_99 = arith.constant dense<0.000000e+00> : vector<2x8x32xf32>
    %248 = tpu.matmul %246, %247, %cst_99 {dimension_numbers = #tpu.dot_dimension_numbers<[2], [1], [1], [2], [0, 0, 0, 1, 1, 2], [0], [0]>} : vector<2x8x8xbf16>, vector<2x8x32xbf16>, vector<2x8x32xf32> -> vector<2x8x32xf32>
    "tpu.trace_stop"() : () -> ()
    %249 = vector.extract_strided_slice %191 {offsets = [0, 0, 96], sizes = [2, 8, 32], strides = [1, 1, 1]} : vector<2x8x128xbf16> to vector<2x8x32xbf16>
    %250 = vector.extract_strided_slice %194 {offsets = [0, 0, 96], sizes = [2, 8, 32], strides = [1, 1, 1]} : vector<2x8x128xbf16> to vector<2x8x32xbf16>
    "tpu.trace_start"() <{level = 10 : i32, message = "bqd,bkd->bqk"}> : () -> ()
    %cst_100 = arith.constant dense<0.000000e+00> : vector<2x8x8xf32>
    %251 = tpu.matmul %249, %250, %cst_100 {dimension_numbers = #tpu.dot_dimension_numbers<[2], [2], [1], [1], [0, 0, 0, 1, 1, 1], [0], [0]>} : vector<2x8x32xbf16>, vector<2x8x32xbf16>, vector<2x8x8xf32> -> vector<2x8x8xf32>
    "tpu.trace_stop"() : () -> ()
    %cst_101 = arith.constant 0.176776692 : f32
    %252 = vector.broadcast %cst_101 : f32 to vector<2x8x8xf32>
    %253 = arith.mulf %251, %252 : vector<2x8x8xf32>
    %cst_102 = arith.constant dense<0xFF800000> : vector<2x8xf32>
    %254 = vector.multi_reduction <maximumf>, %253, %cst_102 [2] : vector<2x8x8xf32> to vector<2x8xf32>
    %255 = vector.shape_cast %254 : vector<2x8xf32> to vector<2x8x1xf32>
    %256 = vector.broadcast %255 : vector<2x8x1xf32> to vector<2x8x8xf32>
    %257 = arith.subf %253, %256 : vector<2x8x8xf32>
    %258 = math.exp %257 : vector<2x8x8xf32>
    %cst_103 = arith.constant dense<0.000000e+00> : vector<2x8xf32>
    %259 = vector.multi_reduction <add>, %258, %cst_103 [2] : vector<2x8x8xf32> to vector<2x8xf32>
    %260 = vector.shape_cast %259 : vector<2x8xf32> to vector<2x8x1xf32>
    %261 = vector.broadcast %260 : vector<2x8x1xf32> to vector<2x8x8xf32>
    %262 = arith.divf %258, %261 : vector<2x8x8xf32>
    %263 = arith.truncf %262 : vector<2x8x8xf32> to vector<2x8x8xbf16>
    %264 = vector.extract_strided_slice %197 {offsets = [0, 0, 96], sizes = [2, 8, 32], strides = [1, 1, 1]} : vector<2x8x128xbf16> to vector<2x8x32xbf16>
    "tpu.trace_start"() <{level = 10 : i32, message = "bqk,bkd->bqd"}> : () -> ()
    %cst_104 = arith.constant dense<0.000000e+00> : vector<2x8x32xf32>
    %265 = tpu.matmul %263, %264, %cst_104 {dimension_numbers = #tpu.dot_dimension_numbers<[2], [1], [1], [2], [0, 0, 0, 1, 1, 2], [0], [0]>} : vector<2x8x8xbf16>, vector<2x8x32xbf16>, vector<2x8x32xf32> -> vector<2x8x32xf32>
    "tpu.trace_stop"() : () -> ()
    %266 = tpu.concatenate %214, %231, %248, %265 in 2 : vector<2x8x32xf32>, vector<2x8x32xf32>, vector<2x8x32xf32>, vector<2x8x32xf32> -> vector<2x8x128xf32>
    %267 = vector.shape_cast %266 : vector<2x8x128xf32> to vector<16x128xf32>
    %268 = arith.truncf %267 : vector<16x128xf32> to vector<16x128xbf16>
    %c1_105 = arith.constant 1 : index
    %c0_106 = arith.constant 0 : index
    %c0_107 = arith.constant 0 : index
    %269 = vector.load %arg7[%c1_105, %c0_106, %c0_107] : memref<2x128x128xbf16, #tpu.memory_space<vmem>>, vector<1x128x128xbf16>
    %270 = vector.shape_cast %269 : vector<1x128x128xbf16> to vector<128x128xbf16>
    %cst_108 = arith.constant dense<0.000000e+00> : vector<16x128xf32>
    %271 = tpu.matmul %268, %270, %cst_108 {dimension_numbers = #tpu.dot_dimension_numbers<[1], [0], [0], [1], [0, 0, 1, 1], [], []>} : vector<16x128xbf16>, vector<128x128xbf16>, vector<16x128xf32> -> vector<16x128xf32>
    %c1_109 = arith.constant 1 : index
    %c0_110 = arith.constant 0 : index
    %c0_111 = arith.constant 0 : index
    %272 = vector.load %arg8[%c1_109, %c0_110, %c0_111] : memref<2x1x128xf32, #tpu.memory_space<vmem>>, vector<1x1x128xf32>
    %273 = vector.shape_cast %272 : vector<1x1x128xf32> to vector<1x128xf32>
    %274 = vector.broadcast %273 : vector<1x128xf32> to vector<16x128xf32>
    %275 = arith.addf %271, %274 : vector<16x128xf32>
    %276 = arith.addf %180, %275 : vector<16x128xf32>
    %cst_112 = arith.constant dense<0.000000e+00> : vector<16xf32>
    %277 = vector.multi_reduction <add>, %276, %cst_112 [1] : vector<16x128xf32> to vector<16xf32>
    %278 = vector.shape_cast %277 : vector<16xf32> to vector<16x1xf32>
    %cst_113 = arith.constant 1.280000e+02 : f32
    %279 = vector.broadcast %cst_113 : f32 to vector<16x1xf32>
    %280 = arith.divf %278, %279 : vector<16x1xf32>
    %281 = vector.broadcast %280 : vector<16x1xf32> to vector<16x128xf32>
    %282 = arith.subf %276, %281 : vector<16x128xf32>
    %283 = arith.mulf %282, %282 : vector<16x128xf32>
    %cst_114 = arith.constant dense<0.000000e+00> : vector<16xf32>
    %284 = vector.multi_reduction <add>, %283, %cst_114 [1] : vector<16x128xf32> to vector<16xf32>
    %285 = vector.shape_cast %284 : vector<16xf32> to vector<16x1xf32>
    %cst_115 = arith.constant 1.280000e+02 : f32
    %286 = vector.broadcast %cst_115 : f32 to vector<16x1xf32>
    %287 = arith.divf %285, %286 : vector<16x1xf32>
    %288 = vector.broadcast %280 : vector<16x1xf32> to vector<16x128xf32>
    %289 = arith.subf %276, %288 : vector<16x128xf32>
    %cst_116 = arith.constant 9.99999974E-6 : f32
    %290 = vector.broadcast %cst_116 : f32 to vector<16x1xf32>
    %291 = arith.addf %287, %290 : vector<16x1xf32>
    %292 = math.rsqrt %291 : vector<16x1xf32>
    %293 = vector.broadcast %292 : vector<16x1xf32> to vector<16x128xf32>
    %294 = arith.mulf %289, %293 : vector<16x128xf32>
    %c1_117 = arith.constant 1 : index
    %c0_118 = arith.constant 0 : index
    %c0_119 = arith.constant 0 : index
    %295 = vector.load %arg9[%c1_117, %c0_118, %c0_119] : memref<2x1x128xf32, #tpu.memory_space<vmem>>, vector<1x1x128xf32>
    %296 = vector.shape_cast %295 : vector<1x1x128xf32> to vector<1x128xf32>
    %297 = vector.broadcast %296 : vector<1x128xf32> to vector<16x128xf32>
    %298 = arith.mulf %294, %297 : vector<16x128xf32>
    %c1_120 = arith.constant 1 : index
    %c0_121 = arith.constant 0 : index
    %c0_122 = arith.constant 0 : index
    %299 = vector.load %arg10[%c1_120, %c0_121, %c0_122] : memref<2x1x128xf32, #tpu.memory_space<vmem>>, vector<1x1x128xf32>
    %300 = vector.shape_cast %299 : vector<1x1x128xf32> to vector<1x128xf32>
    %301 = vector.broadcast %300 : vector<1x128xf32> to vector<16x128xf32>
    %302 = arith.addf %298, %301 : vector<16x128xf32>
    %303 = arith.truncf %302 : vector<16x128xf32> to vector<16x128xbf16>
    %c1_123 = arith.constant 1 : index
    %c0_124 = arith.constant 0 : index
    %c0_125 = arith.constant 0 : index
    %304 = vector.load %arg11[%c1_123, %c0_124, %c0_125] : memref<2x128x256xbf16, #tpu.memory_space<vmem>>, vector<1x128x256xbf16>
    %305 = vector.shape_cast %304 : vector<1x128x256xbf16> to vector<128x256xbf16>
    %cst_126 = arith.constant dense<0.000000e+00> : vector<16x256xf32>
    %306 = tpu.matmul %303, %305, %cst_126 {dimension_numbers = #tpu.dot_dimension_numbers<[1], [0], [0], [1], [0, 0, 1, 1], [], []>} : vector<16x128xbf16>, vector<128x256xbf16>, vector<16x256xf32> -> vector<16x256xf32>
    %c1_127 = arith.constant 1 : index
    %c0_128 = arith.constant 0 : index
    %c0_129 = arith.constant 0 : index
    %307 = vector.load %arg12[%c1_127, %c0_128, %c0_129] : memref<2x1x256xf32, #tpu.memory_space<vmem>>, vector<1x1x256xf32>
    %308 = vector.shape_cast %307 : vector<1x1x256xf32> to vector<1x256xf32>
    %309 = vector.broadcast %308 : vector<1x256xf32> to vector<16x256xf32>
    %310 = arith.addf %306, %309 : vector<16x256xf32>
    %cst_130 = arith.constant 0.000000e+00 : f32
    %311 = vector.broadcast %cst_130 : f32 to vector<16x256xf32>
    %312 = arith.maximumf %310, %311 : vector<16x256xf32>
    %313 = arith.truncf %312 : vector<16x256xf32> to vector<16x256xbf16>
    %c1_131 = arith.constant 1 : index
    %c0_132 = arith.constant 0 : index
    %c0_133 = arith.constant 0 : index
    %314 = vector.load %arg13[%c1_131, %c0_132, %c0_133] : memref<2x256x128xbf16, #tpu.memory_space<vmem>>, vector<1x256x128xbf16>
    %315 = vector.shape_cast %314 : vector<1x256x128xbf16> to vector<256x128xbf16>
    %cst_134 = arith.constant dense<0.000000e+00> : vector<16x128xf32>
    %316 = tpu.matmul %313, %315, %cst_134 {dimension_numbers = #tpu.dot_dimension_numbers<[1], [0], [0], [1], [0, 0, 1, 1], [], []>} : vector<16x256xbf16>, vector<256x128xbf16>, vector<16x128xf32> -> vector<16x128xf32>
    %c1_135 = arith.constant 1 : index
    %c0_136 = arith.constant 0 : index
    %c0_137 = arith.constant 0 : index
    %317 = vector.load %arg14[%c1_135, %c0_136, %c0_137] : memref<2x1x128xf32, #tpu.memory_space<vmem>>, vector<1x1x128xf32>
    %318 = vector.shape_cast %317 : vector<1x1x128xf32> to vector<1x128xf32>
    %319 = vector.broadcast %318 : vector<1x128xf32> to vector<16x128xf32>
    %320 = arith.addf %316, %319 : vector<16x128xf32>
    %321 = arith.addf %302, %320 : vector<16x128xf32>
    %cst_138 = arith.constant dense<0.000000e+00> : vector<16xf32>
    %322 = vector.multi_reduction <add>, %321, %cst_138 [1] : vector<16x128xf32> to vector<16xf32>
    %323 = vector.shape_cast %322 : vector<16xf32> to vector<16x1xf32>
    %cst_139 = arith.constant 1.280000e+02 : f32
    %324 = vector.broadcast %cst_139 : f32 to vector<16x1xf32>
    %325 = arith.divf %323, %324 : vector<16x1xf32>
    %326 = vector.broadcast %325 : vector<16x1xf32> to vector<16x128xf32>
    %327 = arith.subf %321, %326 : vector<16x128xf32>
    %328 = arith.mulf %327, %327 : vector<16x128xf32>
    %cst_140 = arith.constant dense<0.000000e+00> : vector<16xf32>
    %329 = vector.multi_reduction <add>, %328, %cst_140 [1] : vector<16x128xf32> to vector<16xf32>
    %330 = vector.shape_cast %329 : vector<16xf32> to vector<16x1xf32>
    %cst_141 = arith.constant 1.280000e+02 : f32
    %331 = vector.broadcast %cst_141 : f32 to vector<16x1xf32>
    %332 = arith.divf %330, %331 : vector<16x1xf32>
    %333 = vector.broadcast %325 : vector<16x1xf32> to vector<16x128xf32>
    %334 = arith.subf %321, %333 : vector<16x128xf32>
    %cst_142 = arith.constant 9.99999974E-6 : f32
    %335 = vector.broadcast %cst_142 : f32 to vector<16x1xf32>
    %336 = arith.addf %332, %335 : vector<16x1xf32>
    %337 = math.rsqrt %336 : vector<16x1xf32>
    %338 = vector.broadcast %337 : vector<16x1xf32> to vector<16x128xf32>
    %339 = arith.mulf %334, %338 : vector<16x128xf32>
    %c1_143 = arith.constant 1 : index
    %c0_144 = arith.constant 0 : index
    %c0_145 = arith.constant 0 : index
    %340 = vector.load %arg15[%c1_143, %c0_144, %c0_145] : memref<2x1x128xf32, #tpu.memory_space<vmem>>, vector<1x1x128xf32>
    %341 = vector.shape_cast %340 : vector<1x1x128xf32> to vector<1x128xf32>
    %342 = vector.broadcast %341 : vector<1x128xf32> to vector<16x128xf32>
    %343 = arith.mulf %339, %342 : vector<16x128xf32>
    %c1_146 = arith.constant 1 : index
    %c0_147 = arith.constant 0 : index
    %c0_148 = arith.constant 0 : index
    %344 = vector.load %arg16[%c1_146, %c0_147, %c0_148] : memref<2x1x128xf32, #tpu.memory_space<vmem>>, vector<1x1x128xf32>
    %345 = vector.shape_cast %344 : vector<1x1x128xf32> to vector<1x128xf32>
    %346 = vector.broadcast %345 : vector<1x128xf32> to vector<16x128xf32>
    %347 = arith.addf %343, %346 : vector<16x128xf32>
    %348 = arith.truncf %347 : vector<16x128xf32> to vector<16x128xbf16>
    %c0_149 = arith.constant 0 : index
    %c0_150 = arith.constant 0 : index
    %349 = vector.load %arg17[%c0_149, %c0_150] : memref<128x128xbf16, #tpu.memory_space<vmem>>, vector<128x128xbf16>
    %cst_151 = arith.constant dense<0.000000e+00> : vector<16x128xf32>
    %350 = tpu.matmul %348, %349, %cst_151 {dimension_numbers = #tpu.dot_dimension_numbers<[1], [0], [0], [1], [0, 0, 1, 1], [], []>} : vector<16x128xbf16>, vector<128x128xbf16>, vector<16x128xf32> -> vector<16x128xf32>
    %c0_152 = arith.constant 0 : index
    %c0_153 = arith.constant 0 : index
    %351 = vector.load %arg18[%c0_152, %c0_153] : memref<1x128xf32, #tpu.memory_space<vmem>>, vector<1x128xf32>
    %352 = vector.broadcast %351 : vector<1x128xf32> to vector<16x128xf32>
    %353 = arith.addf %350, %352 : vector<16x128xf32>
    %354 = vector.shape_cast %353 : vector<16x128xf32> to vector<2x8x128xf32>
    %c0_154 = arith.constant 0 : index
    %c0_155 = arith.constant 0 : index
    %c0_156 = arith.constant 0 : index
    %355 = vector.load %arg19[%c0_154, %c0_155, %c0_156] : memref<2x8x128xf32, #tpu.memory_space<vmem>>, vector<2x8x128xf32>
    tpu.vector_store %arg19[%c0_154, %c0_155, %c0_156], %354 {strides = array<i32>} : memref<2x8x128xf32, #tpu.memory_space<vmem>>, vector<2x8x128xf32>,
    return
  }
  func.func @transform_0(%arg0: i32) -> (i32, i32, i32) {
    %c0_i32 = arith.constant 0 : i32
    %c0_i32_0 = arith.constant 0 : i32
    %c0_i32_1 = arith.constant 0 : i32
    return %arg0, %c0_i32, %c0_i32_0 : i32, i32, i32
  }
  func.func @transform_1(%arg0: i32) -> (i32, i32) {
    %c0_i32 = arith.constant 0 : i32
    %c0_i32_0 = arith.constant 0 : i32
    %c0_i32_1 = arith.constant 0 : i32
    return %c0_i32, %c0_i32_0 : i32, i32
  }
  func.func @transform_2(%arg0: i32) -> (i32, i32) {
    %c0_i32 = arith.constant 0 : i32
    %c0_i32_0 = arith.constant 0 : i32
    %c0_i32_1 = arith.constant 0 : i32
    return %c0_i32, %c0_i32_0 : i32, i32
  }
  func.func @transform_3(%arg0: i32) -> (i32, i32) {
    %c0_i32 = arith.constant 0 : i32
    %c0_i32_0 = arith.constant 0 : i32
    %c0_i32_1 = arith.constant 0 : i32
    return %c0_i32, %c0_i32_0 : i32, i32
  }
  func.func @transform_4(%arg0: i32) -> (i32, i32, i32) {
    %c0_i32 = arith.constant 0 : i32
    %c0_i32_0 = arith.constant 0 : i32
    %c0_i32_1 = arith.constant 0 : i32
    %c0_i32_2 = arith.constant 0 : i32
    return %c0_i32, %c0_i32_0, %c0_i32_1 : i32, i32, i32
  }
  func.func @transform_5(%arg0: i32) -> (i32, i32, i32) {
    %c0_i32 = arith.constant 0 : i32
    %c0_i32_0 = arith.constant 0 : i32
    %c0_i32_1 = arith.constant 0 : i32
    %c0_i32_2 = arith.constant 0 : i32
    return %c0_i32, %c0_i32_0, %c0_i32_1 : i32, i32, i32
  }
  func.func @transform_6(%arg0: i32) -> (i32, i32, i32) {
    %c0_i32 = arith.constant 0 : i32
    %c0_i32_0 = arith.constant 0 : i32
    %c0_i32_1 = arith.constant 0 : i32
    %c0_i32_2 = arith.constant 0 : i32
    return %c0_i32, %c0_i32_0, %c0_i32_1 : i32, i32, i32
  }
  func.func @transform_7(%arg0: i32) -> (i32, i32, i32) {
    %c0_i32 = arith.constant 0 : i32
    %c0_i32_0 = arith.constant 0 : i32
    %c0_i32_1 = arith.constant 0 : i32
    %c0_i32_2 = arith.constant 0 : i32
    return %c0_i32, %c0_i32_0, %c0_i32_1 : i32, i32, i32
  }
  func.func @transform_8(%arg0: i32) -> (i32, i32, i32) {
    %c0_i32 = arith.constant 0 : i32
    %c0_i32_0 = arith.constant 0 : i32
    %c0_i32_1 = arith.constant 0 : i32
    %c0_i32_2 = arith.constant 0 : i32
    return %c0_i32, %c0_i32_0, %c0_i32_1 : i32, i32, i32
  }
  func.func @transform_9(%arg0: i32) -> (i32, i32, i32) {
    %c0_i32 = arith.constant 0 : i32
    %c0_i32_0 = arith.constant 0 : i32
    %c0_i32_1 = arith.constant 0 : i32
    %c0_i32_2 = arith.constant 0 : i32
    return %c0_i32, %c0_i32_0, %c0_i32_1 : i32, i32, i32
  }
  func.func @transform_10(%arg0: i32) -> (i32, i32, i32) {
    %c0_i32 = arith.constant 0 : i32
    %c0_i32_0 = arith.constant 0 : i32
    %c0_i32_1 = arith.constant 0 : i32
    %c0_i32_2 = arith.constant 0 : i32
    return %c0_i32, %c0_i32_0, %c0_i32_1 : i32, i32, i32
  }
  func.func @transform_11(%arg0: i32) -> (i32, i32, i32) {
    %c0_i32 = arith.constant 0 : i32
    %c0_i32_0 = arith.constant 0 : i32
    %c0_i32_1 = arith.constant 0 : i32
    %c0_i32_2 = arith.constant 0 : i32
    return %c0_i32, %c0_i32_0, %c0_i32_1 : i32, i32, i32
  }
  func.func @transform_12(%arg0: i32) -> (i32, i32, i32) {
    %c0_i32 = arith.constant 0 : i32
    %c0_i32_0 = arith.constant 0 : i32
    %c0_i32_1 = arith.constant 0 : i32
    %c0_i32_2 = arith.constant 0 : i32
    return %c0_i32, %c0_i32_0, %c0_i32_1 : i32, i32, i32
  }
  func.func @transform_13(%arg0: i32) -> (i32, i32, i32) {
    %c0_i32 = arith.constant 0 : i32
    %c0_i32_0 = arith.constant 0 : i32
    %c0_i32_1 = arith.constant 0 : i32
    %c0_i32_2 = arith.constant 0 : i32
    return %c0_i32, %c0_i32_0, %c0_i32_1 : i32, i32, i32
  }
  func.func @transform_14(%arg0: i32) -> (i32, i32, i32) {
    %c0_i32 = arith.constant 0 : i32
    %c0_i32_0 = arith.constant 0 : i32
    %c0_i32_1 = arith.constant 0 : i32
    %c0_i32_2 = arith.constant 0 : i32
    return %c0_i32, %c0_i32_0, %c0_i32_1 : i32, i32, i32
  }
  func.func @transform_15(%arg0: i32) -> (i32, i32, i32) {
    %c0_i32 = arith.constant 0 : i32
    %c0_i32_0 = arith.constant 0 : i32
    %c0_i32_1 = arith.constant 0 : i32
    %c0_i32_2 = arith.constant 0 : i32
    return %c0_i32, %c0_i32_0, %c0_i32_1 : i32, i32, i32
  }
  func.func @transform_16(%arg0: i32) -> (i32, i32) {
    %c0_i32 = arith.constant 0 : i32
    %c0_i32_0 = arith.constant 0 : i32
    %c0_i32_1 = arith.constant 0 : i32
    return %c0_i32, %c0_i32_0 : i32, i32
  }
  func.func @transform_17(%arg0: i32) -> (i32, i32) {
    %c0_i32 = arith.constant 0 : i32
    %c0_i32_0 = arith.constant 0 : i32
    %c0_i32_1 = arith.constant 0 : i32
    return %c0_i32, %c0_i32_0 : i32, i32
  }
  func.func @transform_18(%arg0: i32) -> (i32, i32, i32) {
    %c0_i32 = arith.constant 0 : i32
    %c0_i32_0 = arith.constant 0 : i32
    %c0_i32_1 = arith.constant 0 : i32
    return %arg0, %c0_i32, %c0_i32_0 : i32, i32, i32
  }
}

</mosaic_0001>

<bundles_post_ra>
// kernel: tpu_custom_call.1
= control target key start
LH: loop header
LB: loop body
LE: loop exit
PB: predicated region body
PF: predicated region fallthrough
CT: control target
= control target key end

     0   :  { %s5907_s0 = inlined_call_operand.hbm [shape: f32[2,8,128], index: 0, kind: input, shape index: {}]   ;;  %s5908_s1 = inlined_call_operand.hbm [shape: f32[8,128], index: 1, kind: input, shape index: {}]   ;;  %s5909_s2 = inlined_call_operand.hbm [shape: bf16[128,128], index: 2, kind: input, shape index: {}]   ;;  %s5910_s3 = inlined_call_operand.hbm [shape: f32[1,128], index: 3, kind: input, shape index: {}]   ;;  %s5911_s4 = inlined_call_operand.hbm [shape: bf16[2,128,384], index: 4, kind: input, shape index: {}]   ;;  %s5912_s5 = inlined_call_operand.vmem [shape: f32[2,1,384], index: 5, kind: input, shape index: {}]   ;;  %s5913_s6 = inlined_call_operand.hbm [shape: bf16[2,128,128], index: 6, kind: input, shape index: {}]   ;;  %s5914_s7 = inlined_call_operand.vmem [shape: f32[2,1,128], index: 7, kind: input, shape index: {}]   ;;  %s5915_s8 = inlined_call_operand.vmem [shape: f32[2,1,128], index: 8, kind: input, shape index: {}]   ;;  %s5916_s9 = inlined_call_operand.vmem [shape: f32[2,1,128], index: 9, kind: input, shape index: {}]   ;;  %s5917_s10 = inlined_call_operand.hbm [shape: bf16[2,128,256], index: 10, kind: input, shape index: {}]   ;;  %s5918_s11 = inlined_call_operand.vmem [shape: f32[2,1,256], index: 11, kind: input, shape index: {}]   ;;  %s5919_s12 = inlined_call_operand.hbm [shape: bf16[2,256,128], index: 12, kind: input, shape index: {}]   ;;  %s5920_s13 = inlined_call_operand.vmem [shape: f32[2,1,128], index: 13, kind: input, shape index: {}]   ;;  %s5921_s14 = inlined_call_operand.vmem [shape: f32[2,1,128], index: 14, kind: input, shape index: {}]   ;;  %s5922_s15 = inlined_call_operand.vmem [shape: f32[2,1,128], index: 15, kind: input, shape index: {}]   ;;  %s5923_s16 = inlined_call_operand.hbm [shape: bf16[128,128], index: 16, kind: input, shape index: {}]   ;;  %s5924_s17 = inlined_call_operand.vmem [shape: f32[1,128], index: 17, kind: input, shape index: {}]   ;;  %s5925_s18 = inlined_call_operand.hbm [shape: f32[2,8,128], index: 18, kind: output, shape index: {}]  }
   0x1   :  { %5937 = sst [smem:[#allocation24_spill]] %s5907_s0 }
   0x2   :  { %5938 = sst [smem:[#allocation25_spill]] %s5908_s1 }
   0x3   :  { %5939 = sst [smem:[#allocation26_spill]] %s5909_s2 }
   0x4   :  { %23 = vsyncpa [#allocation3], 0 }
   0x5   :  { %24 = vsyncpa [#allocation6], 0 }
   0x6   :  { %25 = vsyncpa [#allocation9], 0 }
   0x7   :  { %26 = vsyncpa [#allocation12], 0 }
   0x8   :  { %27 = vsyncpa [#allocation15], 0 }
   0x9   :  { %28 = vsyncpa [#allocation4], 0  ;;  %s5120_s27 = smov [#allocation5]   ;;  %s5121_s29 = smov [#allocation8]  }
   0xa   :  { %s47_s28 = sshll.u32 %s5120_s27, 4  ;;  %s69_s30 = sshll.u32 %s5121_s29, 4  ;;  %s48_s28 = int_to_ptr.vmem [resolvable:$true] %s47_s28  ;;  %s70_s30 = int_to_ptr.vmem [resolvable:$true] %s69_s30 }
   0xb   :  { %s5940_s1 = sld [smem:[#allocation25_spill]] }
  0x11   :  { %s4888_s20 = scalar_lea.hbm %s5940_s1, 128 }
  0x12   :  { %p4889_p0 = scmp.ne.s32.totalorder %s5940_s1, %s4888_s20  ;;  %p4892_p1 = scmp.lt.u32.totalorder %s4888_s20, %s5940_s1 }
  0x14   :  { %p4894_p2 = pnand %p4892_p1, %p4889_p0 }
  0x16   :  { %4897 = shalt.err (!%p4894_p2)
}
  0x17   :  { %s4898_s24 = scalar_lea.vmem %s48_s28, 128  ;;  %p4903_p4 = scmp.lt.s32.totalorder %s48_s28, %s48_s28 }
  0x18   :  { %p4899_p3 = scmp.ne.s32.totalorder %s48_s28, %s4898_s24  ;;  %p4904_p5 = scmp.lt.s32.totalorder %s4898_s24, %s4898_s24 }
  0x1a   :  { %p4905_p6 = por %p4904_p5, %p4903_p4 }
  0x1c   :  { %p4906_p7 = pnand %p4905_p6, %p4899_p3 }
  0x1e   :  { %4909 = shalt.err (!%p4906_p7)
}
  0x1f   :  { %50 = dma.hbm_to_vmem [thread:$0]  %s5940_s1, 128, %s48_s28, [#allocation6]  }
  0x20   :  { %s4910_s0 = scalar_lea.hbm %s5910_s3, 16 }
  0x21   :  { %p4911_p8 = scmp.ne.s32.totalorder %s5910_s3, %s4910_s0  ;;  %p4914_p9 = scmp.lt.u32.totalorder %s4910_s0, %s5910_s3 }
  0x23   :  { %p4916_p10 = pnand %p4914_p9, %p4911_p8 }
  0x25   :  { %4919 = shalt.err (!%p4916_p10)
}
  0x26   :  { %s4920_s2 = scalar_lea.vmem %s70_s30, 16  ;;  %s4924_s23 = scalar_lea.vmem %s70_s30, 32 }
  0x27   :  { %p4921_p11 = scmp.ne.s32.totalorder %s70_s30, %s4920_s2  ;;  %p4925_p12 = scmp.lt.s32.totalorder %s70_s30, %s70_s30 }
  0x28   :  { %p4926_p13 = scmp.lt.s32.totalorder %s4924_s23, %s4920_s2 }
  0x2a   :  { %p4927_p0 = por %p4926_p13, %p4925_p12 }
  0x2c   :  { %p4928_p1 = pnand %p4927_p0, %p4921_p11 }
  0x2e   :  { %4931 = shalt.err (!%p4928_p1)
}
  0x2f   :  { %72 = dma.hbm_to_vmem [thread:$0]  %s5910_s3, 16, %s70_s30, [#allocation9]  }
  0x30   :  { %s5122_s24 = smov [#allocation11]   ;;  %s5123_s26 = smov [#allocation14]  }
  0x31   :  { %s92_s25 = sshll.u32 %s5122_s24, 4  ;;  %s124_s27 = sshll.u32 %s5123_s26, 4  ;;  %s93_s25 = int_to_ptr.vmem [resolvable:$true] %s92_s25  ;;  %s5260_s27 = int_to_ptr.vmem [resolvable:$true] %s124_s27 }
  0x32   :  { %s4932_s19 = scalar_lea.hbm %s5913_s6, 2048 }
  0x33   :  { %p4933_p2 = scmp.ne.s32.totalorder %s5913_s6, %s4932_s19  ;;  %p4936_p3 = scmp.lt.u32.totalorder %s4932_s19, %s5913_s6 }
  0x35   :  { %p4938_p4 = pnand %p4936_p3, %p4933_p2 }
  0x37   :  { %4941 = shalt.err (!%p4938_p4)
}
  0x38   :  { %s4942_s3 = scalar_lea.vmem %s93_s25, 2048  ;;  %p4947_p6 = scmp.lt.s32.totalorder %s93_s25, %s93_s25 }
  0x39   :  { %p4943_p5 = scmp.ne.s32.totalorder %s93_s25, %s4942_s3  ;;  %p4948_p7 = scmp.lt.s32.totalorder %s4942_s3, %s4942_s3 }
  0x3b   :  { %p4949_p8 = por %p4948_p7, %p4947_p6 }
  0x3d   :  { %p4950_p9 = pnand %p4949_p8, %p4943_p5 }
  0x3f   :  { %4953 = shalt.err (!%p4950_p9)
}
  0x40   :  { %s5929_s30 = smov 64   ;;  %s5931_s23 = smov 4  }
  0x41   :  { %98 = dma.hbm_to_vmem [thread:$0]  %s5913_s6, 2048, %s93_s25, [#allocation12], %s5929_s30, %s5929_s30, %s5931_s23  }
  0x42   :  { %s4954_s29 = scalar_lea.hbm %s5919_s12, 4096 }
  0x43   :  { %p4955_p10 = scmp.ne.s32.totalorder %s5919_s12, %s4954_s29  ;;  %p4958_p11 = scmp.lt.u32.totalorder %s4954_s29, %s5919_s12 }
  0x45   :  { %p4960_p12 = pnand %p4958_p11, %p4955_p10 }
  0x47   :  { %4963 = shalt.err (!%p4960_p12)
}
  0x48   :  { %s4964_s22 = scalar_lea.vmem %s5260_s27, 4096  ;;  %p4969_p0 = scmp.lt.s32.totalorder %s5260_s27, %s5260_s27 }
  0x49   :  { %p4965_p13 = scmp.ne.s32.totalorder %s5260_s27, %s4964_s22  ;;  %p4970_p1 = scmp.lt.s32.totalorder %s4964_s22, %s4964_s22 }
  0x4b   :  { %p4971_p2 = por %p4970_p1, %p4969_p0 }
  0x4d   :  { %p4972_p3 = pnand %p4971_p2, %p4965_p13 }
  0x4f   :  { %4975 = shalt.err (!%p4972_p3)
}
  0x50   :  { %130 = dma.hbm_to_vmem [thread:$0]  %s5919_s12, 4096, %s5260_s27, [#allocation15], %s5929_s30, %s5929_s30, %s5931_s23  }
  0x51   :  { %s5126_s2 = smov [#allocation2]   ;;  %s5941_s24 = sld [smem:[#allocation24_spill]] }
  0x52   :  { %s34_s3 = sshll.u32 %s5126_s2, 4  ;;  %s35_s3 = int_to_ptr.vmem [resolvable:$true] %s34_s3 }
  0x57   :  { %s4976_s26 = scalar_lea.hbm %s5941_s24, 256 }
  0x58   :  { %p4977_p4 = scmp.ne.s32.totalorder %s5941_s24, %s4976_s26  ;;  %p4980_p5 = scmp.lt.u32.totalorder %s4976_s26, %s5941_s24 }
  0x5a   :  { %p4982_p6 = pnand %p4980_p5, %p4977_p4 }
  0x5c   :  { %4985 = shalt.err (!%p4982_p6)
}
  0x5d   :  { %s4986_s20 = scalar_lea.vmem %s35_s3, 256  ;;  %p4991_p8 = scmp.lt.s32.totalorder %s35_s3, %s35_s3 }
  0x5e   :  { %p4987_p7 = scmp.ne.s32.totalorder %s35_s3, %s4986_s20  ;;  %p4992_p9 = scmp.lt.s32.totalorder %s4986_s20, %s4986_s20 }
  0x60   :  { %p4993_p10 = por %p4992_p9, %p4991_p8 }
  0x62   :  { %p4994_p11 = pnand %p4993_p10, %p4987_p7 }
  0x64   :  { %4997 = shalt.err (!%p4994_p11)
}
  0x65   :  { %s5933_s12 = smov 128   ;;  %s5935_s27 = smov 8  }
  0x66   :  { %40 = dma.hbm_to_vmem [thread:$0]  %s5941_s24, 256, %s35_s3, [#allocation3], %s5933_s12, %s5933_s12, %s5935_s27  }
  0x67   :  { %s5129_s25 = smov [#allocation7]   ;;  %s5130_s28 = smov [#allocation10]  }
  0x68   :  { %s56_s2 = sshll.u32 %s5129_s25, 4  ;;  %s78_s1 = sshll.u32 %s5130_s28, 4  ;;  %s57_s2 = int_to_ptr.vmem [resolvable:$true] %s56_s2  ;;  %s79_s1 = int_to_ptr.vmem [resolvable:$true] %s78_s1 }
  0x69   :  { %s5942_s0 = sld [smem:[#allocation26_spill]] }
  0x6f   :  { %s4998_s19 = scalar_lea.hbm %s5942_s0, 1024 }
  0x70   :  { %p4999_p12 = scmp.ne.s32.totalorder %s5942_s0, %s4998_s19  ;;  %p5002_p13 = scmp.lt.u32.totalorder %s4998_s19, %s5942_s0 }
  0x72   :  { %p5004_p0 = pnand %p5002_p13, %p4999_p12 }
  0x74   :  { %5007 = shalt.err (!%p5004_p0)
}
  0x75   :  { %s5008_s3 = scalar_lea.vmem %s57_s2, 1024  ;;  %p5013_p2 = scmp.lt.s32.totalorder %s57_s2, %s57_s2 }
  0x76   :  { %p5009_p1 = scmp.ne.s32.totalorder %s57_s2, %s5008_s3  ;;  %p5014_p3 = scmp.lt.s32.totalorder %s5008_s3, %s5008_s3 }
  0x78   :  { %p5015_p4 = por %p5014_p3, %p5013_p2 }
  0x7a   :  { %p5016_p5 = pnand %p5015_p4, %p5009_p1 }
  0x7c   :  { %5019 = shalt.err (!%p5016_p5)
}
  0x7d   :  { %s5943_s24 = smov 4   ;;  %s5944_s22 = smov 64  }
  0x7e   :  { %62 = dma.hbm_to_vmem [thread:$0]  %s5942_s0, 1024, %s57_s2, [#allocation6], %s5944_s22, %s5944_s22, %s5943_s24  }
  0x7f   :  { %s5020_s23 = scalar_lea.hbm %s5911_s4, 6144 }
  0x80   :  { %p5021_p6 = scmp.ne.s32.totalorder %s5911_s4, %s5020_s23  ;;  %p5024_p7 = scmp.lt.u32.totalorder %s5020_s23, %s5911_s4 }
  0x82   :  { %p5026_p8 = pnand %p5024_p7, %p5021_p6 }
  0x84   :  { %5029 = shalt.err (!%p5026_p8)
}
  0x85   :  { %s5030_s20 = scalar_lea.vmem %s79_s1, 6144  ;;  %p5035_p10 = scmp.lt.s32.totalorder %s79_s1, %s79_s1 }
  0x86   :  { %p5031_p9 = scmp.ne.s32.totalorder %s79_s1, %s5030_s20  ;;  %p5036_p11 = scmp.lt.s32.totalorder %s5030_s20, %s5030_s20 }
  0x88   :  { %p5037_p12 = por %p5036_p11, %p5035_p10 }
  0x8a   :  { %p5038_p13 = pnand %p5037_p12, %p5031_p9 }
  0x8c   :  { %5041 = shalt.err (!%p5038_p13)
}
  0x8d   :  { %s5131_s2 = smov 192   ;;  %s5132_s0 = smov 12  }
  0x8e   :  { %84 = dma.hbm_to_vmem [thread:$0]  %s5911_s4, 6144, %s79_s1, [#allocation9], %s5131_s2, %s5131_s2, %s5132_s0  }
  0x8f   :  { %s5133_s25 = smov [#allocation13]   ;;  %s5134_s30 = smov [#allocation16]  }
  0x90   :  { %s110_s28 = sshll.u32 %s5133_s25, 4  ;;  %s142_s23 = sshll.u32 %s5134_s30, 4  ;;  %s111_s28 = int_to_ptr.vmem [resolvable:$true] %s110_s28  ;;  %s143_s23 = int_to_ptr.vmem [resolvable:$true] %s142_s23 }
  0x91   :  { %s5042_s19 = scalar_lea.hbm %s5917_s10, 4096 }
  0x92   :  { %p5043_p0 = scmp.ne.s32.totalorder %s5917_s10, %s5042_s19  ;;  %p5046_p1 = scmp.lt.u32.totalorder %s5042_s19, %s5917_s10 }
  0x94   :  { %p5048_p2 = pnand %p5046_p1, %p5043_p0 }
  0x96   :  { %5051 = shalt.err (!%p5048_p2)
}
  0x97   :  { %s5052_s4 = scalar_lea.vmem %s111_s28, 4096  ;;  %p5057_p4 = scmp.lt.s32.totalorder %s111_s28, %s111_s28 }
  0x98   :  { %p5053_p3 = scmp.ne.s32.totalorder %s111_s28, %s5052_s4  ;;  %p5058_p5 = scmp.lt.s32.totalorder %s5052_s4, %s5052_s4 }
  0x9a   :  { %p5059_p6 = por %p5058_p5, %p5057_p4 }
  0x9c   :  { %p5060_p7 = pnand %p5059_p6, %p5053_p3 }
  0x9e   :  { %5063 = shalt.err (!%p5060_p7)
}
  0x9f   :  { %s5945_s1 = smov 8   ;;  %s5946_s2 = smov 128  }
  0xa0   :  { %116 = dma.hbm_to_vmem [thread:$0]  %s5917_s10, 4096, %s111_s28, [#allocation12], %s5946_s2, %s5946_s2, %s5945_s1  }
  0xa1   :  { %s5064_s27 = scalar_lea.hbm %s5923_s16, 1024 }
  0xa2   :  { %p5065_p8 = scmp.ne.s32.totalorder %s5923_s16, %s5064_s27  ;;  %p5068_p9 = scmp.lt.u32.totalorder %s5064_s27, %s5923_s16 }
  0xa4   :  { %p5070_p10 = pnand %p5068_p9, %p5065_p8 }
  0xa6   :  { %5073 = shalt.err (!%p5070_p10)
}
  0xa7   :  { %s5074_s19 = scalar_lea.vmem %s143_s23, 1024  ;;  %p5079_p12 = scmp.lt.s32.totalorder %s143_s23, %s143_s23 }
  0xa8   :  { %p5075_p11 = scmp.ne.s32.totalorder %s143_s23, %s5074_s19  ;;  %p5080_p13 = scmp.lt.s32.totalorder %s5074_s19, %s5074_s19 }
  0xaa   :  { %p5081_p0 = por %p5080_p13, %p5079_p12 }
  0xac   :  { %p5082_p1 = pnand %p5081_p0, %p5075_p11 }
  0xae   :  { %5085 = shalt.err (!%p5082_p1)
}
  0xaf   :  { %148 = dma.hbm_to_vmem [thread:$0]  %s5923_s16, 1024, %s143_s23, [#allocation15], %s5944_s22, %s5944_s22, %s5943_s24  }
  0xb0   :  { %5108 = dma.done.wait [#allocation3], 256  }
  0xb1   :  { %5109 = vsyncadd [#allocation3], 4294967040 }
  0xb2   :  { %5110 = dma.done.wait [#allocation6], 1152  }
  0xb3   :  { %5111 = vsyncadd [#allocation6], 4294966144 }
  0xb4   :  { %5112 = dma.done.wait [#allocation9], 6160  }
  0xb5   :  { %5113 = vsyncadd [#allocation9], 4294961136 }
  0xb6   :  { %5114 = dma.done.wait [#allocation12], 6144  }
  0xb7   :  { %5115 = vsyncadd [#allocation12], 4294961152 }
  0xb8   :  { %5116 = dma.done.wait [#allocation15], 5120  }
  0xb9   :  { %5117 = vsyncadd [#allocation15], 4294962176  ;;  %v5135_v0 = vmov 0.0   ;;  %vm5136_vm0 = vmmov 0   ;;  %v4632_v1 = vld [vmem:[#allocation7] sm:$0xff]   ;;  %v4633_v2 = vld [vmem:[#allocation7 + $0x8] sm:$0xff]   ;;  %v332_v48 = vlaneseq }
  0xba   :  { %4269 = vmatprep.subr.bf16.mxu0 %v5135_v0  ;;  %4285 = vmatprep.mubr.msk.bf16.mxu0 %vm5136_vm0, %v5135_v0  ;;  %v4634_v3 = vld [vmem:[#allocation7 + $0x10] sm:$0xff]   ;;  %v4635_v6 = vld [vmem:[#allocation7 + $0x18] sm:$0xff]   ;;  %v4636_v9 = vld [vmem:[#allocation7 + $0x20] sm:$0xff]   ;;  %v5137_v36 = vmov 0   ;;  %vm577_vm1 = vcmask 261120   ;;  %vm700_vm2 = vcmask 1043456  }
  0xbb   :  { %4270 = vmatpush3.bf16.msra.mxu0 %v4632_v1  ;;  %v4640_v4 = vld [vmem:[#allocation10 + $0x4] ss:$12 sps:$4 sm:$0xff]   ;;  %v4642_v5 = vld [vmem:[#allocation10] ss:$12 sps:$4 sm:$0xff]   ;;  %v4644_v7 = vld [vmem:[#allocation10 + $0x1c] ss:$12 sps:$4 sm:$0xff]   ;;  %507 = vmatprep.mubr.bf16.mxu1 %v5137_v36 }
  0xbc   :  { %4271 = vmatprep.subr.bf16.mxu0 %v5135_v0  ;;  %475 = vmatprep.subr.bf16.mxu1 %v4640_v4  ;;  %v4646_v8 = vld [vmem:[#allocation10 + $0x18] ss:$12 sps:$4 sm:$0xff]   ;;  %v4648_v10 = vld [vmem:[#allocation10 + $0x34] ss:$12 sps:$4 sm:$0xff]   ;;  %v4650_v11 = vld [vmem:[#allocation10 + $0x30] ss:$12 sps:$4 sm:$0xff]  }
  0xbd   :  { %476 = vmatpush1.bf16.msra.mxu1 %v4642_v5  ;;  %v4652_v12 = vld [vmem:[#allocation10 + $0x4c] ss:$12 sps:$4 sm:$0xff]   ;;  %v4654_v14 = vld [vmem:[#allocation10 + $0x48] ss:$12 sps:$4 sm:$0xff]   ;;  %v4656_v15 = vld [vmem:[#allocation10 + $0x64] ss:$12 sps:$4 sm:$0xff]  }
  0xbe   :  { %477 = vmatprep.subr.bf16.mxu1 %v4644_v7  ;;  %v4637_v13 = vld [vmem:[#allocation7 + $0x28] sm:$0xff]   ;;  %v4638_v16 = vld [vmem:[#allocation7 + $0x30] sm:$0xff]   ;;  %v4639_v19 = vld [vmem:[#allocation7 + $0x38] sm:$0xff]   ;;  %v5402_v49 = vshrl.u32 %v332_v48, 7  ;;  %vm672_vm3 = vcmask 64512   ;;  %s5138_s23 = smov 96  }
  0xbf   :  { %4272 = vmatpush3.bf16.msra.mxu0 %v4633_v2  ;;  %v4658_v17 = vld [vmem:[#allocation10 + $0x60] ss:$12 sps:$4 sm:$0xff]   ;;  %v4660_v18 = vld [vmem:[#allocation10 + $0x7c] ss:$12 sps:$4 sm:$0xff]   ;;  %v4662_v22 = vld [vmem:[#allocation10 + $0x78] ss:$12 sps:$4 sm:$0xff]  }
  0xc0   :  { %4273 = vmatprep.subr.bf16.mxu0 %v5135_v0  ;;  %v179_v20 = vld [vmem:[#allocation2] sm:$0xff]  ;;  %v180_v21 = vld [vmem:[#allocation2 + $0x8] sm:$0xff]  ;;  %v3885_v37 = vld [vmem:[#allocation8] ss:$0 sm:$0xff]  ;;  %v5405_v50 = vsub.s32 1, %v5402_v49  ;;  %v342_v52 = vsub.s32 2, %v5402_v49 }
  0xc1   :  { %478 = vmatpush1.bf16.msra.mxu1 %v4646_v8  ;;  %v4643_v23 = vld [vmem:[#allocation10 + $0x8] ss:$12 sps:$4 sm:$0xff]   ;;  %v181_v24 = vpack.c.bf16 %v180_v21, %v179_v20  ;;  %v4647_v25 = vld [vmem:[#allocation10 + $0x20] ss:$12 sps:$4 sm:$0xff]   ;;  %v4651_v26 = vld [vmem:[#allocation10 + $0x38] ss:$12 sps:$4 sm:$0xff]  }
  0xc2   :  { %479 = vmatprep.subr.bf16.mxu1 %v4648_v10  ;;  %v4655_v27 = vld [vmem:[#allocation10 + $0x50] ss:$12 sps:$4 sm:$0xff]   ;;  %v4659_v28 = vld [vmem:[#allocation10 + $0x68] ss:$12 sps:$4 sm:$0xff]   ;;  %v4663_v29 = vld [vmem:[#allocation10 + $0x80] ss:$12 sps:$4 sm:$0xff]  }
  0xc3   :  { %4274 = vmatpush3.bf16.msra.mxu0 %v4634_v3  ;;  %v4664_v30 = vld [vmem:[#allocation10 + $0x94] ss:$12 sps:$4 sm:$0xff]   ;;  %v4666_v31 = vld [vmem:[#allocation10 + $0x90] ss:$12 sps:$4 sm:$0xff]   ;;  %v4667_v32 = vld [vmem:[#allocation10 + $0x98] ss:$12 sps:$4 sm:$0xff]  }
  0xc4   :  { %4275 = vmatprep.subr.bf16.mxu0 %v5135_v0  ;;  %v4668_v33 = vld [vmem:[#allocation10 + $0xac] ss:$12 sps:$4 sm:$0xff]   ;;  %v4670_v34 = vld [vmem:[#allocation10 + $0xa8] ss:$12 sps:$4 sm:$0xff]   ;;  %v4671_v35 = vld [vmem:[#allocation10 + $0xb0] ss:$12 sps:$4 sm:$0xff]  }
  0xc5   :  { %480 = vmatpush1.bf16.msra.mxu1 %v4650_v11  ;;  %v294_v41 = vld [vmem:[#allocation5] sm:$0xff]  ;;  %v330_v51 = vld [vmem:[%s5912_s5] sm:$0x7]  ;;  %v5413_v54 = vsub.s32 0, %v5402_v49  ;;  %s5139_s21 = smov 32   ;;  %vm1482_vm4 = vcmask 523264  }
  0xc6   :  { %481 = vmatprep.subr.bf16.mxu1 %v4652_v12  ;;  %v339_v53 = vrot.slane %v330_v51, %v5405_v50  ;;  %v343_v57 = vrot.slane %v330_v51, %v342_v52  ;;  %vm1485_vm5 = vcmask 785408   ;;  %s5140_s25 = smov [#allocation17]  }
  0xc7   :  { %4276 = vmatpush3.bf16.msra.mxu0 %v4635_v6  ;;  %v335_v3 = vrot.slane %v330_v51, %v5413_v54 }
  0xc8   :  { %4277 = vmatprep.subr.bf16.mxu0 %v5135_v0 }
  0xc9   :  { %482 = vmatpush1.bf16.msra.mxu1 %v4654_v14 }
  0xca   :  { %483 = vmatprep.subr.bf16.mxu1 %v4656_v15 }
  0xcb   :  { %4278 = vmatpush3.bf16.msra.mxu0 %v4636_v9 }
  0xcc   :  { %4279 = vmatprep.subr.bf16.mxu0 %v5135_v0 }
  0xcd   :  { %484 = vmatpush1.bf16.msra.mxu1 %v4658_v17 }
  0xce   :  { %485 = vmatprep.subr.bf16.mxu1 %v4660_v18 }
  0xcf   :  { %4280 = vmatpush3.bf16.msra.mxu0 %v4637_v13 }
  0xd0   :  { %4281 = vmatprep.subr.bf16.mxu0 %v5135_v0 }
  0xd1   :  { %486 = vmatpush1.bf16.msra.mxu1 %v4662_v22 }
  0xd2   :  { %487 = vmatprep.subr.bf16.mxu1 %v4664_v30 }
  0xd3   :  { %4282 = vmatpush3.bf16.msra.mxu0 %v4638_v16 }
  0xd4   :  { %4283 = vmatprep.subr.bf16.mxu0 %v5135_v0 }
  0xd5   :  { %488 = vmatpush1.bf16.msra.mxu1 %v4666_v31 }
  0xd6   :  { %489 = vmatprep.subr.bf16.mxu1 %v4668_v33 }
  0xd7   :  { %4284 = vmatpush3.bf16.msra.mxu0 %v4639_v19 }
  0xd8   :  { %4289 = vmatprep.subr.bf16.mxu0 %v5135_v0 }
  0xd9   :  { %490 = vmatpush1.bf16.msra.mxu1 %v4670_v34 }
  0xda   :  { %4286 = vmatmul.mubr.bf16.vlgmr.msra.gmra.mrb[0].mxu0 %v181_v24  ;;  %4309 = vmatprep.subr.bf16.mxu1 %v5135_v0 }
  0xdb   :  { %4290 = vmatpush3.bf16.msra.mxu0 %v4643_v23  ;;  %4305 = vmatprep.mubr.msk.bf16.mxu0 %vm5136_vm0, %v5135_v0 }
  0xdc   :  { %4291 = vmatprep.subr.bf16.mxu0 %v5135_v0 }
  0xdf   :  { %4292 = vmatpush3.bf16.msra.mxu0 %v4647_v25 }
  0xe0   :  { %4293 = vmatprep.subr.bf16.mxu0 %v5135_v0 }
  0xe3   :  { %4294 = vmatpush3.bf16.msra.mxu0 %v4651_v26 }
  0xe4   :  { %4295 = vmatprep.subr.bf16.mxu0 %v5135_v0 }
  0xe7   :  { %4296 = vmatpush3.bf16.msra.mxu0 %v4655_v27 }
  0xe8   :  { %4297 = vmatprep.subr.bf16.mxu0 %v5135_v0 }
  0xeb   :  { %4298 = vmatpush3.bf16.msra.mxu0 %v4659_v28 }
  0xec   :  { %4299 = vmatprep.subr.bf16.mxu0 %v5135_v0 }
  0xef   :  { %4300 = vmatpush3.bf16.msra.mxu0 %v4663_v29 }
  0xf0   :  { %4301 = vmatprep.subr.bf16.mxu0 %v5135_v0 }
  0xf3   :  { %4302 = vmatpush3.bf16.msra.mxu0 %v4667_v32 }
  0xf4   :  { %4303 = vmatprep.subr.bf16.mxu0 %v5135_v0 }
  0xf7   :  { %4304 = vmatpush3.bf16.msra.mxu0 %v4671_v35 }
  0xf8   :  { %4333 = vmatprep.subr.bf16.mxu0 %v5135_v0 }
 0x1ad   :  { %v287_v38 = vpop.f32.mrb[0].mxu0 }
 0x1ae   :  { %v288_v39 = vadd.f32 %v3885_v37, %v287_v38  ;;  %v4287_v40 = vpop.f32.mrb[1].mxu0 }
 0x1af   :  { %v290_v42 = vpop.f32.mrb[2].mxu0 }
 0x1b0   :  { %v291_v43 = vadd.f32 %v3885_v37, %v290_v42  ;;  %v4288_v44 = vpop.f32.mrb[3].mxu0  ;;  %v5392_v45 = vadd.f32 %v294_v41, %v288_v39 }
 0x1b2   :  { %v5394_v46 = vadd.f32 %v294_v41, %v291_v43 }
 0x1b4   :  { %v297_v47 = vpack.c.bf16 %v5394_v46, %v5392_v45 }
 0x1b6   :  { %508 = vmatmul.mubr.bf16.vlgmr.msra.gmra.mrb[0].mxu1 %v297_v47  ;;  %4306 = vmatmul.mubr.bf16.vlgmr.msra.gmra.mrb[4].mxu0 %v297_v47 }
 0x1b7   :  { %4311 = vmatprep.mubr.msk.bf16.mxu1 %vm5136_vm0, %v5135_v0  ;;  %4335 = vmatprep.mubr.msk.bf16.mxu0 %vm5136_vm0, %v5135_v0 }
 0x289   :  { %v509_v55 = vpop.f32.mrb[0].mxu1  ;;  %v552_v56 = vpop.f32.mrb[4].mxu0 }
 0x28a   :  { %v511_v58 = vpop.f32.mrb[1].mxu1  ;;  %v4307_v59 = vpop.f32.mrb[5].mxu0  ;;  %v510_v7 = vadd.f32 %v509_v55, %v335_v3  ;;  %v553_v10 = vadd.f32 %v552_v56, %v343_v57 }
 0x28b   :  { %v512_v60 = vadd.f32 %v511_v58, %v339_v53  ;;  %v513_v61 = vpop.f32.mrb[2].mxu1  ;;  %v555_v62 = vpop.f32.mrb[6].mxu0 }
 0x28c   :  { %v5417_v63 = vadd.f32 %v555_v62, %v343_v57  ;;  %v515_v1 = vpop.f32.mrb[3].mxu1  ;;  %v4308_v2 = vpop.f32.mrb[7].mxu0  ;;  %v5427_v9 = vpack.c.bf16 %v510_v7, %v510_v7  ;;  %v514_v12 = vadd.f32 %v513_v61, %v335_v3  ;;  %v5436_v13 = vpack.c.bf16 %v553_v10, %v553_v10 }
 0x28d   :  { %v5420_v4 = vpack.c.bf16 %v512_v60, %v512_v60  ;;  %v516_v5 = vadd.f32 %v515_v1, %v339_v53 }
 0x28e   :  { %v5438_v14 = vpack.c.bf16 %v514_v12, %v514_v12  ;;  %v702_v15 = vsel %vm700_vm2, %v5436_v13, 0  ;;  %v5463_v43 = vpack.c.bf16 %v5417_v63, %v5417_v63 }
 0x28f   :  { %v582_v6 = vsel %vm577_vm1, %v5420_v4, 0  ;;  %v5425_v8 = vpack.c.bf16 %v516_v5, %v516_v5 }
 0x290   :  { %4310 = vmatpush3.bf16.xpose.msra.mxu1 %v582_v6  ;;  %v748_v48 = vsel %vm700_vm2, %v5463_v43, 0 }
 0x291   :  { %4315 = vmatprep.subr.bf16.mxu1 %v5135_v0  ;;  %v628_v11 = vsel %vm577_vm1, %v5425_v8, 0 }
 0x297   :  { %4312 = vmatmul.mubr.msk.bf16.vlgmr.msra.gmra.mrb[4].mxu1 %vm577_vm1, %v5427_v9 }
 0x298   :  { %4316 = vmatpush3.bf16.xpose.msra.mxu1 %v628_v11  ;;  %4317 = vmatprep.mubr.msk.bf16.mxu1 %vm5136_vm0, %v5135_v0 }
 0x299   :  { %4321 = vmatprep.subr.bf16.mxu1 %v5135_v0 }
 0x29f   :  { %4318 = vmatmul.mubr.msk.bf16.vlgmr.msra.gmra.mrb[8].mxu1 %vm577_vm1, %v5438_v14 }
 0x2a0   :  { %4322 = vmatpush3.bf16.msra.mxu1 %v702_v15  ;;  %4323 = vmatprep.mubr.msk.bf16.mxu1 %vm5136_vm0, %v5135_v0 }
 0x2a1   :  { %4327 = vmatprep.subr.bf16.mxu1 %v5135_v0 }
 0x36a   :  { %v618_v16 = vpop.f32.mrb[4].mxu1 }
 0x36b   :  { %v670_v17 = vmul.f32 0.17677669, %v618_v16  ;;  %v4313_v18 = vpop.f32.mrb[5].mxu1 }
 0x36c   :  { %v621_v19 = vpop.f32.mrb[6].mxu1 }
 0x36d   :  { %v4314_v20 = vpop.f32.mrb[7].mxu1  ;;  %v673_v21 = vsel %vm672_vm3, %v670_v17, -inf }
 0x36e   :  { %674 = vmax.xlane.f32.xlu0 %v673_v21 }
 0x372   :  { %v664_v22 = vpop.f32.mrb[8].mxu1 }
 0x373   :  { %v671_v23 = vmul.f32 0.17677669, %v664_v22  ;;  %v4319_v24 = vpop.f32.mrb[9].mxu1 }
 0x374   :  { %v667_v25 = vpop.f32.mrb[10].mxu1 }
 0x375   :  { %v4320_v26 = vpop.f32.mrb[11].mxu1  ;;  %v676_v27 = vsel %vm672_vm3, %v671_v23, -inf }
 0x376   :  { %677 = vmax.xlane.f32.xlu0 %v676_v27 }
 0x38c   :  { %792 = vrot.lane.b32.xlu0 %v5420_v4, %s5138_s23 }
 0x3fb   :  { %v675_v28 = vpop.xlane.xlu0 %674 }
 0x3fc   :  { %v679_v29 = vsub.f32 %v670_v17, %v675_v28 }
 0x3fe   :  { %v681_v30 = vmul.f32 1.442695, %v679_v29 }
 0x400   :  { %4808 = vpow2.f32 %v681_v30 }
 0x403   :  { %v678_v31 = vpop.xlane.xlu0 %677 }
 0x404   :  { %v680_v37 = vsub.f32 %v671_v23, %v678_v31 }
 0x406   :  { %v683_v38 = vmul.f32 1.442695, %v680_v37 }
 0x407   :  { %v793_v32 = vpop.permute.xlu0 %792 }
 0x408   :  { %v798_v33 = vsel %vm577_vm1, %v793_v32, 0  ;;  %4810 = vpow2.f32 %v683_v38 }
 0x409   :  { %4334 = vmatpush3.bf16.xpose.msra.mxu0 %v798_v33 }
 0x40a   :  { %v4809_v34 = vpop.eup %4808  ;;  %4345 = vmatprep.subr.bf16.mxu0 %v5135_v0 }
 0x40b   :  { %v685_v35 = vsel %vm672_vm3, %v4809_v34, 0.0 }
 0x40c   :  { %686 = vadd.xlane.f32.xlu1 %v685_v35 }
 0x412   :  { %v4811_v39 = vpop.eup %4810 }
 0x413   :  { %v688_v40 = vsel %vm672_vm3, %v4811_v39, 0.0 }
 0x41d   :  { %842 = vrot.lane.b32.xlu1 %v5425_v8, %s5138_s23 }
 0x441   :  { %689 = vadd.xlane.f32.xlu1 %v688_v40 }
 0x452   :  { %790 = vrot.lane.b32.xlu1 %v5427_v9, %s5138_s23 }
 0x456   :  { %840 = vrot.lane.b32.xlu1 %v5438_v14, %s5138_s23 }
 0x499   :  { %v687_v41 = vpop.xlane.xlu1 %686 }
 0x49a   :  { %4812 = vrcp.f32 %v687_v41 }
 0x49d   :  { %v843_v51 = vpop.permute.xlu1 %842 }
 0x49e   :  { %v848_v59 = vsel %vm577_vm1, %v843_v51, 0 }
 0x4a4   :  { %v4813_v42 = vpop.eup %4812 }
 0x4a5   :  { %v692_v44 = vmul.f32 %v4813_v42, %v4809_v34 }
 0x4a7   :  { %v695_v47 = vpack.c.bf16 %v692_v44, %v692_v44 }
 0x4a9   :  { %4324 = vmatmul.mubr.msk.bf16.vlgmr.msra.gmra.mrb[12].mxu1 %vm672_vm3, %v695_v47 }
 0x4aa   :  { %4328 = vmatpush3.bf16.msra.mxu1 %v748_v48  ;;  %4329 = vmatprep.mubr.msk.bf16.mxu1 %vm5136_vm0, %v5135_v0 }
 0x4ab   :  { %4339 = vmatprep.subr.bf16.mxu1 %v5135_v0 }
 0x4ce   :  { %v690_v53 = vpop.xlane.xlu1 %689 }
 0x4cf   :  { %4814 = vrcp.f32 %v690_v53 }
 0x4d2   :  { %v791_v55 = vpop.permute.xlu1 %790 }
 0x4d3   :  { %4336 = vmatmul.mubr.msk.bf16.vlgmr.msra.gmra.mrb[8].mxu0 %vm577_vm1, %v791_v55 }
 0x4d4   :  { %4347 = vmatprep.mubr.msk.bf16.mxu0 %vm5136_vm0, %v5135_v0 }
 0x4d6   :  { %v841_v60 = vpop.permute.xlu1 %840 }
 0x4d9   :  { %v4815_v56 = vpop.eup %4814 }
 0x4da   :  { %v694_v57 = vmul.f32 %v4815_v56, %v4811_v39 }
 0x4dc   :  { %v696_v58 = vpack.c.bf16 %v694_v57, %v694_v57 }
 0x4de   :  { %4330 = vmatmul.mubr.msk.bf16.vlgmr.msra.gmra.mrb[16].mxu1 %vm672_vm3, %v696_v58 }
 0x4df   :  { %4340 = vmatpush3.bf16.xpose.msra.mxu1 %v848_v59  ;;  %4341 = vmatprep.mubr.msk.bf16.mxu1 %vm5136_vm0, %v5135_v0 }
 0x4e0   :  { %4351 = vmatprep.subr.bf16.mxu1 %v5135_v0 }
 0x4e6   :  { %4342 = vmatmul.mubr.msk.bf16.vlgmr.msra.gmra.mrb[20].mxu1 %vm577_vm1, %v841_v60 }
 0x4e7   :  { %4353 = vmatprep.mubr.msk.bf16.mxu1 %vm5136_vm0, %v5135_v0 }
 0x57c   :  { %v5482_v61 = vpop.f32.mrb[12].mxu1 }
 0x57d   :  { %v4325_v62 = vpop.f32.mrb[13].mxu1 }
 0x57e   :  { %v741_v63 = vpop.f32.mrb[14].mxu1 }
 0x57f   :  { %v4326_v1 = vpop.f32.mrb[15].mxu1 }
 0x5a6   :  { %v834_v2 = vpop.f32.mrb[8].mxu0 }
 0x5a7   :  { %v890_v3 = vmul.f32 0.17677669, %v834_v2  ;;  %v4337_v5 = vpop.f32.mrb[9].mxu0 }
 0x5a8   :  { %v837_v6 = vpop.f32.mrb[10].mxu0 }
 0x5a9   :  { %v4338_v7 = vpop.f32.mrb[11].mxu0  ;;  %v892_v10 = vsel %vm672_vm3, %v890_v3, -inf }
 0x5aa   :  { %893 = vmax.xlane.f32.xlu0 %v892_v10 }
 0x5b1   :  { %v5485_v11 = vpop.f32.mrb[16].mxu1 }
 0x5b2   :  { %v4331_v12 = vpop.f32.mrb[17].mxu1 }
 0x5b3   :  { %v787_v15 = vpop.f32.mrb[18].mxu1 }
 0x5b4   :  { %v4332_v16 = vpop.f32.mrb[19].mxu1 }
 0x5b9   :  { %v884_v17 = vpop.f32.mrb[20].mxu1 }
 0x5ba   :  { %v891_v18 = vmul.f32 0.17677669, %v884_v17  ;;  %v4343_v19 = vpop.f32.mrb[21].mxu1 }
 0x5bb   :  { %v887_v20 = vpop.f32.mrb[22].mxu1 }
 0x5bc   :  { %v4344_v21 = vpop.f32.mrb[23].mxu1  ;;  %v895_v22 = vsel %vm672_vm3, %v891_v18, -inf }
 0x5bd   :  { %896 = vmax.xlane.f32.xlu1 %v895_v22 }
 0x5ce   :  { %964 = vrot.lane.b32.xlu1 %v5463_v43, %s5138_s23 }
 0x5d2   :  { %1014 = vrot.lane.b32.xlu1 %v5420_v4, %s5944_s22 }
 0x5d6   :  { %1064 = vrot.lane.b32.xlu1 %v5425_v8, %s5944_s22 }
 0x5da   :  { %1062 = vrot.lane.b32.xlu1 %v5438_v14, %s5944_s22 }
 0x637   :  { %v894_v23 = vpop.xlane.xlu0 %893 }
 0x638   :  { %v898_v24 = vsub.f32 %v890_v3, %v894_v23 }
 0x63a   :  { %v900_v25 = vmul.f32 1.442695, %v898_v24 }
 0x63c   :  { %4816 = vpow2.f32 %v900_v25 }
 0x646   :  { %v4817_v26 = vpop.eup %4816 }
 0x647   :  { %v904_v27 = vsel %vm672_vm3, %v4817_v26, 0.0 }
 0x648   :  { %905 = vadd.xlane.f32.xlu0 %v904_v27 }
 0x64a   :  { %v897_v28 = vpop.xlane.xlu1 %896 }
 0x64b   :  { %v899_v29 = vsub.f32 %v891_v18, %v897_v28 }
 0x64d   :  { %v902_v30 = vmul.f32 1.442695, %v899_v29 }
 0x64e   :  { %v965_v31 = vpop.permute.xlu1 %964 }
 0x64f   :  { %4818 = vpow2.f32 %v902_v30  ;;  %v970_v32 = vsel %vm700_vm2, %v965_v31, 0 }
 0x650   :  { %4352 = vmatpush3.bf16.msra.mxu1 %v970_v32 }
 0x651   :  { %4363 = vmatprep.subr.bf16.mxu1 %v5135_v0 }
 0x652   :  { %v1015_v42 = vpop.permute.xlu1 %1014 }
 0x653   :  { %v1020_v53 = vsel %vm577_vm1, %v1015_v42, 0 }
 0x656   :  { %v1065_v51 = vpop.permute.xlu1 %1064 }
 0x657   :  { %v1070_v56 = vsel %vm577_vm1, %v1065_v51, 0 }
 0x659   :  { %v4819_v33 = vpop.eup %4818 }
 0x65a   :  { %v907_v34 = vsel %vm672_vm3, %v4819_v33, 0.0  ;;  %v1063_v58 = vpop.permute.xlu1 %1062 }
 0x65b   :  { %908 = vadd.xlane.f32.xlu0 %v907_v34 }
 0x671   :  { %916 = vrot.lane.b32.xlu0 %v5436_v13, %s5138_s23 }
 0x675   :  { %1012 = vrot.lane.b32.xlu0 %v5427_v9, %s5944_s22 }
 0x6d5   :  { %v906_v35 = vpop.xlane.xlu0 %905 }
 0x6d6   :  { %4820 = vrcp.f32 %v906_v35 }
 0x6e0   :  { %v4821_v37 = vpop.eup %4820 }
 0x6e1   :  { %v911_v39 = vmul.f32 %v4821_v37, %v4817_v26 }
 0x6e3   :  { %v914_v44 = vpack.c.bf16 %v911_v39, %v911_v39 }
 0x6e8   :  { %v909_v38 = vpop.xlane.xlu0 %908 }
 0x6e9   :  { %4822 = vrcp.f32 %v909_v38 }
 0x6ec   :  { %v917_v40 = vpop.permute.xlu0 %916 }
 0x6ed   :  { %v922_v41 = vsel %vm700_vm2, %v917_v40, 0 }
 0x6ee   :  { %4346 = vmatpush3.bf16.msra.mxu0 %v922_v41 }
 0x6ef   :  { %4357 = vmatprep.subr.bf16.mxu0 %v5135_v0 }
 0x6f0   :  { %v1013_v57 = vpop.permute.xlu0 %1012 }
 0x6f1   :  { %4348 = vmatmul.mubr.msk.bf16.vlgmr.msra.gmra.mrb[12].mxu0 %vm672_vm3, %v914_v44 }
 0x6f2   :  { %4359 = vmatprep.mubr.msk.bf16.mxu0 %vm5136_vm0, %v5135_v0 }
 0x6f3   :  { %v4823_v47 = vpop.eup %4822 }
 0x6f4   :  { %v913_v48 = vmul.f32 %v4823_v47, %v4819_v33 }
 0x6f6   :  { %v915_v55 = vpack.c.bf16 %v913_v48, %v913_v48 }
 0x6f7   :  { %4358 = vmatpush3.bf16.xpose.msra.mxu0 %v1020_v53 }
 0x6f8   :  { %4354 = vmatmul.mubr.msk.bf16.vlgmr.msra.gmra.mrb[24].mxu1 %vm672_vm3, %v915_v55  ;;  %4369 = vmatprep.subr.bf16.mxu0 %v5135_v0 }
 0x6f9   :  { %4364 = vmatpush3.bf16.xpose.msra.mxu1 %v1070_v56  ;;  %4365 = vmatprep.mubr.msk.bf16.mxu1 %vm5136_vm0, %v5135_v0 }
 0x6fa   :  { %4375 = vmatprep.subr.bf16.mxu1 %v5135_v0 }
 0x6fe   :  { %4360 = vmatmul.mubr.msk.bf16.vlgmr.msra.gmra.mrb[16].mxu0 %vm577_vm1, %v1013_v57 }
 0x6ff   :  { %4371 = vmatprep.mubr.msk.bf16.mxu0 %vm5136_vm0, %v5135_v0 }
 0x700   :  { %4366 = vmatmul.mubr.msk.bf16.vlgmr.msra.gmra.mrb[28].mxu1 %vm577_vm1, %v1063_v58 }
 0x701   :  { %4377 = vmatprep.mubr.msk.bf16.mxu1 %vm5136_vm0, %v5135_v0 }
 0x7c4   :  { %v5522_v59 = vpop.f32.mrb[12].mxu0 }
 0x7c5   :  { %v4349_v60 = vpop.f32.mrb[13].mxu0 }
 0x7c6   :  { %v961_v62 = vpop.f32.mrb[14].mxu0 }
 0x7c7   :  { %v4350_v63 = vpop.f32.mrb[15].mxu0 }
 0x7cb   :  { %v5524_v1 = vpop.f32.mrb[24].mxu1 }
 0x7cc   :  { %v4602_v2 = vpack.i.bf16 %v5524_v1, %v5522_v59  ;;  %v4355_v3 = vpop.f32.mrb[25].mxu1 }
 0x7cd   :  { %v1009_v5 = vpop.f32.mrb[26].mxu1 }
 0x7ce   :  { %v4356_v6 = vpop.f32.mrb[27].mxu1 }
 0x7d1   :  { %v1056_v7 = vpop.f32.mrb[16].mxu0 }
 0x7d2   :  { %v1112_v10 = vmul.f32 0.17677669, %v1056_v7  ;;  %v4361_v12 = vpop.f32.mrb[17].mxu0 }
 0x7d3   :  { %v1059_v15 = vpop.f32.mrb[18].mxu0  ;;  %v1106_v16 = vpop.f32.mrb[28].mxu1 }
 0x7d4   :  { %v1113_v17 = vmul.f32 0.17677669, %v1106_v16  ;;  %v4362_v18 = vpop.f32.mrb[19].mxu0  ;;  %v4367_v19 = vpop.f32.mrb[29].mxu1  ;;  %v1114_v20 = vsel %vm672_vm3, %v1112_v10, -inf }
 0x7d5   :  { %v1109_v21 = vpop.f32.mrb[30].mxu1  ;;  %1115 = vmax.xlane.f32.xlu0 %v1114_v20 }
 0x7d6   :  { %v4368_v22 = vpop.f32.mrb[31].mxu1  ;;  %v1117_v23 = vsel %vm672_vm3, %v1113_v17, -inf }
 0x7d7   :  { %1118 = vmax.xlane.f32.xlu1 %v1117_v23 }
 0x7e8   :  { %1186 = vrot.lane.b32.xlu1 %v5463_v43, %s5944_s22 }
 0x7ec   :  { %1236 = vrot.lane.b32.xlu1 %v5420_v4, %s5139_s21 }
 0x7f0   :  { %1286 = vrot.lane.b32.xlu1 %v5425_v8, %s5139_s21 }
 0x7f4   :  { %1284 = vrot.lane.b32.xlu1 %v5438_v14, %s5139_s21 }
 0x862   :  { %v1116_v24 = vpop.xlane.xlu0 %1115 }
 0x863   :  { %v1120_v25 = vsub.f32 %v1112_v10, %v1116_v24 }
 0x864   :  { %v1119_v26 = vpop.xlane.xlu1 %1118 }
 0x865   :  { %v1122_v27 = vmul.f32 1.442695, %v1120_v25  ;;  %v1121_v28 = vsub.f32 %v1113_v17, %v1119_v26 }
 0x867   :  { %4824 = vpow2.f32 %v1122_v27  ;;  %v1124_v29 = vmul.f32 1.442695, %v1121_v28 }
 0x868   :  { %v1187_v30 = vpop.permute.xlu1 %1186 }
 0x869   :  { %4826 = vpow2.f32 %v1124_v29  ;;  %v1192_v31 = vsel %vm700_vm2, %v1187_v30, 0 }
 0x86a   :  { %4376 = vmatpush3.bf16.msra.mxu1 %v1192_v31 }
 0x86b   :  { %4387 = vmatprep.subr.bf16.mxu1 %v5135_v0 }
 0x86c   :  { %v1237_v39 = vpop.permute.xlu1 %1236 }
 0x870   :  { %v1287_v47 = vpop.permute.xlu1 %1286 }
 0x871   :  { %v4825_v4 = vpop.eup %4824  ;;  %v1292_v51 = vsel %vm577_vm1, %v1287_v47, 0  ;;  %v4677_v47 = vld [vmem:[#allocation11 + $0x28] sm:$0xff]  }
 0x872   :  { %v1126_v8 = vsel %vm672_vm3, %v4825_v4, 0.0 }
 0x873   :  { %v4827_v32 = vpop.eup %4826  ;;  %1127 = vadd.xlane.f32.xlu0 %v1126_v8 }
 0x874   :  { %v1129_v14 = vsel %vm672_vm3, %v4827_v32, 0.0  ;;  %v1285_v55 = vpop.permute.xlu1 %1284 }
 0x877   :  { %1130 = vadd.xlane.f32.xlu0 %v1129_v14 }
 0x88d   :  { %1138 = vrot.lane.b32.xlu0 %v5436_v13, %s5944_s22 }
 0x891   :  { %1234 = vrot.lane.b32.xlu0 %v5427_v9, %s5139_s21  ;;  %v1242_v9 = vsel %vm577_vm1, %v1237_v39, 0  ;;  %v4672_v39 = vld [vmem:[#allocation11] sm:$0xff]  }
 0x900   :  { %v1128_v33 = vpop.xlane.xlu0 %1127 }
 0x901   :  { %4828 = vrcp.f32 %v1128_v33 }
 0x904   :  { %v1131_v34 = vpop.xlane.xlu0 %1130 }
 0x905   :  { %4830 = vrcp.f32 %v1131_v34 }
 0x908   :  { %v1139_v35 = vpop.permute.xlu0 %1138 }
 0x909   :  { %v1144_v37 = vsel %vm700_vm2, %v1139_v35, 0 }
 0x90a   :  { %4370 = vmatpush3.bf16.msra.mxu0 %v1144_v37 }
 0x90b   :  { %v4829_v38 = vpop.eup %4828  ;;  %4381 = vmatprep.subr.bf16.mxu0 %v5135_v0 }
 0x90c   :  { %v1133_v40 = vmul.f32 %v4829_v38, %v4825_v4  ;;  %v1235_v53 = vpop.permute.xlu0 %1234 }
 0x90e   :  { %v1136_v41 = vpack.c.bf16 %v1133_v40, %v1133_v40  ;;  %v4673_v40 = vld [vmem:[#allocation11 + $0x8] sm:$0xff]  }
 0x90f   :  { %v4831_v42 = vpop.eup %4830 }
 0x910   :  { %v1135_v44 = vmul.f32 %v4831_v42, %v4827_v32  ;;  %4372 = vmatmul.mubr.msk.bf16.vlgmr.msra.gmra.mrb[20].mxu0 %vm672_vm3, %v1136_v41  ;;  %v4674_v41 = vld [vmem:[#allocation11 + $0x10] sm:$0xff]   ;;  %v4675_v42 = vld [vmem:[#allocation11 + $0x18] sm:$0xff]  }
 0x911   :  { %4383 = vmatprep.mubr.msk.bf16.mxu0 %vm5136_vm0, %v5135_v0 }
 0x912   :  { %v1137_v48 = vpack.c.bf16 %v1135_v44, %v1135_v44  ;;  %v4676_v44 = vld [vmem:[#allocation11 + $0x20] sm:$0xff]  }
 0x913   :  { %4382 = vmatpush3.bf16.xpose.msra.mxu0 %v1242_v9  ;;  %v4678_v9 = vld [vmem:[#allocation11 + $0x30] sm:$0xff]  }
 0x914   :  { %4378 = vmatmul.mubr.msk.bf16.vlgmr.msra.gmra.mrb[32].mxu1 %vm672_vm3, %v1137_v48  ;;  %4393 = vmatprep.subr.bf16.mxu0 %v5135_v0  ;;  %v4679_v48 = vld [vmem:[#allocation11 + $0x38] sm:$0xff]  }
 0x915   :  { %4388 = vmatpush3.bf16.xpose.msra.mxu1 %v1292_v51  ;;  %4389 = vmatprep.mubr.msk.bf16.mxu1 %vm5136_vm0, %v5135_v0 }
 0x916   :  { %4399 = vmatprep.subr.bf16.mxu1 %v5135_v0 }
 0x91a   :  { %4384 = vmatmul.mubr.msk.bf16.vlgmr.msra.gmra.mrb[24].mxu0 %vm577_vm1, %v1235_v53 }
 0x91b   :  { %4395 = vmatprep.mubr.msk.bf16.mxu0 %vm5136_vm0, %v5135_v0 }
 0x91c   :  { %4390 = vmatmul.mubr.msk.bf16.vlgmr.msra.gmra.mrb[36].mxu1 %vm577_vm1, %v1285_v55 }
 0x91d   :  { %4401 = vmatprep.mubr.msk.bf16.mxu1 %vm5136_vm0, %v5135_v0 }
 0x9e3   :  { %v1180_v56 = vpop.f32.mrb[20].mxu0 }
 0x9e4   :  { %v4373_v57 = vpop.f32.mrb[21].mxu0 }
 0x9e5   :  { %v1183_v58 = vpop.f32.mrb[22].mxu0 }
 0x9e6   :  { %v4374_v60 = vpop.f32.mrb[23].mxu0 }
 0x9e7   :  { %v1228_v62 = vpop.f32.mrb[32].mxu1 }
 0x9e8   :  { %v4607_v63 = vpack.i.bf16 %v1228_v62, %v1180_v56  ;;  %v4379_v3 = vpop.f32.mrb[33].mxu1 }
 0x9e9   :  { %v1231_v5 = vpop.f32.mrb[34].mxu1 }
 0x9ea   :  { %v4380_v6 = vpop.f32.mrb[35].mxu1 }
 0x9ed   :  { %v1278_v7 = vpop.f32.mrb[24].mxu0 }
 0x9ee   :  { %v1334_v10 = vmul.f32 0.17677669, %v1278_v7  ;;  %v4385_v12 = vpop.f32.mrb[25].mxu0 }
 0x9ef   :  { %v1281_v15 = vpop.f32.mrb[26].mxu0  ;;  %v1328_v16 = vpop.f32.mrb[36].mxu1 }
 0x9f0   :  { %v1335_v17 = vmul.f32 0.17677669, %v1328_v16  ;;  %v4386_v18 = vpop.f32.mrb[27].mxu0  ;;  %v4391_v19 = vpop.f32.mrb[37].mxu1  ;;  %v1336_v20 = vsel %vm672_vm3, %v1334_v10, -inf }
 0x9f1   :  { %v1331_v21 = vpop.f32.mrb[38].mxu1  ;;  %1337 = vmax.xlane.f32.xlu0 %v1336_v20 }
 0x9f2   :  { %v4392_v22 = vpop.f32.mrb[39].mxu1  ;;  %v1339_v23 = vsel %vm672_vm3, %v1335_v17, -inf }
 0x9f3   :  { %1340 = vmax.xlane.f32.xlu1 %v1339_v23 }
 0xa04   :  { %1408 = vrot.lane.b32.xlu1 %v5463_v43, %s5139_s21 }
 0xa08   :  { %4603 = vrot.lane.b32.xlu1 %v4602_v2, %s5139_s21 }
 0xa0c   :  { %4608 = vrot.lane.b32.xlu1 %v4607_v63, %s5944_s22 }
 0xa7e   :  { %v1338_v24 = vpop.xlane.xlu0 %1337 }
 0xa7f   :  { %v1342_v25 = vsub.f32 %v1334_v10, %v1338_v24 }
 0xa80   :  { %v1341_v26 = vpop.xlane.xlu1 %1340 }
 0xa81   :  { %v1344_v27 = vmul.f32 1.442695, %v1342_v25  ;;  %v1343_v28 = vsub.f32 %v1335_v17, %v1341_v26  ;;  %v3940_v25 = vld [vmem:[%s5914_s7] ss:$0 sm:$0xff] }
 0xa83   :  { %4832 = vpow2.f32 %v1344_v27  ;;  %v1346_v29 = vmul.f32 1.442695, %v1343_v28 }
 0xa84   :  { %v1409_v30 = vpop.permute.xlu1 %1408 }
 0xa85   :  { %4834 = vpow2.f32 %v1346_v29  ;;  %v1414_v31 = vsel %vm700_vm2, %v1409_v30, 0 }
 0xa86   :  { %4400 = vmatpush3.bf16.msra.mxu1 %v1414_v31 }
 0xa88   :  { %v4604_v3 = vpop.permute.xlu1 %4603 }
 0xa89   :  { %v4606_v6 = vunpack.i.h.bf16 %v4604_v3  ;;  %v4605_v7 = vunpack.i.l.bf16 %v4604_v3  ;;  %v4713_v3 = vld [vmem:[#allocation14 + $0x20] sm:$0xff]  }
 0xa8b   :  { %v1481_v16 = vsel %vm577_vm1, %v5485_v11, %v4606_v6  ;;  %v1480_v17 = vsel %vm577_vm1, %v5482_v61, %v4605_v7 }
 0xa8c   :  { %v4609_v5 = vpop.permute.xlu1 %4608 }
 0xa8d   :  { %v4833_v43 = vpop.eup %4832  ;;  %v4611_v10 = vunpack.i.h.bf16 %v4609_v5  ;;  %v4610_v12 = vunpack.i.l.bf16 %v4609_v5  ;;  %v4714_v5 = vld [vmem:[#allocation14 + $0x68] sm:$0xff]  }
 0xa8e   :  { %v1348_v4 = vsel %vm672_vm3, %v4833_v43, 0.0 }
 0xa8f   :  { %v4835_v8 = vpop.eup %4834  ;;  %1349 = vadd.xlane.f32.xlu0 %v1348_v4  ;;  %v1484_v20 = vsel %vm1482_vm4, %v1481_v16, %v4611_v10  ;;  %v1483_v21 = vsel %vm1482_vm4, %v1480_v17, %v4610_v12  ;;  %v4682_v4 = vld [vmem:[#allocation13 + $0x4] ss:$8 sps:$4 sm:$0xff]  }
 0xa90   :  { %v1351_v59 = vsel %vm672_vm3, %v4835_v8, 0.0  ;;  %1753 = vmatprep.subr.bf16.mxu1 %v4682_v4 }
 0xa93   :  { %1352 = vadd.xlane.f32.xlu0 %v1351_v59  ;;  %v4683_v59 = vld [vmem:[#allocation13 + $0x10] ss:$8 sps:$4 sm:$0xff]  }
 0xaa9   :  { %1360 = vrot.lane.b32.xlu0 %v5436_v13, %s5139_s21 }
 0xb1c   :  { %v1350_v1 = vpop.xlane.xlu0 %1349 }
 0xb1d   :  { %4836 = vrcp.f32 %v1350_v1 }
 0xb20   :  { %v1353_v2 = vpop.xlane.xlu0 %1352 }
 0xb21   :  { %4838 = vrcp.f32 %v1353_v2 }
 0xb24   :  { %v1361_v32 = vpop.permute.xlu0 %1360 }
 0xb25   :  { %v1366_v14 = vsel %vm700_vm2, %v1361_v32, 0 }
 0xb26   :  { %4394 = vmatpush3.bf16.msra.mxu0 %v1366_v14 }
 0xb27   :  { %v4837_v33 = vpop.eup %4836  ;;  %4405 = vmatprep.subr.bf16.mxu0 %v5135_v0 }
 0xb28   :  { %v1355_v34 = vmul.f32 %v4837_v33, %v4833_v43  ;;  %v4680_v43 = vld [vmem:[#allocation13] ss:$8 sps:$4 sm:$0xff]  }
 0xb2a   :  { %v1358_v35 = vpack.c.bf16 %v1355_v34, %v1355_v34 }
 0xb2b   :  { %v4839_v37 = vpop.eup %4838 }
 0xb2c   :  { %v1357_v38 = vmul.f32 %v4839_v37, %v4835_v8  ;;  %4396 = vmatmul.mubr.msk.bf16.vlgmr.msra.gmra.mrb[28].mxu0 %vm672_vm3, %v1358_v35  ;;  %v4685_v8 = vld [vmem:[#allocation13 + $0x14] ss:$8 sps:$4 sm:$0xff]   ;;  %v4688_v35 = vld [vmem:[#allocation13 + $0x24] ss:$8 sps:$4 sm:$0xff]   ;;  %v4686_v37 = vld [vmem:[#allocation13 + $0x20] ss:$8 sps:$4 sm:$0xff]  }
 0xb2d   :  { %4421 = vmatprep.mubr.msk.bf16.mxu0 %vm5136_vm0, %v5135_v0  ;;  %4406 = vmatpush3.bf16.msra.mxu0 %v4672_v39  ;;  %v4694_v39 = vld [vmem:[#allocation13 + $0x44] ss:$8 sps:$4 sm:$0xff]  }
 0xb2e   :  { %v1359_v13 = vpack.c.bf16 %v1357_v38, %v1357_v38  ;;  %4407 = vmatprep.subr.bf16.mxu0 %v5135_v0  ;;  %v4691_v38 = vld [vmem:[#allocation13 + $0x34] ss:$8 sps:$4 sm:$0xff]  }
 0xb30   :  { %4402 = vmatmul.mubr.msk.bf16.vlgmr.msra.gmra.mrb[40].mxu1 %vm672_vm3, %v1359_v13  ;;  %v4689_v13 = vld [vmem:[#allocation13 + $0x30] ss:$8 sps:$4 sm:$0xff]  }
 0xb31   :  { %1785 = vmatprep.mubr.bf16.mxu1 %v5137_v36  ;;  %4408 = vmatpush3.bf16.msra.mxu0 %v4673_v40  ;;  %v4692_v40 = vld [vmem:[#allocation13 + $0x40] ss:$8 sps:$4 sm:$0xff]  }
 0xb32   :  { %4409 = vmatprep.subr.bf16.mxu0 %v5135_v0  ;;  %1754 = vmatpush1.bf16.msra.mxu1 %v4680_v43 }
 0xb33   :  { %1755 = vmatprep.subr.bf16.mxu1 %v4685_v8 }
 0xb35   :  { %4410 = vmatpush3.bf16.msra.mxu0 %v4674_v41  ;;  %v4697_v41 = vld [vmem:[#allocation13 + $0x54] ss:$8 sps:$4 sm:$0xff]  }
 0xb36   :  { %4411 = vmatprep.subr.bf16.mxu0 %v5135_v0  ;;  %1756 = vmatpush1.bf16.msra.mxu1 %v4683_v59 }
 0xb37   :  { %1757 = vmatprep.subr.bf16.mxu1 %v4688_v35 }
 0xb39   :  { %4412 = vmatpush3.bf16.msra.mxu0 %v4675_v42  ;;  %v4695_v42 = vld [vmem:[#allocation13 + $0x50] ss:$8 sps:$4 sm:$0xff]  }
 0xb3a   :  { %4413 = vmatprep.subr.bf16.mxu0 %v5135_v0  ;;  %1758 = vmatpush1.bf16.msra.mxu1 %v4686_v37 }
 0xb3b   :  { %1759 = vmatprep.subr.bf16.mxu1 %v4691_v38 }
 0xb3d   :  { %4414 = vmatpush3.bf16.msra.mxu0 %v4676_v44  ;;  %v4700_v44 = vld [vmem:[#allocation13 + $0x64] ss:$8 sps:$4 sm:$0xff]  }
 0xb3e   :  { %4415 = vmatprep.subr.bf16.mxu0 %v5135_v0  ;;  %1760 = vmatpush1.bf16.msra.mxu1 %v4689_v13 }
 0xb3f   :  { %1761 = vmatprep.subr.bf16.mxu1 %v4694_v39 }
 0xb41   :  { %4416 = vmatpush3.bf16.msra.mxu0 %v4677_v47  ;;  %v4698_v47 = vld [vmem:[#allocation13 + $0x60] ss:$8 sps:$4 sm:$0xff]  }
 0xb42   :  { %4417 = vmatprep.subr.bf16.mxu0 %v5135_v0  ;;  %1762 = vmatpush1.bf16.msra.mxu1 %v4692_v40  ;;  %v3967_v40 = vld [vmem:[%s5920_s13] ss:$0 sm:$0xff] }
 0xb43   :  { %1763 = vmatprep.subr.bf16.mxu1 %v4697_v41 }
 0xb45   :  { %4418 = vmatpush3.bf16.msra.mxu0 %v4678_v9  ;;  %v4703_v9 = vld [vmem:[#allocation13 + $0x74] ss:$8 sps:$4 sm:$0xff]  }
 0xb46   :  { %4419 = vmatprep.subr.bf16.mxu0 %v5135_v0  ;;  %1764 = vmatpush1.bf16.msra.mxu1 %v4695_v42 }
 0xb47   :  { %1765 = vmatprep.subr.bf16.mxu1 %v4700_v44 }
 0xb49   :  { %4420 = vmatpush3.bf16.msra.mxu0 %v4679_v48  ;;  %v4701_v48 = vld [vmem:[#allocation13 + $0x70] ss:$8 sps:$4 sm:$0xff]  }
 0xb4a   :  { %1766 = vmatpush1.bf16.msra.mxu1 %v4698_v47 }
 0xb4b   :  { %1767 = vmatprep.subr.bf16.mxu1 %v4703_v9 }
 0xb4e   :  { %1768 = vmatpush1.bf16.msra.mxu1 %v4701_v48 }
 0xbff   :  { %v1402_v51 = vpop.f32.mrb[28].mxu0 }
 0xc00   :  { %v4397_v53 = vpop.f32.mrb[29].mxu0 }
 0xc01   :  { %v1405_v55 = vpop.f32.mrb[30].mxu0  ;;  %v4705_v53 = vld [vmem:[#allocation14] sm:$0xff]  }
 0xc02   :  { %v4398_v56 = vpop.f32.mrb[31].mxu0  ;;  %v4706_v55 = vld [vmem:[#allocation14 + $0x48] sm:$0xff]  }
 0xc03   :  { %v1450_v57 = vpop.f32.mrb[40].mxu1  ;;  %v4707_v56 = vld [vmem:[#allocation14 + $0x8] sm:$0xff]  }
 0xc04   :  { %v4612_v58 = vpack.i.bf16 %v1450_v57, %v1402_v51  ;;  %v4403_v60 = vpop.f32.mrb[41].mxu1  ;;  %v4704_v51 = vld [vmem:[#allocation14 + $0x40] sm:$0xff]   ;;  %v4708_v57 = vld [vmem:[#allocation14 + $0x50] sm:$0xff]  }
 0xc05   :  { %v1453_v62 = vpop.f32.mrb[42].mxu1  ;;  %4166 = vmatprep.subr.bf16.mxu0 %v4704_v51  ;;  %v4710_v60 = vld [vmem:[#allocation14 + $0x58] sm:$0xff]  }
 0xc06   :  { %v4404_v63 = vpop.f32.mrb[43].mxu1  ;;  %4613 = vrot.lane.b32.xlu0 %v4612_v58, %s5138_s23  ;;  %v4709_v58 = vld [vmem:[#allocation14 + $0x10] sm:$0xff]   ;;  %v4711_v62 = vld [vmem:[#allocation14 + $0x18] sm:$0xff]  }
 0xc07   :  { %v4712_v63 = vld [vmem:[#allocation14 + $0x60] sm:$0xff]  }
 0xc78   :  { %v4614_v15 = vpop.permute.xlu0 %4613 }
 0xc79   :  { %v4616_v18 = vunpack.i.h.bf16 %v4614_v15  ;;  %v4615_v19 = vunpack.i.l.bf16 %v4614_v15 }
 0xc7b   :  { %v1487_v22 = vsel %vm1485_vm5, %v1484_v20, %v4616_v18  ;;  %v1486_v23 = vsel %vm1485_vm5, %v1483_v21, %v4615_v19  ;;  %v3949_v19 = vld [vmem:[%s5915_s8] ss:$0 sm:$0xff] }
 0xc7c   :  { %v1488_v24 = vpack.c.bf16 %v1487_v22, %v1486_v23  ;;  %v3950_v23 = vld [vmem:[%s5916_s9] ss:$0 sm:$0xff] }
 0xc7e   :  { %4422 = vmatmul.mubr.bf16.vlgmr.msra.gmra.mrb[32].mxu0 %v1488_v24 }
 0xc7f   :  { %4167 = vmatpush3.bf16.msra.mxu0 %v4705_v53 }
 0xc80   :  { %4168 = vmatprep.subr.bf16.mxu0 %v4706_v55 }
 0xc83   :  { %4169 = vmatpush3.bf16.msra.mxu0 %v4707_v56  ;;  %v4720_v56 = vld [vmem:[#allocation10 + $0xc0] ss:$12 sps:$4 sm:$0xff]  }
 0xc84   :  { %4170 = vmatprep.subr.bf16.mxu0 %v4708_v57  ;;  %v4722_v57 = vld [vmem:[#allocation10 + $0xc4] ss:$12 sps:$4 sm:$0xff]  }
 0xc85   :  { %2200 = vmatprep.subr.bf16.mxu1 %v4722_v57 }
 0xc87   :  { %4171 = vmatpush3.bf16.msra.mxu0 %v4709_v58  ;;  %v4723_v58 = vld [vmem:[#allocation10 + $0xc8] ss:$12 sps:$4 sm:$0xff]  }
 0xc88   :  { %4172 = vmatprep.subr.bf16.mxu0 %v4710_v60  ;;  %v4726_v60 = vld [vmem:[#allocation10 + $0xdc] ss:$12 sps:$4 sm:$0xff]  }
 0xc8b   :  { %4173 = vmatpush3.bf16.msra.mxu0 %v4711_v62  ;;  %v4727_v62 = vld [vmem:[#allocation10 + $0xe0] ss:$12 sps:$4 sm:$0xff]  }
 0xc8c   :  { %4174 = vmatprep.subr.bf16.mxu0 %v4712_v63  ;;  %v4724_v63 = vld [vmem:[#allocation10 + $0xd8] ss:$12 sps:$4 sm:$0xff]  }
 0xc8f   :  { %4175 = vmatpush3.bf16.msra.mxu0 %v4713_v3 }
 0xc90   :  { %4176 = vmatprep.subr.bf16.mxu0 %v4714_v5 }
 0xd51   :  { %v1594_v11 = vpop.f32.mrb[32].mxu0 }
 0xd52   :  { %v1595_v26 = vadd.f32 %v3940_v25, %v1594_v11  ;;  %v4423_v27 = vpop.f32.mrb[33].mxu0 }
 0xd53   :  { %v1597_v61 = vpop.f32.mrb[34].mxu0  ;;  %v4715_v27 = vld [vmem:[#allocation14 + $0x28] sm:$0xff]  }
 0xd54   :  { %v1598_v28 = vadd.f32 %v3940_v25, %v1597_v61  ;;  %v4424_v29 = vpop.f32.mrb[35].mxu0  ;;  %v1601_v30 = vadd.f32 %v1595_v26, %v5392_v45  ;;  %4177 = vmatpush3.bf16.msra.mxu0 %v4715_v27  ;;  %v4716_v61 = vld [vmem:[#allocation14 + $0x70] sm:$0xff]   ;;  %v4743_v27 = vld [vmem:[#allocation10 + $0x140] ss:$12 sps:$4 sm:$0xff]  }
 0xd55   :  { %4178 = vmatprep.subr.bf16.mxu0 %v4716_v61  ;;  %v4718_v29 = vld [vmem:[#allocation14 + $0x78] sm:$0xff]   ;;  %v4746_v61 = vld [vmem:[#allocation10 + $0x154] ss:$12 sps:$4 sm:$0xff]  }
 0xd56   :  { %1603 = vadd.xlane.f32.xlu1 %v1601_v30  ;;  %v1602_v31 = vadd.f32 %v1598_v28, %v5394_v46  ;;  %v4717_v28 = vld [vmem:[#allocation14 + $0x30] sm:$0xff]  }
 0xd58   :  { %1605 = vadd.xlane.f32.xlu0 %v1602_v31  ;;  %4179 = vmatpush3.bf16.msra.mxu0 %v4717_v28  ;;  %v4744_v28 = vld [vmem:[#allocation10 + $0x150] ss:$12 sps:$4 sm:$0xff]  }
 0xd59   :  { %4180 = vmatprep.subr.bf16.mxu0 %v4718_v29  ;;  %v4747_v29 = vld [vmem:[#allocation10 + $0x158] ss:$12 sps:$4 sm:$0xff]  }
 0xde3   :  { %v1604_v1 = vpop.xlane.xlu1 %1603 }
 0xde4   :  { %v1608_v2 = vmul.f32 0.0078125, %v1604_v1 }
 0xde5   :  { %v1606_v32 = vpop.xlane.xlu0 %1605 }
 0xde6   :  { %v1610_v14 = vsub.f32 %v1601_v30, %v1608_v2  ;;  %v1609_v33 = vmul.f32 0.0078125, %v1606_v32  ;;  %v4719_v30 = vld [vmem:[#allocation14 + $0x38] sm:$0xff]  }
 0xde7   :  { %4181 = vmatpush3.bf16.msra.mxu0 %v4719_v30  ;;  %v4750_v30 = vld [vmem:[#allocation10 + $0x16c] ss:$12 sps:$4 sm:$0xff]  }
 0xde8   :  { %v5606_v34 = vsub.f32 %v1602_v31, %v1609_v33  ;;  %v1612_v45 = vmul.f32 %v1610_v14, %v1610_v14  ;;  %4425 = vmatprep.subr.bf16.mxu0 %v5135_v0  ;;  %v1661_v31 = vld [vmem:[%s5918_s11] sm:$0x3] }
 0xde9   :  { %v1666_v43 = vrot.slane %v1661_v31, %v5413_v54  ;;  %v1670_v4 = vrot.slane %v1661_v31, %v5405_v50  ;;  %v4748_v31 = vld [vmem:[#allocation10 + $0x168] ss:$12 sps:$4 sm:$0xff]  }
 0xdea   :  { %1614 = vadd.xlane.f32.xlu0 %v1612_v45  ;;  %v1613_v46 = vmul.f32 %v5606_v34, %v5606_v34 }
 0xdee   :  { %1616 = vadd.xlane.f32.xlu0 %v1613_v46 }
 0xe77   :  { %v1615_v6 = vpop.xlane.xlu0 %1614 }
 0xe78   :  { %v1618_v7 = vmul.f32 0.0078125, %v1615_v6 }
 0xe7a   :  { %v1620_v10 = vadd.f32 1e-05, %v1618_v7 }
 0xe7b   :  { %v1617_v12 = vpop.xlane.xlu0 %1616 }
 0xe7c   :  { %4840 = vrsqrt.f32 %v1620_v10  ;;  %v1619_v15 = vmul.f32 0.0078125, %v1617_v12 }
 0xe7e   :  { %v1621_v16 = vadd.f32 1e-05, %v1619_v15 }
 0xe80   :  { %4842 = vrsqrt.f32 %v1621_v16 }
 0xe86   :  { %v4841_v17 = vpop.eup %4840 }
 0xe87   :  { %v1624_v18 = vmul.f32 %v4841_v17, %v1610_v14  ;;  %v4730_v17 = vld [vmem:[#allocation10 + $0xf4] ss:$12 sps:$4 sm:$0xff]  }
 0xe89   :  { %v1633_v22 = vmul.f32 %v3949_v19, %v1624_v18  ;;  %v4728_v18 = vld [vmem:[#allocation10 + $0xf0] ss:$12 sps:$4 sm:$0xff]  }
 0xe8a   :  { %v4843_v20 = vpop.eup %4842 }
 0xe8b   :  { %v1625_v21 = vmul.f32 %v4843_v20, %v5606_v34  ;;  %v1642_v25 = vadd.f32 %v3950_v23, %v1633_v22  ;;  %v4734_v20 = vld [vmem:[#allocation10 + $0x10c] ss:$12 sps:$4 sm:$0xff]   ;;  %v4735_v22 = vld [vmem:[#allocation10 + $0x110] ss:$12 sps:$4 sm:$0xff]  }
 0xe8d   :  { %v1634_v24 = vmul.f32 %v3949_v19, %v1625_v21  ;;  %v4731_v19 = vld [vmem:[#allocation10 + $0xf8] ss:$12 sps:$4 sm:$0xff]   ;;  %v4732_v21 = vld [vmem:[#allocation10 + $0x108] ss:$12 sps:$4 sm:$0xff]  }
 0xe8f   :  { %v1643_v11 = vadd.f32 %v3950_v23, %v1634_v24  ;;  %v4738_v23 = vld [vmem:[#allocation10 + $0x124] ss:$12 sps:$4 sm:$0xff]   ;;  %v4736_v24 = vld [vmem:[#allocation10 + $0x120] ss:$12 sps:$4 sm:$0xff]  }
 0xe91   :  { %v1644_v26 = vpack.c.bf16 %v1643_v11, %v1642_v25 }
 0xe93   :  { %1786 = vmatmul.mubr.bf16.vlgmr.msra.gmra.mrb[44].mxu1 %v1644_v26  ;;  %v4740_v26 = vld [vmem:[#allocation10 + $0x138] ss:$12 sps:$4 sm:$0xff]  }
 0xe94   :  { %2232 = vmatprep.mubr.bf16.mxu1 %v5137_v36  ;;  %2201 = vmatpush1.bf16.msra.mxu1 %v4720_v56 }
 0xe95   :  { %2202 = vmatprep.subr.bf16.mxu1 %v4726_v60 }
 0xe98   :  { %2203 = vmatpush1.bf16.msra.mxu1 %v4724_v63 }
 0xe99   :  { %2204 = vmatprep.subr.bf16.mxu1 %v4730_v17 }
 0xe9c   :  { %2205 = vmatpush1.bf16.msra.mxu1 %v4728_v18 }
 0xe9d   :  { %2206 = vmatprep.subr.bf16.mxu1 %v4734_v20 }
 0xea0   :  { %2207 = vmatpush1.bf16.msra.mxu1 %v4732_v21 }
 0xea1   :  { %2208 = vmatprep.subr.bf16.mxu1 %v4738_v23 }
 0xea4   :  { %2209 = vmatpush1.bf16.msra.mxu1 %v4736_v24 }
 0xf66   :  { %v1787_v8 = vpop.f32.mrb[44].mxu1 }
 0xf67   :  { %v1788_v59 = vadd.f32 %v1787_v8, %v1666_v43  ;;  %v1789_v1 = vpop.f32.mrb[45].mxu1 }
 0xf68   :  { %v1790_v2 = vadd.f32 %v1789_v1, %v1670_v4  ;;  %v1791_v32 = vpop.f32.mrb[46].mxu1 }
 0xf69   :  { %v1792_v14 = vadd.f32 %v1791_v32, %v1666_v43  ;;  %v1793_v33 = vpop.f32.mrb[47].mxu1  ;;  %v1796_v45 = vmax.f32 %v1788_v59, 0.0  ;;  %v4751_v43 = vld [vmem:[#allocation10 + $0x170] ss:$12 sps:$4 sm:$0xff]  }
 0xf6a   :  { %v1794_v34 = vadd.f32 %v1793_v33, %v1670_v4  ;;  %v1797_v35 = vmax.f32 %v1790_v2, 0.0  ;;  %v3984_v33 = vld [vmem:[%s5921_s14] ss:$0 sm:$0xff] }
 0xf6b   :  { %v1798_v46 = vmax.f32 %v1792_v14, 0.0 }
 0xf6c   :  { %v1799_v37 = vmax.f32 %v1794_v34, 0.0 }
 0xf6d   :  { %v1800_v38 = vpack.c.bf16 %v1798_v46, %v1796_v45 }
 0xf6e   :  { %v1801_v13 = vpack.c.bf16 %v1799_v37, %v1797_v35  ;;  %v3985_v37 = vld [vmem:[%s5922_s15] ss:$0 sm:$0xff] }
 0xf70   :  { %1969 = vmatprep.mubr.bf16.mxu0 %v1801_v13 }
 0xf71   :  { %1970 = vmatmul.mubr.bf16.vlgmr.msra.gmra.mrb[36].mxu0 %v1800_v38 }
 0xf72   :  { %4441 = vmatprep.mubr.msk.bf16.mxu0 %vm5136_vm0, %v5135_v0  ;;  %4426 = vmatpush3.bf16.msra.mxu0 %v4723_v58 }
 0xf73   :  { %4427 = vmatprep.subr.bf16.mxu0 %v5135_v0 }
 0xf76   :  { %4428 = vmatpush3.bf16.msra.mxu0 %v4727_v62 }
 0xf77   :  { %4429 = vmatprep.subr.bf16.mxu0 %v5135_v0 }
 0xf7a   :  { %4430 = vmatpush3.bf16.msra.mxu0 %v4731_v19 }
 0xf7b   :  { %4431 = vmatprep.subr.bf16.mxu0 %v5135_v0 }
 0xf7e   :  { %4432 = vmatpush3.bf16.msra.mxu0 %v4735_v22 }
 0xf7f   :  { %4433 = vmatprep.subr.bf16.mxu0 %v5135_v0 }
0x1044   :  { %v4182_v39 = vpop.f32.mrb[36].mxu0 }
0x1045   :  { %v4183_v41 = vpop.f32.mrb[37].mxu0 }
0x1046   :  { %v4184_v42 = vadd.f32 %v4183_v41, %v4182_v39  ;;  %v4185_v44 = vpop.f32.mrb[38].mxu0  ;;  %v3986_v41 = vld [vmem:[%s5912_s5 + $0x3] sm:$0x7] }
0x1047   :  { %v4186_v47 = vpop.f32.mrb[39].mxu0  ;;  %v2060_v62 = vrot.slane %v3986_v41, %v5413_v54 }
0x1048   :  { %v1972_v9 = vadd.f32 %v4184_v42, %v3967_v40  ;;  %v4187_v48 = vadd.f32 %v4186_v47, %v4185_v44  ;;  %v2064_v42 = vrot.slane %v3986_v41, %v5405_v50 }
0x104a   :  { %v1975_v51 = vadd.f32 %v4187_v48, %v3967_v40  ;;  %v1978_v53 = vadd.f32 %v1972_v9, %v1642_v25  ;;  %v4739_v25 = vld [vmem:[#allocation10 + $0x128] ss:$12 sps:$4 sm:$0xff]   ;;  %v2068_v9 = vrot.slane %v3986_v41, %v342_v52 }
0x104b   :  { %4434 = vmatpush3.bf16.msra.mxu0 %v4739_v25 }
0x104c   :  { %1980 = vadd.xlane.f32.xlu1 %v1978_v53  ;;  %v1979_v55 = vadd.f32 %v1975_v51, %v1643_v11  ;;  %v4742_v11 = vld [vmem:[#allocation10 + $0x13c] ss:$12 sps:$4 sm:$0xff]   ;;  %4435 = vmatprep.subr.bf16.mxu0 %v5135_v0 }
0x104d   :  { %2210 = vmatprep.subr.bf16.mxu1 %v4742_v11 }
0x104e   :  { %1982 = vadd.xlane.f32.xlu0 %v1979_v55  ;;  %2211 = vmatpush1.bf16.msra.mxu1 %v4740_v26 }
0x104f   :  { %4436 = vmatpush3.bf16.msra.mxu0 %v4743_v27  ;;  %2212 = vmatprep.subr.bf16.mxu1 %v4746_v61 }
0x1050   :  { %4437 = vmatprep.subr.bf16.mxu0 %v5135_v0 }
0x1052   :  { %2213 = vmatpush1.bf16.msra.mxu1 %v4744_v28 }
0x1053   :  { %4438 = vmatpush3.bf16.msra.mxu0 %v4747_v29  ;;  %2214 = vmatprep.subr.bf16.mxu1 %v4750_v30 }
0x1054   :  { %4439 = vmatprep.subr.bf16.mxu0 %v5135_v0 }
0x1056   :  { %2215 = vmatpush1.bf16.msra.mxu1 %v4748_v31 }
0x1057   :  { %4440 = vmatpush3.bf16.msra.mxu0 %v4751_v43  ;;  %4445 = vmatprep.subr.bf16.mxu1 %v5135_v0 }
0x1058   :  { %4469 = vmatprep.subr.bf16.mxu0 %v5135_v0 }
0x10d9   :  { %v1981_v3 = vpop.xlane.xlu1 %1980 }
0x10da   :  { %v1984_v5 = vmul.f32 0.0078125, %v1981_v3 }
0x10db   :  { %v1983_v6 = vpop.xlane.xlu0 %1982 }
0x10dc   :  { %v1986_v7 = vsub.f32 %v1978_v53, %v1984_v5  ;;  %v1985_v10 = vmul.f32 0.0078125, %v1983_v6 }
0x10de   :  { %v1987_v12 = vsub.f32 %v1979_v55, %v1985_v10  ;;  %v1988_v15 = vmul.f32 %v1986_v7, %v1986_v7 }
0x10e0   :  { %1990 = vadd.xlane.f32.xlu1 %v1988_v15  ;;  %v1989_v16 = vmul.f32 %v1987_v12, %v1987_v12 }
0x10e2   :  { %1992 = vadd.xlane.f32.xlu0 %v1989_v16 }
0x116d   :  { %v1991_v4 = vpop.xlane.xlu1 %1990 }
0x116e   :  { %v1994_v8 = vmul.f32 0.0078125, %v1991_v4 }
0x116f   :  { %v1993_v59 = vpop.xlane.xlu0 %1992 }
0x1170   :  { %v1996_v1 = vadd.f32 1e-05, %v1994_v8  ;;  %v1995_v2 = vmul.f32 0.0078125, %v1993_v59 }
0x1172   :  { %4844 = vrsqrt.f32 %v1996_v1  ;;  %v1997_v32 = vadd.f32 1e-05, %v1995_v2 }
0x1174   :  { %4846 = vrsqrt.f32 %v1997_v32 }
0x117c   :  { %v4845_v14 = vpop.eup %4844 }
0x117d   :  { %v2000_v34 = vmul.f32 %v4845_v14, %v1986_v7 }
0x117e   :  { %v4847_v45 = vpop.eup %4846 }
0x117f   :  { %v2001_v46 = vmul.f32 %v4847_v45, %v1987_v12  ;;  %v2009_v35 = vmul.f32 %v3984_v33, %v2000_v34 }
0x1181   :  { %v2010_v38 = vmul.f32 %v3984_v33, %v2001_v46  ;;  %v5644_v13 = vadd.f32 %v3985_v37, %v2009_v35 }
0x1183   :  { %v5646_v39 = vadd.f32 %v3985_v37, %v2010_v38 }
0x1185   :  { %v2020_v40 = vpack.c.bf16 %v5646_v39, %v5644_v13 }
0x1187   :  { %2233 = vmatmul.mubr.bf16.vlgmr.msra.gmra.mrb[48].mxu1 %v2020_v40  ;;  %4442 = vmatmul.mubr.bf16.vlgmr.msra.gmra.mrb[40].mxu0 %v2020_v40 }
0x1188   :  { %4447 = vmatprep.mubr.msk.bf16.mxu1 %vm5136_vm0, %v5135_v0  ;;  %4471 = vmatprep.mubr.msk.bf16.mxu0 %vm5136_vm0, %v5135_v0 }
0x125a   :  { %v2234_v44 = vpop.f32.mrb[48].mxu1  ;;  %v2277_v47 = vpop.f32.mrb[40].mxu0 }
0x125b   :  { %v2236_v48 = vpop.f32.mrb[49].mxu1  ;;  %v4443_v51 = vpop.f32.mrb[41].mxu0  ;;  %v2235_v49 = vadd.f32 %v2234_v44, %v2060_v62  ;;  %v2278_v7 = vadd.f32 %v2277_v47, %v2068_v9 }
0x125c   :  { %v2237_v53 = vadd.f32 %v2236_v48, %v2064_v42  ;;  %v2238_v55 = vpop.f32.mrb[50].mxu1  ;;  %v2280_v56 = vpop.f32.mrb[42].mxu0 }
0x125d   :  { %v5660_v57 = vadd.f32 %v2280_v56, %v2068_v9  ;;  %v2240_v58 = vpop.f32.mrb[51].mxu1  ;;  %v4444_v60 = vpop.f32.mrb[43].mxu0  ;;  %v5670_v6 = vpack.c.bf16 %v2235_v49, %v2235_v49  ;;  %v2239_v12 = vadd.f32 %v2238_v55, %v2060_v62  ;;  %v5679_v15 = vpack.c.bf16 %v2278_v7, %v2278_v7 }
0x125e   :  { %v5663_v63 = vpack.c.bf16 %v2237_v53, %v2237_v53  ;;  %v2241_v3 = vadd.f32 %v2240_v58, %v2064_v42 }
0x125f   :  { %v5681_v16 = vpack.c.bf16 %v2239_v12, %v2239_v12  ;;  %v2424_v17 = vsel %vm700_vm2, %v5679_v15, 0  ;;  %v5706_v46 = vpack.c.bf16 %v5660_v57, %v5660_v57 }
0x1260   :  { %v2306_v5 = vsel %vm577_vm1, %v5663_v63, 0  ;;  %v5668_v52 = vpack.c.bf16 %v2241_v3, %v2241_v3 }
0x1261   :  { %4446 = vmatpush3.bf16.xpose.msra.mxu1 %v2306_v5  ;;  %v2470_v40 = vsel %vm700_vm2, %v5706_v46, 0 }
0x1262   :  { %4451 = vmatprep.subr.bf16.mxu1 %v5135_v0  ;;  %v2352_v10 = vsel %vm577_vm1, %v5668_v52, 0 }
0x1268   :  { %4448 = vmatmul.mubr.msk.bf16.vlgmr.msra.gmra.mrb[52].mxu1 %vm577_vm1, %v5670_v6 }
0x1269   :  { %4452 = vmatpush3.bf16.xpose.msra.mxu1 %v2352_v10  ;;  %4453 = vmatprep.mubr.msk.bf16.mxu1 %vm5136_vm0, %v5135_v0 }
0x126a   :  { %4457 = vmatprep.subr.bf16.mxu1 %v5135_v0 }
0x1270   :  { %4454 = vmatmul.mubr.msk.bf16.vlgmr.msra.gmra.mrb[56].mxu1 %vm577_vm1, %v5681_v16 }
0x1271   :  { %4458 = vmatpush3.bf16.msra.mxu1 %v2424_v17  ;;  %4459 = vmatprep.mubr.msk.bf16.mxu1 %vm5136_vm0, %v5135_v0 }
0x1272   :  { %4463 = vmatprep.subr.bf16.mxu1 %v5135_v0 }
0x133b   :  { %v2342_v18 = vpop.f32.mrb[52].mxu1 }
0x133c   :  { %v2394_v19 = vmul.f32 0.17677669, %v2342_v18  ;;  %v4449_v20 = vpop.f32.mrb[53].mxu1 }
0x133d   :  { %v2345_v21 = vpop.f32.mrb[54].mxu1 }
0x133e   :  { %v4450_v22 = vpop.f32.mrb[55].mxu1  ;;  %v2396_v23 = vsel %vm672_vm3, %v2394_v19, -inf }
0x133f   :  { %2397 = vmax.xlane.f32.xlu1 %v2396_v23 }
0x1343   :  { %v2388_v24 = vpop.f32.mrb[56].mxu1 }
0x1344   :  { %v2395_v25 = vmul.f32 0.17677669, %v2388_v24  ;;  %v4455_v11 = vpop.f32.mrb[57].mxu1 }
0x1345   :  { %v2391_v26 = vpop.f32.mrb[58].mxu1 }
0x1346   :  { %v4456_v27 = vpop.f32.mrb[59].mxu1  ;;  %v2399_v61 = vsel %vm672_vm3, %v2395_v25, -inf }
0x1347   :  { %2400 = vmax.xlane.f32.xlu0 %v2399_v61 }
0x13cc   :  { %v2398_v28 = vpop.xlane.xlu1 %2397 }
0x13cd   :  { %v2402_v29 = vsub.f32 %v2394_v19, %v2398_v28 }
0x13cf   :  { %v2404_v30 = vmul.f32 1.442695, %v2402_v29 }
0x13d1   :  { %4848 = vpow2.f32 %v2404_v30 }
0x13d4   :  { %v2401_v31 = vpop.xlane.xlu0 %2400 }
0x13d5   :  { %v2403_v43 = vsub.f32 %v2395_v25, %v2401_v31 }
0x13d7   :  { %v2406_v4 = vmul.f32 1.442695, %v2403_v43 }
0x13d9   :  { %4850 = vpow2.f32 %v2406_v4 }
0x13db   :  { %v4849_v8 = vpop.eup %4848 }
0x13dc   :  { %v2408_v59 = vsel %vm672_vm3, %v4849_v8, 0.0 }
0x13dd   :  { %2409 = vadd.xlane.f32.xlu1 %v2408_v59 }
0x13e3   :  { %v4851_v1 = vpop.eup %4850 }
0x13e4   :  { %v2411_v2 = vsel %vm672_vm3, %v4851_v1, 0.0 }
0x13e5   :  { %2412 = vadd.xlane.f32.xlu0 %v2411_v2 }
0x13ee   :  { %2514 = vrot.lane.b32.xlu1 %v5663_v63, %s5138_s23 }
0x13f2   :  { %2512 = vrot.lane.b32.xlu1 %v5670_v6, %s5138_s23 }
0x13f6   :  { %2562 = vrot.lane.b32.xlu1 %v5681_v16, %s5138_s23 }
0x13fb   :  { %2564 = vrot.lane.b32.xlu0 %v5668_v52, %s5138_s23 }
0x146a   :  { %v2410_v32 = vpop.xlane.xlu1 %2409 }
0x146b   :  { %4852 = vrcp.f32 %v2410_v32 }
0x146e   :  { %v2515_v14 = vpop.permute.xlu1 %2514 }
0x146f   :  { %v2520_v33 = vsel %vm577_vm1, %v2515_v14, 0 }
0x1470   :  { %4470 = vmatpush3.bf16.xpose.msra.mxu0 %v2520_v33 }
0x1471   :  { %4481 = vmatprep.subr.bf16.mxu0 %v5135_v0 }
0x1472   :  { %v2413_v34 = vpop.xlane.xlu0 %2412  ;;  %v2513_v37 = vpop.permute.xlu1 %2512 }
0x1473   :  { %4854 = vrcp.f32 %v2413_v34 }
0x1475   :  { %v4853_v45 = vpop.eup %4852 }
0x1476   :  { %v2415_v35 = vmul.f32 %v4853_v45, %v4849_v8  ;;  %v2565_v44 = vpop.permute.xlu0 %2564  ;;  %v2563_v48 = vpop.permute.xlu1 %2562 }
0x1477   :  { %4472 = vmatmul.mubr.msk.bf16.vlgmr.msra.gmra.mrb[44].mxu0 %vm577_vm1, %v2513_v37  ;;  %v2570_v9 = vsel %vm577_vm1, %v2565_v44, 0 }
0x1478   :  { %v2418_v38 = vpack.c.bf16 %v2415_v35, %v2415_v35  ;;  %4483 = vmatprep.mubr.msk.bf16.mxu0 %vm5136_vm0, %v5135_v0 }
0x147a   :  { %4460 = vmatmul.mubr.msk.bf16.vlgmr.msra.gmra.mrb[60].mxu1 %vm672_vm3, %v2418_v38 }
0x147b   :  { %4464 = vmatpush3.bf16.msra.mxu1 %v2470_v40  ;;  %4465 = vmatprep.mubr.msk.bf16.mxu1 %vm5136_vm0, %v5135_v0 }
0x147c   :  { %4475 = vmatprep.subr.bf16.mxu1 %v5135_v0 }
0x147d   :  { %v4855_v41 = vpop.eup %4854 }
0x147e   :  { %v2417_v42 = vmul.f32 %v4855_v41, %v4851_v1 }
0x1480   :  { %v2419_v47 = vpack.c.bf16 %v2417_v42, %v2417_v42 }
0x1482   :  { %4466 = vmatmul.mubr.msk.bf16.vlgmr.msra.gmra.mrb[64].mxu1 %vm672_vm3, %v2419_v47 }
0x1483   :  { %4477 = vmatprep.mubr.msk.bf16.mxu1 %vm5136_vm0, %v5135_v0 }
0x1484   :  { %4476 = vmatpush3.bf16.xpose.msra.mxu1 %v2570_v9 }
0x1485   :  { %4487 = vmatprep.subr.bf16.mxu1 %v5135_v0 }
0x148b   :  { %4478 = vmatmul.mubr.msk.bf16.vlgmr.msra.gmra.mrb[68].mxu1 %vm577_vm1, %v2563_v48 }
0x148c   :  { %4489 = vmatprep.mubr.msk.bf16.mxu1 %vm5136_vm0, %v5135_v0 }
0x154a   :  { %v2556_v51 = vpop.f32.mrb[44].mxu0 }
0x154b   :  { %v2612_v53 = vmul.f32 0.17677669, %v2556_v51  ;;  %v4473_v55 = vpop.f32.mrb[45].mxu0 }
0x154c   :  { %v2559_v56 = vpop.f32.mrb[46].mxu0 }
0x154d   :  { %v5725_v57 = vpop.f32.mrb[60].mxu1  ;;  %v4474_v58 = vpop.f32.mrb[47].mxu0  ;;  %v2614_v60 = vsel %vm672_vm3, %v2612_v53, -inf }
0x154e   :  { %2615 = vmax.xlane.f32.xlu1 %v2614_v60  ;;  %v4461_v62 = vpop.f32.mrb[61].mxu1 }
0x154f   :  { %v2463_v3 = vpop.f32.mrb[62].mxu1 }
0x1550   :  { %v4462_v5 = vpop.f32.mrb[63].mxu1 }
0x1555   :  { %v5728_v49 = vpop.f32.mrb[64].mxu1 }
0x1556   :  { %v4467_v7 = vpop.f32.mrb[65].mxu1 }
0x1557   :  { %v2509_v10 = vpop.f32.mrb[66].mxu1 }
0x1558   :  { %v4468_v12 = vpop.f32.mrb[67].mxu1 }
0x155e   :  { %v2606_v17 = vpop.f32.mrb[68].mxu1 }
0x155f   :  { %v2613_v18 = vmul.f32 0.17677669, %v2606_v17  ;;  %v4479_v19 = vpop.f32.mrb[69].mxu1  ;;  %2638 = vrot.lane.b32.xlu1 %v5679_v15, %s5138_s23 }
0x1560   :  { %v2609_v20 = vpop.f32.mrb[70].mxu1 }
0x1561   :  { %v4480_v21 = vpop.f32.mrb[71].mxu1  ;;  %v2617_v22 = vsel %vm672_vm3, %v2613_v18, -inf }
0x1562   :  { %2618 = vmax.xlane.f32.xlu0 %v2617_v22 }
0x1563   :  { %2736 = vrot.lane.b32.xlu1 %v5663_v63, %s5944_s22 }
0x1567   :  { %2786 = vrot.lane.b32.xlu1 %v5668_v52, %s5944_s22 }
0x156b   :  { %2734 = vrot.lane.b32.xlu1 %v5670_v6, %s5944_s22 }
0x15db   :  { %v2616_v23 = vpop.xlane.xlu1 %2615 }
0x15dc   :  { %v2620_v24 = vsub.f32 %v2612_v53, %v2616_v23 }
0x15de   :  { %v2622_v25 = vmul.f32 1.442695, %v2620_v24 }
0x15df   :  { %v2639_v11 = vpop.permute.xlu1 %2638 }
0x15e0   :  { %4856 = vpow2.f32 %v2622_v25  ;;  %v2644_v26 = vsel %vm700_vm2, %v2639_v11, 0 }
0x15e1   :  { %4482 = vmatpush3.bf16.msra.mxu0 %v2644_v26 }
0x15e2   :  { %4493 = vmatprep.subr.bf16.mxu0 %v5135_v0 }
0x15e3   :  { %v2737_v59 = vpop.permute.xlu1 %2736 }
0x15e4   :  { %v2742_v32 = vsel %vm577_vm1, %v2737_v59, 0 }
0x15e7   :  { %v2787_v14 = vpop.permute.xlu1 %2786 }
0x15e8   :  { %v2792_v41 = vsel %vm577_vm1, %v2787_v14, 0 }
0x15ea   :  { %v4857_v27 = vpop.eup %4856 }
0x15eb   :  { %v2626_v61 = vsel %vm672_vm3, %v4857_v27, 0.0  ;;  %v2735_v34 = vpop.permute.xlu1 %2734 }
0x15ec   :  { %2627 = vadd.xlane.f32.xlu0 %v2626_v61 }
0x15ef   :  { %v2619_v28 = vpop.xlane.xlu0 %2618 }
0x15f0   :  { %v2621_v29 = vsub.f32 %v2613_v18, %v2619_v28 }
0x15f2   :  { %v2624_v30 = vmul.f32 1.442695, %v2621_v29 }
0x15f4   :  { %4858 = vpow2.f32 %v2624_v30 }
0x15fe   :  { %v4859_v31 = vpop.eup %4858 }
0x15ff   :  { %v2629_v43 = vsel %vm672_vm3, %v4859_v31, 0.0 }
0x1600   :  { %2630 = vadd.xlane.f32.xlu0 %v2629_v43 }
0x1616   :  { %2686 = vrot.lane.b32.xlu0 %v5706_v46, %s5138_s23 }
0x161a   :  { %2784 = vrot.lane.b32.xlu0 %v5681_v16, %s5944_s22 }
0x1679   :  { %v2628_v4 = vpop.xlane.xlu0 %2627 }
0x167a   :  { %4860 = vrcp.f32 %v2628_v4 }
0x1684   :  { %v4861_v8 = vpop.eup %4860 }
0x1685   :  { %v2633_v1 = vmul.f32 %v4861_v8, %v4857_v27 }
0x1687   :  { %v2636_v2 = vpack.c.bf16 %v2633_v1, %v2633_v1 }
0x1689   :  { %4484 = vmatmul.mubr.msk.bf16.vlgmr.msra.gmra.mrb[48].mxu0 %vm672_vm3, %v2636_v2 }
0x168a   :  { %4494 = vmatpush3.bf16.xpose.msra.mxu0 %v2742_v32  ;;  %4495 = vmatprep.mubr.msk.bf16.mxu0 %vm5136_vm0, %v5135_v0 }
0x168b   :  { %4505 = vmatprep.subr.bf16.mxu0 %v5135_v0 }
0x168d   :  { %v2631_v33 = vpop.xlane.xlu0 %2630 }
0x168e   :  { %4862 = vrcp.f32 %v2631_v33 }
0x1691   :  { %v2687_v45 = vpop.permute.xlu0 %2686  ;;  %4496 = vmatmul.mubr.msk.bf16.vlgmr.msra.gmra.mrb[52].mxu0 %vm577_vm1, %v2735_v34 }
0x1692   :  { %v2692_v35 = vsel %vm700_vm2, %v2687_v45, 0  ;;  %4507 = vmatprep.mubr.msk.bf16.mxu0 %vm5136_vm0, %v5135_v0 }
0x1693   :  { %4488 = vmatpush3.bf16.msra.mxu1 %v2692_v35 }
0x1694   :  { %4499 = vmatprep.subr.bf16.mxu1 %v5135_v0 }
0x1695   :  { %v2785_v42 = vpop.permute.xlu0 %2784 }
0x1698   :  { %v4863_v37 = vpop.eup %4862 }
0x1699   :  { %v2635_v38 = vmul.f32 %v4863_v37, %v4859_v31 }
0x169b   :  { %v2637_v40 = vpack.c.bf16 %v2635_v38, %v2635_v38 }
0x169d   :  { %4490 = vmatmul.mubr.msk.bf16.vlgmr.msra.gmra.mrb[72].mxu1 %vm672_vm3, %v2637_v40 }
0x169e   :  { %4500 = vmatpush3.bf16.xpose.msra.mxu1 %v2792_v41  ;;  %4501 = vmatprep.mubr.msk.bf16.mxu1 %vm5136_vm0, %v5135_v0 }
0x169f   :  { %4511 = vmatprep.subr.bf16.mxu1 %v5135_v0 }
0x16a5   :  { %4502 = vmatmul.mubr.msk.bf16.vlgmr.msra.gmra.mrb[76].mxu1 %vm577_vm1, %v2785_v42 }
0x16a6   :  { %4513 = vmatprep.mubr.msk.bf16.mxu1 %vm5136_vm0, %v5135_v0 }
0x175c   :  { %v5765_v44 = vpop.f32.mrb[48].mxu0 }
0x175d   :  { %v4485_v47 = vpop.f32.mrb[49].mxu0 }
0x175e   :  { %v2683_v9 = vpop.f32.mrb[50].mxu0 }
0x175f   :  { %v4486_v48 = vpop.f32.mrb[51].mxu0 }
0x1764   :  { %v2778_v51 = vpop.f32.mrb[52].mxu0 }
0x1765   :  { %v2834_v53 = vmul.f32 0.17677669, %v2778_v51  ;;  %v4497_v55 = vpop.f32.mrb[53].mxu0 }
0x1766   :  { %v2781_v56 = vpop.f32.mrb[54].mxu0 }
0x1767   :  { %v4498_v58 = vpop.f32.mrb[55].mxu0  ;;  %v2836_v60 = vsel %vm672_vm3, %v2834_v53, -inf }
0x1768   :  { %2837 = vmax.xlane.f32.xlu1 %v2836_v60 }
0x1770   :  { %v5768_v62 = vpop.f32.mrb[72].mxu1 }
0x1771   :  { %v4617_v3 = vpack.i.bf16 %v5768_v62, %v5765_v44  ;;  %v4491_v5 = vpop.f32.mrb[73].mxu1 }
0x1772   :  { %v2731_v7 = vpop.f32.mrb[74].mxu1 }
0x1773   :  { %v4492_v10 = vpop.f32.mrb[75].mxu1 }
0x1778   :  { %v2828_v12 = vpop.f32.mrb[76].mxu1 }
0x1779   :  { %v2835_v17 = vmul.f32 0.17677669, %v2828_v12  ;;  %v4503_v18 = vpop.f32.mrb[77].mxu1  ;;  %2860 = vrot.lane.b32.xlu1 %v5679_v15, %s5944_s22 }
0x177a   :  { %v2831_v19 = vpop.f32.mrb[78].mxu1 }
0x177b   :  { %v4504_v20 = vpop.f32.mrb[79].mxu1  ;;  %v2839_v21 = vsel %vm672_vm3, %v2835_v17, -inf }
0x177c   :  { %2840 = vmax.xlane.f32.xlu0 %v2839_v21 }
0x177d   :  { %2958 = vrot.lane.b32.xlu1 %v5663_v63, %s5139_s21 }
0x1781   :  { %3008 = vrot.lane.b32.xlu1 %v5668_v52, %s5139_s21 }
0x1785   :  { %2956 = vrot.lane.b32.xlu1 %v5670_v6, %s5139_s21 }
0x17f5   :  { %v2838_v22 = vpop.xlane.xlu1 %2837 }
0x17f6   :  { %v2842_v23 = vsub.f32 %v2834_v53, %v2838_v22 }
0x17f8   :  { %v2844_v24 = vmul.f32 1.442695, %v2842_v23 }
0x17f9   :  { %v2861_v25 = vpop.permute.xlu1 %2860 }
0x17fa   :  { %4864 = vpow2.f32 %v2844_v24  ;;  %v2866_v11 = vsel %vm700_vm2, %v2861_v25, 0 }
0x17fb   :  { %4506 = vmatpush3.bf16.msra.mxu0 %v2866_v11 }
0x17fc   :  { %4517 = vmatprep.subr.bf16.mxu0 %v5135_v0 }
0x17fd   :  { %v2959_v31 = vpop.permute.xlu1 %2958 }
0x17fe   :  { %v2964_v8 = vsel %vm577_vm1, %v2959_v31, 0 }
0x1801   :  { %v3009_v59 = vpop.permute.xlu1 %3008 }
0x1802   :  { %v3014_v45 = vsel %vm577_vm1, %v3009_v59, 0  ;;  %v4755_v59 = vld [vmem:[#allocation11 + $0x58] sm:$0xff]  }
0x1804   :  { %v4865_v26 = vpop.eup %4864 }
0x1805   :  { %v2848_v27 = vsel %vm672_vm3, %v4865_v26, 0.0 }
0x1806   :  { %2849 = vadd.xlane.f32.xlu0 %v2848_v27 }
0x1809   :  { %v2841_v63 = vpop.xlane.xlu0 %2840 }
0x180a   :  { %v2843_v61 = vsub.f32 %v2835_v17, %v2841_v63 }
0x180c   :  { %v2846_v52 = vmul.f32 1.442695, %v2843_v61 }
0x180e   :  { %4866 = vpow2.f32 %v2846_v52 }
0x1818   :  { %v4867_v28 = vpop.eup %4866 }
0x1819   :  { %v2851_v6 = vsel %vm672_vm3, %v4867_v28, 0.0 }
0x181a   :  { %2852 = vadd.xlane.f32.xlu0 %v2851_v6 }
0x1830   :  { %2908 = vrot.lane.b32.xlu0 %v5706_v46, %s5944_s22 }
0x1834   :  { %3006 = vrot.lane.b32.xlu0 %v5681_v16, %s5139_s21  ;;  %v2957_v16 = vpop.permute.xlu1 %2956 }
0x1893   :  { %v2850_v29 = vpop.xlane.xlu0 %2849 }
0x1894   :  { %4868 = vrcp.f32 %v2850_v29 }
0x189e   :  { %v4869_v30 = vpop.eup %4868 }
0x189f   :  { %v2855_v43 = vmul.f32 %v4869_v30, %v4865_v26 }
0x18a1   :  { %v2858_v4 = vpack.c.bf16 %v2855_v43, %v2855_v43 }
0x18a3   :  { %4508 = vmatmul.mubr.msk.bf16.vlgmr.msra.gmra.mrb[56].mxu0 %vm672_vm3, %v2858_v4  ;;  %v4753_v4 = vld [vmem:[#allocation11 + $0x48] sm:$0xff]  }
0x18a4   :  { %4518 = vmatpush3.bf16.xpose.msra.mxu0 %v2964_v8  ;;  %4519 = vmatprep.mubr.msk.bf16.mxu0 %vm5136_vm0, %v5135_v0  ;;  %v4754_v8 = vld [vmem:[#allocation11 + $0x50] sm:$0xff]  }
0x18a5   :  { %4529 = vmatprep.subr.bf16.mxu0 %v5135_v0 }
0x18a7   :  { %v2853_v1 = vpop.xlane.xlu0 %2852 }
0x18a8   :  { %4870 = vrcp.f32 %v2853_v1  ;;  %v4756_v1 = vld [vmem:[#allocation11 + $0x60] sm:$0xff]  }
0x18ab   :  { %v2909_v2 = vpop.permute.xlu0 %2908  ;;  %4520 = vmatmul.mubr.msk.bf16.vlgmr.msra.gmra.mrb[60].mxu0 %vm577_vm1, %v2957_v16  ;;  %v4757_v16 = vld [vmem:[#allocation11 + $0x68] sm:$0xff]  }
0x18ac   :  { %v2914_v32 = vsel %vm700_vm2, %v2909_v2, 0  ;;  %4531 = vmatprep.mubr.msk.bf16.mxu0 %vm5136_vm0, %v5135_v0 }
0x18ad   :  { %4512 = vmatpush3.bf16.msra.mxu1 %v2914_v32 }
0x18ae   :  { %4523 = vmatprep.subr.bf16.mxu1 %v5135_v0 }
0x18af   :  { %v3007_v35 = vpop.permute.xlu0 %3006 }
0x18b2   :  { %v4871_v14 = vpop.eup %4870 }
0x18b3   :  { %v2857_v33 = vmul.f32 %v4871_v14, %v4867_v28 }
0x18b5   :  { %v2859_v34 = vpack.c.bf16 %v2857_v33, %v2857_v33 }
0x18b7   :  { %4514 = vmatmul.mubr.msk.bf16.vlgmr.msra.gmra.mrb[80].mxu1 %vm672_vm3, %v2859_v34  ;;  %v4759_v34 = vld [vmem:[#allocation11 + $0x78] sm:$0xff]  }
0x18b8   :  { %4524 = vmatpush3.bf16.xpose.msra.mxu1 %v3014_v45  ;;  %4525 = vmatprep.mubr.msk.bf16.mxu1 %vm5136_vm0, %v5135_v0 }
0x18b9   :  { %4535 = vmatprep.subr.bf16.mxu1 %v5135_v0 }
0x18bf   :  { %4526 = vmatmul.mubr.msk.bf16.vlgmr.msra.gmra.mrb[84].mxu1 %vm577_vm1, %v3007_v35 }
0x18c0   :  { %4537 = vmatprep.mubr.msk.bf16.mxu1 %vm5136_vm0, %v5135_v0 }
0x1976   :  { %v2902_v37 = vpop.f32.mrb[56].mxu0 }
0x1977   :  { %v4509_v38 = vpop.f32.mrb[57].mxu0 }
0x1978   :  { %v2905_v40 = vpop.f32.mrb[58].mxu0 }
0x1979   :  { %v4510_v41 = vpop.f32.mrb[59].mxu0 }
0x197e   :  { %v3000_v42 = vpop.f32.mrb[60].mxu0 }
0x197f   :  { %v3056_v47 = vmul.f32 0.17677669, %v3000_v42  ;;  %v4521_v9 = vpop.f32.mrb[61].mxu0 }
0x1980   :  { %v3003_v48 = vpop.f32.mrb[62].mxu0 }
0x1981   :  { %v4522_v51 = vpop.f32.mrb[63].mxu0  ;;  %v3058_v53 = vsel %vm672_vm3, %v3056_v47, -inf }
0x1982   :  { %3059 = vmax.xlane.f32.xlu1 %v3058_v53 }
0x198a   :  { %v2950_v55 = vpop.f32.mrb[80].mxu1 }
0x198b   :  { %v4622_v56 = vpack.i.bf16 %v2950_v55, %v2902_v37  ;;  %v4515_v58 = vpop.f32.mrb[81].mxu1 }
0x198c   :  { %v2953_v60 = vpop.f32.mrb[82].mxu1 }
0x198d   :  { %v4516_v5 = vpop.f32.mrb[83].mxu1 }
0x1992   :  { %v3050_v7 = vpop.f32.mrb[84].mxu1 }
0x1993   :  { %v3057_v10 = vmul.f32 0.17677669, %v3050_v7  ;;  %v4527_v12 = vpop.f32.mrb[85].mxu1  ;;  %3082 = vrot.lane.b32.xlu1 %v5679_v15, %s5139_s21 }
0x1994   :  { %v3053_v17 = vpop.f32.mrb[86].mxu1 }
0x1995   :  { %v4528_v18 = vpop.f32.mrb[87].mxu1  ;;  %v3061_v19 = vsel %vm672_vm3, %v3057_v10, -inf }
0x1996   :  { %3062 = vmax.xlane.f32.xlu0 %v3061_v19  ;;  %v4034_v18 = vld [vmem:[%s5914_s7 + $0x1] ss:$0 sm:$0xff] }
0x1997   :  { %4618 = vrot.lane.b32.xlu1 %v4617_v3, %s5139_s21 }
0x199b   :  { %4623 = vrot.lane.b32.xlu1 %v4622_v56, %s5944_s22 }
0x1a0f   :  { %v3060_v20 = vpop.xlane.xlu1 %3059 }
0x1a10   :  { %v3064_v21 = vsub.f32 %v3056_v47, %v3060_v20 }
0x1a12   :  { %v3066_v22 = vmul.f32 1.442695, %v3064_v21 }
0x1a13   :  { %v3083_v23 = vpop.permute.xlu1 %3082 }
0x1a14   :  { %4872 = vpow2.f32 %v3066_v22  ;;  %v3088_v24 = vsel %vm700_vm2, %v3083_v23, 0 }
0x1a15   :  { %4530 = vmatpush3.bf16.msra.mxu0 %v3088_v24 }
0x1a16   :  { %4541 = vmatprep.subr.bf16.mxu0 %v5135_v0 }
0x1a17   :  { %v4619_v41 = vpop.permute.xlu1 %4618 }
0x1a18   :  { %v4621_v47 = vunpack.i.h.bf16 %v4619_v41  ;;  %v4620_v9 = vunpack.i.l.bf16 %v4619_v41 }
0x1a1a   :  { %v3203_v55 = vsel %vm577_vm1, %v5728_v49, %v4621_v47  ;;  %v3202_v56 = vsel %vm577_vm1, %v5725_v57, %v4620_v9 }
0x1a1b   :  { %v4624_v42 = vpop.permute.xlu1 %4623 }
0x1a1c   :  { %v4626_v48 = vunpack.i.h.bf16 %v4624_v42  ;;  %v4625_v51 = vunpack.i.l.bf16 %v4624_v42 }
0x1a1e   :  { %v4873_v15 = vpop.eup %4872  ;;  %v3205_v5 = vsel %vm1482_vm4, %v3203_v55, %v4626_v48  ;;  %v3204_v7 = vsel %vm1482_vm4, %v3202_v56, %v4625_v51  ;;  %v4044_v55 = vld [vmem:[%s5915_s8 + $0x1] ss:$0 sm:$0xff] }
0x1a1f   :  { %v3070_v25 = vsel %vm672_vm3, %v4873_v15, 0.0 }
0x1a20   :  { %3071 = vadd.xlane.f32.xlu0 %v3070_v25  ;;  %v4762_v25 = vld [vmem:[#allocation13 + $0x84] ss:$8 sps:$4 sm:$0xff]  }
0x1a23   :  { %v3063_v11 = vpop.xlane.xlu0 %3062 }
0x1a24   :  { %v3065_v26 = vsub.f32 %v3057_v10, %v3063_v11  ;;  %v4765_v11 = vld [vmem:[#allocation13 + $0x94] ss:$8 sps:$4 sm:$0xff]  }
0x1a26   :  { %v3068_v44 = vmul.f32 1.442695, %v3065_v26  ;;  %v4763_v26 = vld [vmem:[#allocation13 + $0x90] ss:$8 sps:$4 sm:$0xff]  }
0x1a28   :  { %4874 = vpow2.f32 %v3068_v44 }
0x1a32   :  { %v4875_v62 = vpop.eup %4874 }
0x1a33   :  { %v3073_v3 = vsel %vm672_vm3, %v4875_v62, 0.0 }
0x1a34   :  { %3074 = vadd.xlane.f32.xlu0 %v3073_v3 }
0x1a4a   :  { %3130 = vrot.lane.b32.xlu0 %v5706_v46, %s5139_s21  ;;  %v4752_v46 = vld [vmem:[#allocation11 + $0x40] sm:$0xff]  }
0x1aad   :  { %v3072_v27 = vpop.xlane.xlu0 %3071 }
0x1aae   :  { %4876 = vrcp.f32 %v3072_v27 }
0x1ab8   :  { %v4877_v63 = vpop.eup %4876 }
0x1ab9   :  { %v3077_v61 = vmul.f32 %v4877_v63, %v4873_v15  ;;  %v4760_v15 = vld [vmem:[#allocation13 + $0x80] ss:$8 sps:$4 sm:$0xff]  }
0x1abb   :  { %v3080_v52 = vpack.c.bf16 %v3077_v61, %v3077_v61 }
0x1abd   :  { %4532 = vmatmul.mubr.msk.bf16.vlgmr.msra.gmra.mrb[64].mxu0 %vm672_vm3, %v3080_v52  ;;  %v4768_v52 = vld [vmem:[#allocation13 + $0xa4] ss:$8 sps:$4 sm:$0xff]  }
0x1abe   :  { %4557 = vmatprep.mubr.msk.bf16.mxu0 %vm5136_vm0, %v5135_v0  ;;  %4542 = vmatpush3.bf16.msra.mxu0 %v4752_v46  ;;  %v4775_v46 = vld [vmem:[#allocation13 + $0xd0] ss:$8 sps:$4 sm:$0xff]  }
0x1abf   :  { %4543 = vmatprep.subr.bf16.mxu0 %v5135_v0 }
0x1ac1   :  { %v3075_v28 = vpop.xlane.xlu0 %3074 }
0x1ac2   :  { %4878 = vrcp.f32 %v3075_v28  ;;  %4544 = vmatpush3.bf16.msra.mxu0 %v4753_v4  ;;  %v4766_v28 = vld [vmem:[#allocation13 + $0xa0] ss:$8 sps:$4 sm:$0xff]   ;;  %v4780_v4 = vld [vmem:[#allocation13 + $0xe4] ss:$8 sps:$4 sm:$0xff]  }
0x1ac3   :  { %4545 = vmatprep.subr.bf16.mxu0 %v5135_v0 }
0x1ac5   :  { %v3131_v6 = vpop.permute.xlu0 %3130 }
0x1ac6   :  { %v3136_v29 = vsel %vm700_vm2, %v3131_v6, 0  ;;  %4546 = vmatpush3.bf16.msra.mxu0 %v4754_v8  ;;  %v4771_v6 = vld [vmem:[#allocation13 + $0xb4] ss:$8 sps:$4 sm:$0xff]   ;;  %v4778_v8 = vld [vmem:[#allocation13 + $0xe0] ss:$8 sps:$4 sm:$0xff]  }
0x1ac7   :  { %4536 = vmatpush3.bf16.msra.mxu1 %v3136_v29  ;;  %4547 = vmatprep.subr.bf16.mxu0 %v5135_v0  ;;  %v4769_v29 = vld [vmem:[#allocation13 + $0xb0] ss:$8 sps:$4 sm:$0xff]  }
0x1ac8   :  { %3478 = vmatprep.subr.bf16.mxu1 %v4762_v25 }
0x1aca   :  { %4548 = vmatpush3.bf16.msra.mxu0 %v4755_v59  ;;  %v4783_v59 = vld [vmem:[#allocation13 + $0xf4] ss:$8 sps:$4 sm:$0xff]  }
0x1acb   :  { %4549 = vmatprep.subr.bf16.mxu0 %v5135_v0 }
0x1acc   :  { %v4879_v30 = vpop.eup %4878 }
0x1acd   :  { %v3079_v31 = vmul.f32 %v4879_v30, %v4875_v62  ;;  %v4774_v30 = vld [vmem:[#allocation13 + $0xc4] ss:$8 sps:$4 sm:$0xff]  }
0x1ace   :  { %4550 = vmatpush3.bf16.msra.mxu0 %v4756_v1  ;;  %v4781_v1 = vld [vmem:[#allocation13 + $0xf0] ss:$8 sps:$4 sm:$0xff]  }
0x1acf   :  { %v3081_v43 = vpack.c.bf16 %v3079_v31, %v3079_v31  ;;  %4551 = vmatprep.subr.bf16.mxu0 %v5135_v0  ;;  %v4772_v31 = vld [vmem:[#allocation13 + $0xc0] ss:$8 sps:$4 sm:$0xff]  }
0x1ad1   :  { %4538 = vmatmul.mubr.msk.bf16.vlgmr.msra.gmra.mrb[88].mxu1 %vm672_vm3, %v3081_v43  ;;  %v4777_v43 = vld [vmem:[#allocation13 + $0xd4] ss:$8 sps:$4 sm:$0xff]  }
0x1ad2   :  { %3510 = vmatprep.mubr.bf16.mxu1 %v5137_v36  ;;  %4552 = vmatpush3.bf16.msra.mxu0 %v4757_v16  ;;  %v4758_v36 = vld [vmem:[#allocation11 + $0x70] sm:$0xff]   ;;  %v4784_v16 = vld [vmem:[#allocation14 + $0xc0] sm:$0xff]  }
0x1ad3   :  { %4553 = vmatprep.subr.bf16.mxu0 %v5135_v0  ;;  %3479 = vmatpush1.bf16.msra.mxu1 %v4760_v15 }
0x1ad4   :  { %3480 = vmatprep.subr.bf16.mxu1 %v4765_v11 }
0x1ad6   :  { %4554 = vmatpush3.bf16.msra.mxu0 %v4758_v36  ;;  %v4785_v36 = vld [vmem:[#allocation14 + $0x80] sm:$0xff]  }
0x1ad7   :  { %4555 = vmatprep.subr.bf16.mxu0 %v5135_v0  ;;  %3481 = vmatpush1.bf16.msra.mxu1 %v4763_v26 }
0x1ad8   :  { %3482 = vmatprep.subr.bf16.mxu1 %v4768_v52 }
0x1ada   :  { %4556 = vmatpush3.bf16.msra.mxu0 %v4759_v34  ;;  %v4790_v34 = vld [vmem:[#allocation14 + $0xd8] sm:$0xff]  }
0x1adb   :  { %3483 = vmatpush1.bf16.msra.mxu1 %v4766_v28  ;;  %4238 = vmatprep.subr.bf16.mxu0 %v4784_v16 }
0x1adc   :  { %3484 = vmatprep.subr.bf16.mxu1 %v4771_v6 }
0x1adf   :  { %3485 = vmatpush1.bf16.msra.mxu1 %v4769_v29 }
0x1ae0   :  { %3486 = vmatprep.subr.bf16.mxu1 %v4774_v30 }
0x1ae3   :  { %3487 = vmatpush1.bf16.msra.mxu1 %v4772_v31 }
0x1ae4   :  { %3488 = vmatprep.subr.bf16.mxu1 %v4777_v43 }
0x1ae7   :  { %3489 = vmatpush1.bf16.msra.mxu1 %v4775_v46 }
0x1ae8   :  { %3490 = vmatprep.subr.bf16.mxu1 %v4780_v4 }
0x1aeb   :  { %3491 = vmatpush1.bf16.msra.mxu1 %v4778_v8 }
0x1aec   :  { %3492 = vmatprep.subr.bf16.mxu1 %v4783_v59  ;;  %v4800_v59 = vld [vmem:[#allocation16] sm:$0xff]  }
0x1aef   :  { %3493 = vmatpush1.bf16.msra.mxu1 %v4781_v1  ;;  %v4801_v1 = vld [vmem:[#allocation16 + $0x8] sm:$0xff]  }
0x1af0   :  { %4561 = vmatprep.subr.bf16.mxu1 %v5135_v0 }
0x1b90   :  { %v3124_v2 = vpop.f32.mrb[64].mxu0 }
0x1b91   :  { %v4533_v32 = vpop.f32.mrb[65].mxu0 }
0x1b92   :  { %v3127_v14 = vpop.f32.mrb[66].mxu0  ;;  %v4787_v32 = vld [vmem:[#allocation14 + $0x88] sm:$0xff]  }
0x1b93   :  { %v4534_v33 = vpop.f32.mrb[67].mxu0  ;;  %v4788_v14 = vld [vmem:[#allocation14 + $0xd0] sm:$0xff]  }
0x1b94   :  { %v4789_v33 = vld [vmem:[#allocation14 + $0x90] sm:$0xff]  }
0x1ba4   :  { %v3172_v45 = vpop.f32.mrb[88].mxu1 }
0x1ba5   :  { %v4627_v35 = vpack.i.bf16 %v3172_v45, %v3124_v2  ;;  %v4539_v37 = vpop.f32.mrb[89].mxu1  ;;  %v4786_v2 = vld [vmem:[#allocation14 + $0xc8] sm:$0xff]   ;;  %v4791_v45 = vld [vmem:[#allocation14 + $0x98] sm:$0xff]  }
0x1ba6   :  { %v3175_v38 = vpop.f32.mrb[90].mxu1  ;;  %v4793_v37 = vld [vmem:[#allocation14 + $0xa0] sm:$0xff]  }
0x1ba7   :  { %4628 = vrot.lane.b32.xlu1 %v4627_v35, %s5138_s23  ;;  %v4540_v40 = vpop.f32.mrb[91].mxu1  ;;  %v4792_v35 = vld [vmem:[#allocation14 + $0xe0] sm:$0xff]   ;;  %v4794_v38 = vld [vmem:[#allocation14 + $0xe8] sm:$0xff]  }
0x1c19   :  { %v4629_v53 = vpop.permute.xlu1 %4628 }
0x1c1a   :  { %v4631_v58 = vunpack.i.h.bf16 %v4629_v53  ;;  %v4630_v60 = vunpack.i.l.bf16 %v4629_v53 }
0x1c1c   :  { %v3207_v10 = vsel %vm1485_vm5, %v3205_v5, %v4631_v58  ;;  %v3206_v12 = vsel %vm1485_vm5, %v3204_v7, %v4630_v60  ;;  %v4046_v5 = vld [vmem:[%s5916_s9 + $0x1] ss:$0 sm:$0xff] }
0x1c1d   :  { %v3208_v17 = vpack.c.bf16 %v3207_v10, %v3206_v12 }
0x1c1f   :  { %4558 = vmatmul.mubr.bf16.vlgmr.msra.gmra.mrb[68].mxu0 %v3208_v17 }
0x1c20   :  { %4239 = vmatpush3.bf16.msra.mxu0 %v4785_v36 }
0x1c21   :  { %4240 = vmatprep.subr.bf16.mxu0 %v4786_v2 }
0x1c24   :  { %4241 = vmatpush3.bf16.msra.mxu0 %v4787_v32 }
0x1c25   :  { %4242 = vmatprep.subr.bf16.mxu0 %v4788_v14 }
0x1c28   :  { %4243 = vmatpush3.bf16.msra.mxu0 %v4789_v33 }
0x1c29   :  { %4244 = vmatprep.subr.bf16.mxu0 %v4790_v34 }
0x1c2c   :  { %4245 = vmatpush3.bf16.msra.mxu0 %v4791_v45 }
0x1c2d   :  { %4246 = vmatprep.subr.bf16.mxu0 %v4792_v35  ;;  %v4802_v35 = vld [vmem:[#allocation16 + $0x10] sm:$0xff]  }
0x1c30   :  { %4247 = vmatpush3.bf16.msra.mxu0 %v4793_v37  ;;  %v4803_v37 = vld [vmem:[#allocation16 + $0x18] sm:$0xff]  }
0x1c31   :  { %4248 = vmatprep.subr.bf16.mxu0 %v4794_v38  ;;  %v4804_v38 = vld [vmem:[#allocation16 + $0x20] sm:$0xff]  }
0x1cf2   :  { %v3316_v49 = vpop.f32.mrb[68].mxu0 }
0x1cf3   :  { %v3317_v19 = vadd.f32 %v4034_v18, %v3316_v49  ;;  %v4559_v20 = vpop.f32.mrb[69].mxu0  ;;  %v4796_v49 = vld [vmem:[#allocation14 + $0xf0] sm:$0xff]  }
0x1cf4   :  { %v3319_v57 = vpop.f32.mrb[70].mxu0  ;;  %v4798_v20 = vld [vmem:[#allocation14 + $0xf8] sm:$0xff]  }
0x1cf5   :  { %v3320_v21 = vadd.f32 %v4034_v18, %v3319_v57  ;;  %v4560_v22 = vpop.f32.mrb[71].mxu0  ;;  %v3323_v23 = vadd.f32 %v3317_v19, %v5644_v13  ;;  %v4795_v18 = vld [vmem:[#allocation14 + $0xa8] sm:$0xff]   ;;  %v4797_v19 = vld [vmem:[#allocation14 + $0xb0] sm:$0xff]   ;;  %v4799_v57 = vld [vmem:[#allocation14 + $0xb8] sm:$0xff]  }
0x1cf6   :  { %4249 = vmatpush3.bf16.msra.mxu0 %v4795_v18 }
0x1cf7   :  { %3325 = vadd.xlane.f32.xlu0 %v3323_v23  ;;  %v3324_v24 = vadd.f32 %v3320_v21, %v5646_v39  ;;  %4250 = vmatprep.subr.bf16.mxu0 %v4796_v49  ;;  %v4047_v21 = vld [vmem:[%s5918_s11 + $0x2] sm:$0x3] }
0x1cf8   :  { %v3391_v22 = vrot.slane %v4047_v21, %v5413_v54 }
0x1cf9   :  { %3327 = vadd.xlane.f32.xlu1 %v3324_v24 }
0x1cfa   :  { %4251 = vmatpush3.bf16.msra.mxu0 %v4797_v19  ;;  %v4086_v19 = vld [vmem:[%s5924_s17] ss:$0 sm:$0xff] }
0x1cfb   :  { %4252 = vmatprep.subr.bf16.mxu0 %v4798_v20 }
0x1cfe   :  { %4253 = vmatpush3.bf16.msra.mxu0 %v4799_v57 }
0x1d84   :  { %v3326_v44 = vpop.xlane.xlu0 %3325 }
0x1d85   :  { %v3329_v62 = vmul.f32 0.0078125, %v3326_v44 }
0x1d86   :  { %v3328_v3 = vpop.xlane.xlu1 %3327 }
0x1d87   :  { %v5849_v27 = vsub.f32 %v3323_v23, %v3329_v62  ;;  %v3330_v63 = vmul.f32 0.0078125, %v3328_v3  ;;  %v3395_v23 = vrot.slane %v4047_v21, %v5405_v50  ;;  %v4065_v50 = vld [vmem:[%s5920_s13 + $0x1] ss:$0 sm:$0xff] }
0x1d89   :  { %v5851_v61 = vsub.f32 %v3324_v24, %v3330_v63  ;;  %v3333_v13 = vmul.f32 %v5849_v27, %v5849_v27 }
0x1d8b   :  { %3335 = vadd.xlane.f32.xlu0 %v3333_v13  ;;  %v3334_v39 = vmul.f32 %v5851_v61, %v5851_v61 }
0x1d8f   :  { %3337 = vadd.xlane.f32.xlu0 %v3334_v39 }
0x1e18   :  { %v3336_v40 = vpop.xlane.xlu0 %3335 }
0x1e19   :  { %v3339_v41 = vmul.f32 0.0078125, %v3336_v40  ;;  %v4805_v40 = vld [vmem:[#allocation16 + $0x28] sm:$0xff]  }
0x1e1b   :  { %v3341_v42 = vadd.f32 1e-05, %v3339_v41  ;;  %v4806_v41 = vld [vmem:[#allocation16 + $0x30] sm:$0xff]  }
0x1e1c   :  { %v3338_v47 = vpop.xlane.xlu0 %3337 }
0x1e1d   :  { %4880 = vrsqrt.f32 %v3341_v42  ;;  %v3340_v9 = vmul.f32 0.0078125, %v3338_v47  ;;  %v4807_v42 = vld [vmem:[#allocation16 + $0x38] sm:$0xff]  }
0x1e1f   :  { %v3342_v48 = vadd.f32 1e-05, %v3340_v9 }
0x1e21   :  { %4882 = vrsqrt.f32 %v3342_v48 }
0x1e27   :  { %v4881_v51 = vpop.eup %4880 }
0x1e28   :  { %v3345_v53 = vmul.f32 %v4881_v51, %v5849_v27 }
0x1e2a   :  { %v3355_v60 = vmul.f32 %v4044_v55, %v3345_v53 }
0x1e2b   :  { %v4883_v56 = vpop.eup %4882 }
0x1e2c   :  { %v3346_v58 = vmul.f32 %v4883_v56, %v5851_v61  ;;  %v3365_v10 = vadd.f32 %v4046_v5, %v3355_v60 }
0x1e2e   :  { %v3356_v7 = vmul.f32 %v4044_v55, %v3346_v58  ;;  %v4083_v58 = vld [vmem:[%s5921_s14 + $0x1] ss:$0 sm:$0xff]  ;;  %s3869_s14 = sshll.u32 %s5140_s25, 4  ;;  %s3870_s14 = int_to_ptr.vmem [resolvable:$true] %s3869_s14 }
0x1e2f   :  { %p5091_p3 = scmp.lt.s32.totalorder %s3870_s14, %s3870_s14 }
0x1e30   :  { %v3366_v12 = vadd.f32 %v4046_v5, %v3356_v7 }
0x1e32   :  { %v3367_v17 = vpack.c.bf16 %v3366_v12, %v3365_v10 }
0x1e34   :  { %3511 = vmatmul.mubr.bf16.vlgmr.msra.gmra.mrb[92].mxu1 %v3367_v17 }
0x1e35   :  { %4577 = vmatprep.mubr.msk.bf16.mxu1 %vm5136_vm0, %v5135_v0  ;;  %4562 = vmatpush3.bf16.msra.mxu1 %v4800_v59 }
0x1e36   :  { %4563 = vmatprep.subr.bf16.mxu1 %v5135_v0 }
0x1e39   :  { %4564 = vmatpush3.bf16.msra.mxu1 %v4801_v1 }
0x1e3a   :  { %4565 = vmatprep.subr.bf16.mxu1 %v5135_v0 }
0x1e3d   :  { %4566 = vmatpush3.bf16.msra.mxu1 %v4802_v35 }
0x1e3e   :  { %4567 = vmatprep.subr.bf16.mxu1 %v5135_v0 }
0x1e41   :  { %4568 = vmatpush3.bf16.msra.mxu1 %v4803_v37 }
0x1e42   :  { %4569 = vmatprep.subr.bf16.mxu1 %v5135_v0 }
0x1e45   :  { %4570 = vmatpush3.bf16.msra.mxu1 %v4804_v38 }
0x1e46   :  { %4571 = vmatprep.subr.bf16.mxu1 %v5135_v0 }
0x1e49   :  { %4572 = vmatpush3.bf16.msra.mxu1 %v4805_v40 }
0x1e4a   :  { %4573 = vmatprep.subr.bf16.mxu1 %v5135_v0 }
0x1e4d   :  { %4574 = vmatpush3.bf16.msra.mxu1 %v4806_v41 }
0x1e4e   :  { %4575 = vmatprep.subr.bf16.mxu1 %v5135_v0  ;;  %v4085_v0 = vld [vmem:[%s5922_s15 + $0x1] ss:$0 sm:$0xff]  ;;  %s5086_s15 = scalar_lea.vmem %s3870_s14, 256 }
0x1e4f   :  { %p5087_p2 = scmp.ne.s32.totalorder %s3870_s14, %s5086_s15  ;;  %p5092_p4 = scmp.lt.s32.totalorder %s5086_s15, %s5086_s15 }
0x1e51   :  { %4576 = vmatpush3.bf16.msra.mxu1 %v4807_v42  ;;  %p5093_p5 = por %p5092_p4, %p5091_p3 }
0x1e53   :  { %p5094_p6 = pnand %p5093_p5, %p5087_p2 }
0x1f07   :  { %v3512_v24 = vpop.f32.mrb[92].mxu1 }
0x1f08   :  { %v3513_v15 = vadd.f32 %v3512_v24, %v3391_v22  ;;  %v3514_v25 = vpop.f32.mrb[93].mxu1 }
0x1f09   :  { %v3515_v11 = vadd.f32 %v3514_v25, %v3395_v23  ;;  %v3516_v26 = vpop.f32.mrb[94].mxu1 }
0x1f0a   :  { %v3517_v44 = vadd.f32 %v3516_v26, %v3391_v22  ;;  %v3518_v62 = vpop.f32.mrb[95].mxu1  ;;  %v3521_v27 = vmax.f32 %v3513_v15, 0.0 }
0x1f0b   :  { %v3519_v3 = vadd.f32 %v3518_v62, %v3395_v23  ;;  %v3522_v61 = vmax.f32 %v3515_v11, 0.0 }
0x1f0c   :  { %v3523_v63 = vmax.f32 %v3517_v44, 0.0 }
0x1f0d   :  { %v3524_v13 = vmax.f32 %v3519_v3, 0.0 }
0x1f0e   :  { %v3525_v39 = vpack.c.bf16 %v3523_v63, %v3521_v27 }
0x1f0f   :  { %v3526_v52 = vpack.c.bf16 %v3524_v13, %v3522_v61 }
0x1f11   :  { %3696 = vmatprep.mubr.bf16.mxu0 %v3526_v52 }
0x1f12   :  { %3697 = vmatmul.mubr.bf16.vlgmr.msra.gmra.mrb[72].mxu0 %v3525_v39 }
0x1fe5   :  { %v4254_v28 = vpop.f32.mrb[72].mxu0 }
0x1fe6   :  { %v4255_v54 = vpop.f32.mrb[73].mxu0 }
0x1fe7   :  { %v4256_v6 = vadd.f32 %v4255_v54, %v4254_v28  ;;  %v4257_v29 = vpop.f32.mrb[74].mxu0 }
0x1fe8   :  { %v4258_v30 = vpop.f32.mrb[75].mxu0 }
0x1fe9   :  { %v3699_v31 = vadd.f32 %v4256_v6, %v4065_v50  ;;  %v4259_v43 = vadd.f32 %v4258_v30, %v4257_v29 }
0x1feb   :  { %v3702_v46 = vadd.f32 %v4259_v43, %v4065_v50  ;;  %v3705_v4 = vadd.f32 %v3699_v31, %v3365_v10 }
0x1fed   :  { %3707 = vadd.xlane.f32.xlu0 %v3705_v4  ;;  %v3706_v8 = vadd.f32 %v3702_v46, %v3366_v12 }
0x1fef   :  { %3709 = vadd.xlane.f32.xlu1 %v3706_v8 }
0x207a   :  { %v3708_v16 = vpop.xlane.xlu0 %3707 }
0x207b   :  { %v3711_v36 = vmul.f32 0.0078125, %v3708_v16 }
0x207c   :  { %v3710_v2 = vpop.xlane.xlu1 %3709 }
0x207d   :  { %v3713_v32 = vsub.f32 %v3705_v4, %v3711_v36  ;;  %v3712_v14 = vmul.f32 0.0078125, %v3710_v2 }
0x207f   :  { %v3714_v33 = vsub.f32 %v3706_v8, %v3712_v14  ;;  %v3715_v34 = vmul.f32 %v3713_v32, %v3713_v32 }
0x2081   :  { %3717 = vadd.xlane.f32.xlu0 %v3715_v34  ;;  %v3716_v45 = vmul.f32 %v3714_v33, %v3714_v33 }
0x2083   :  { %3719 = vadd.xlane.f32.xlu1 %v3716_v45 }
0x210e   :  { %v3718_v47 = vpop.xlane.xlu0 %3717 }
0x210f   :  { %v3721_v9 = vmul.f32 0.0078125, %v3718_v47 }
0x2110   :  { %v3720_v48 = vpop.xlane.xlu1 %3719 }
0x2111   :  { %v3723_v51 = vadd.f32 1e-05, %v3721_v9  ;;  %v3722_v53 = vmul.f32 0.0078125, %v3720_v48 }
0x2113   :  { %4884 = vrsqrt.f32 %v3723_v51  ;;  %v3724_v55 = vadd.f32 1e-05, %v3722_v53 }
0x2115   :  { %4886 = vrsqrt.f32 %v3724_v55 }
0x211d   :  { %v4885_v56 = vpop.eup %4884 }
0x211e   :  { %v3727_v60 = vmul.f32 %v4885_v56, %v3713_v32 }
0x211f   :  { %v4887_v5 = vpop.eup %4886 }
0x2120   :  { %v3728_v7 = vmul.f32 %v4887_v5, %v3714_v33  ;;  %v3737_v10 = vmul.f32 %v4083_v58, %v3727_v60 }
0x2122   :  { %v3738_v12 = vmul.f32 %v4083_v58, %v3728_v7  ;;  %v3747_v17 = vadd.f32 %v4085_v0, %v3737_v10 }
0x2124   :  { %v3748_v18 = vadd.f32 %v4085_v0, %v3738_v12 }
0x2126   :  { %v3749_v49 = vpack.c.bf16 %v3748_v18, %v3747_v17 }
0x2128   :  { %4578 = vmatmul.mubr.bf16.vlgmr.msra.gmra.mrb[96].mxu1 %v3749_v49 }
0x21fb   :  { %v3855_v20 = vpop.f32.mrb[96].mxu1 }
0x21fc   :  { %v3856_v57 = vadd.f32 %v4086_v19, %v3855_v20  ;;  %v4579_v21 = vpop.f32.mrb[97].mxu1 }
0x21fd   :  { %v3858_v22 = vpop.f32.mrb[98].mxu1 }
0x21fe   :  { %3862 = vst [vmem:[#allocation17] sm:$0xff] %v3856_v57  ;;  %v3859_v23 = vadd.f32 %v4086_v19, %v3858_v22  ;;  %v4580_v24 = vpop.f32.mrb[99].mxu1 }
0x2200   :  { %3863 = vst [vmem:[#allocation17 + $0x8] sm:$0xff] %v3859_v23 }
0x2201   :  { %5097 = shalt.err (!%p5094_p6)
}
0x2202   :  { %s5098_s26 = scalar_lea.hbm %s5925_s18, 256 }
0x2203   :  { %p5099_p7 = scmp.ne.s32.totalorder %s5925_s18, %s5098_s26  ;;  %p5102_p8 = scmp.lt.u32.totalorder %s5098_s26, %s5925_s18 }
0x2205   :  { %p5104_p9 = pnand %p5102_p8, %p5099_p7 }
0x2207   :  { %5107 = shalt.err (!%p5104_p9)
}
0x2208   :  { %3875 = dma.vmem_to_hbm [thread:$0]  %s3870_s14, 256, %s5925_s18, [#allocation4], %s5946_s2, %s5946_s2, %s5945_s1  }
0x2209   :  { %5118 = dma.done.wait [#allocation4], 256  }
0x220a   :  { %5119 = vsyncadd [#allocation4], 4294967040 }
0x220b   :  { %3879 = vsyncpa [#allocation3], 1 }
0x220c   :  { %3880 = vsyncpa [#allocation6], 1 }
0x220d   :  { %3881 = vsyncpa [#allocation9], 1 }
0x220e   :  { %3882 = vsyncpa [#allocation12], 1 }
0x220f   :  { %3883 = vsyncpa [#allocation15], 1 }
0x2210   :  { %3884 = vsyncpa [#allocation4], 1 }

</bundles_post_ra>
